<compile_context>
chip_gen: v5e
topology: v5e:2x2
jax: 0.10.0
libtpu: 0.0.40
codegen_flags: <defaults>
</compile_context>

<pallas_src>
import functools

import jax
import jax.numpy as jnp
import numpy as np
from jax import lax
from jax.experimental import pallas as pl
from jax.experimental.pallas import tpu as pltpu

_EPS = 1e-5


# ---------------------------------------------------------------------------
# Fused kernel: out = relu(bn2(conv2(relu(bn1(conv1(x))))) + shortcut(x))
# Layout inside the kernel: rows = (n, h), lanes = w*C + c (lane-dense).
# ---------------------------------------------------------------------------
def _residual2d_kernel(dims, has_convx, *refs):
    N, H, W, Cin, Cout = dims
    if has_convx:
        (x_ref, bd1_ref, bd2_ref, p1_ref, p2_ref, bn1_ref, bn2_ref,
         bdx_ref, o_ref, xp_sc, y1p_sc) = refs
    else:
        (x_ref, bd1_ref, bd2_ref, p1_ref, p2_ref, bn1_ref, bn2_ref,
         o_ref, xp_sc, y1p_sc) = refs
        bdx_ref = None

    f32 = jnp.float32
    H1, W1 = H + 1, W + 1
    Lx = W * Cin              # input row width (lanes)
    Lxp = (W + 2) * Cin       # padded-x row width
    L1 = W1 * Cout            # conv1-output row width
    L1p = (W1 + 2) * Cout     # padded-y1 row width
    L2 = W * Cout             # conv2 / output row width

    # ---- pad x: zero only the 1-px halo strips, then store the interior ------
    xp_sc[:, 0:1, :] = jnp.zeros((N, 1, Lxp), f32)
    xp_sc[:, H + 1:H + 2, :] = jnp.zeros((N, 1, Lxp), f32)
    xp_sc[:, 1:H + 1, 0:Cin] = jnp.zeros((N, H, Cin), f32)
    xp_sc[:, 1:H + 1, (W + 1) * Cin:Lxp] = jnp.zeros((N, H, Cin), f32)
    xp_sc[:, 1:H + 1, Cin:(W + 1) * Cin] = x_ref[...]

    # ---- zero the halo of the padded-y1 scratch (interior is written later) --
    y1p_sc[:, 0:1, :] = jnp.zeros((N, 1, L1p), f32)
    y1p_sc[:, H1 + 1:H1 + 2, :] = jnp.zeros((N, 1, L1p), f32)
    y1p_sc[:, 1:H1 + 1, 0:Cout] = jnp.zeros((N, H1, Cout), f32)
    y1p_sc[:, 1:H1 + 1, (W1 + 1) * Cout:L1p] = jnp.zeros((N, H1, Cout), f32)

    # ---- conv1 (2x2, pad 1): shifted-slice taps x block-diagonal weights -----
    # a1[n, i, j*Cout+co] = sum_{kh,kw,ci} xpad[n, i+kh, (j+kw)*Cin+ci] * w1[kh,kw,ci,co]
    a1 = []
    for n in range(N):                      # N is small: python-unrolled per image
        acc = jnp.zeros((H1, L1), f32)
        for kh in range(2):
            for kw in range(2):
                tap = xp_sc[n:n + 1, kh:kh + H1,
                            kw * Cin:kw * Cin + W1 * Cin].reshape(H1, W1 * Cin)
                bd = bd1_ref[kh * 2 + kw:kh * 2 + kw + 1].reshape(W1 * Cin, L1)
                acc = acc + jnp.dot(tap, bd, preferred_element_type=f32)
        a1.append(acc)

    # ---- bn1: one-pass batch stats (sum, sum-of-squares) over N*H1*W1 --------
    cs1 = jnp.zeros((1, L1), f32)
    sq1 = jnp.zeros((1, L1), f32)
    for acc in a1:
        cs1 = cs1 + jnp.sum(acc, axis=0, keepdims=True)
        sq1 = sq1 + jnp.sum(acc * acc, axis=0, keepdims=True)
    inv1 = 1.0 / float(N * H1 * W1)
    # P1 broadcasts per-channel group sums across the interleaved lane layout.
    mean1 = jnp.dot(cs1, p1_ref[...], preferred_element_type=f32) * inv1
    ex2_1 = jnp.dot(sq1, p1_ref[...], preferred_element_type=f32) * inv1
    var1 = ex2_1 - mean1 * mean1
    scale1 = bn1_ref[0:1, :] * lax.rsqrt(var1 + _EPS)
    shift1 = bn1_ref[1:2, :] - mean1 * scale1

    # relu(bn1(a1)) goes straight into the padded-y1 interior (never leaves VMEM)
    for n in range(N):
        y1n = jnp.maximum(a1[n] * scale1 + shift1, 0.0)
        y1p_sc[n:n + 1, 1:H1 + 1, Cout:(W1 + 1) * Cout] = y1n.reshape(1, H1, L1)

    # ---- conv2 (4x4, pad 1): same shifted-slice + block-diag scheme ----------
    a2 = jnp.zeros((N * H, L2), f32)
    for kh in range(4):
        for kw in range(4):
            tap = y1p_sc[:, kh:kh + H, kw * Cout:kw * Cout + W * Cout]
            bd = bd2_ref[kh * 4 + kw:kh * 4 + kw + 1].reshape(L2, L2)
            a2 = a2 + jnp.dot(tap.reshape(N * H, L2), bd,
                              preferred_element_type=f32)

    # ---- bn2: one-pass stats ---------------------------------------------------
    cs2 = jnp.sum(a2, axis=0, keepdims=True)
    sq2 = jnp.sum(a2 * a2, axis=0, keepdims=True)
    inv2 = 1.0 / float(N * H * W)
    mean2 = jnp.dot(cs2, p2_ref[...], preferred_element_type=f32) * inv2
    ex2_2 = jnp.dot(sq2, p2_ref[...], preferred_element_type=f32) * inv2
    var2 = ex2_2 - mean2 * mean2
    scale2 = bn2_ref[0:1, :] * lax.rsqrt(var2 + _EPS)
    shift2 = bn2_ref[1:2, :] - mean2 * scale2
    y2 = a2 * scale2 + shift2

    # ---- shortcut: 1x1 conv as a block-diag matmul, or pure identity ----------
    x2d = x_ref[...].reshape(N * H, Lx)
    if has_convx:
        sc = jnp.dot(x2d, bdx_ref[...], preferred_element_type=f32) + bn2_ref[2:3, :]
    else:
        sc = x2d                       # Cin == Cout: interleaved layouts match

    # ---- residual add + relu; lane-dense (N*H, W*Cout) store ------------------
    o_ref[...] = jnp.maximum(y2 + sc, 0.0)


# ---------------------------------------------------------------------------
# Wrapper-side weight transforms (plain XLA, tiny)
# ---------------------------------------------------------------------------
def _block_diag(w, rep):
    # w: (Ci, Co) -> (rep*Ci, rep*Co) with BD[j*Ci+i, k*Co+o] = (j==k) * w[i, o]
    ci, co = w.shape
    eye = jnp.eye(rep, dtype=jnp.float32)
    return jnp.einsum("jk,io->jiko", eye, w.astype(jnp.float32)).reshape(rep * ci, rep * co)


def _group_bcast(rep, c):
    # P[j*c+a, k*c+b] = (a == b); (row_sums @ P) = per-channel totals, already
    # broadcast across the interleaved (w, c) lane layout.
    ones = jnp.ones((rep, rep), jnp.float32)
    eye = jnp.eye(c, dtype=jnp.float32)
    return jnp.einsum("jk,ab->jakb", ones, eye).reshape(rep * c, rep * c)


def _tile_chan(v, rep):
    # (1, C) or (C,) per-channel vector -> (rep*C,) interleaved lane vector
    return jnp.tile(v.reshape(-1).astype(jnp.float32), rep)


# ---------------------------------------------------------------------------
# Wrapper (NCHW in / NCHW out, like the PyTorch module)
# ---------------------------------------------------------------------------
def residual2d_forward(x_nchw, params):
    x = jnp.transpose(x_nchw, (0, 2, 3, 1)).astype(jnp.float32)    # -> NHWC
    N, H, W, Cin = x.shape
    Cout = params["w1"].shape[-1]
    H1, W1 = H + 1, W + 1
    has_convx = "wx" in params

    x3 = x.reshape(N, H, W * Cin)                                   # interleaved

    # Block-diagonal weights (channel mixing in the interleaved layout).
    bd1 = jnp.stack([_block_diag(params["w1"][kh, kw], W1)
                     for kh in range(2) for kw in range(2)])        # (4, W1*Cin, W1*Cout)
    bd2 = jnp.stack([_block_diag(params["w2"][kh, kw], W)
                     for kh in range(4) for kw in range(4)])        # (16, W*Cout, W*Cout)
    p1m = _group_bcast(W1, Cout)                                    # (W1*Cout, W1*Cout)
    p2m = _group_bcast(W, Cout)                                     # (W*Cout,  W*Cout)

    # Packed, pre-tiled per-channel vectors (conv biases b1/b2 intentionally
    # omitted: they are cancelled by training-mode BN mean subtraction).
    bn1v = jnp.stack([_tile_chan(params["g1"], W1),
                      _tile_chan(params["be1"], W1)])               # (2, W1*Cout)
    bx_row = (_tile_chan(params["bx"], W) if has_convx
              else jnp.zeros((W * Cout,), jnp.float32))
    bn2v = jnp.stack([_tile_chan(params["g2"], W),
                      _tile_chan(params["be2"], W), bx_row])        # (3, W*Cout)

    args = [x3, bd1, bd2, p1m, p2m, bn1v, bn2v]
    if has_convx:
        args.append(_block_diag(params["wx"], W))                   # (W*Cin, W*Cout)

    vmem = pl.BlockSpec(memory_space=pltpu.MemorySpace.VMEM)
    out2d = pl.pallas_call(
        functools.partial(_residual2d_kernel, (N, H, W, Cin, Cout), has_convx),
        out_shape=jax.ShapeDtypeStruct((N * H, W * Cout), jnp.float32),
        in_specs=[vmem] * len(args),
        out_specs=vmem,
        scratch_shapes=[
            pltpu.VMEM((N, H + 2, (W + 2) * Cin), jnp.float32),     # padded x
            pltpu.VMEM((N, H1 + 2, (W1 + 2) * Cout), jnp.float32),  # padded y1
        ],
    )(*args)

    out = out2d.reshape(N, H, W, Cout)
    return jnp.transpose(out, (0, 3, 1, 2))                          # -> NCHW


# ---------------------------------------------------------------------------
# Deterministic parameter construction (synthetic; shapes from __init__)
# ---------------------------------------------------------------------------
def init_params(key, in_channels, out_channels):
    k1, k2, k3, k4, k5, k6 = jax.random.split(key, 6)

    def uni(k, shape, fan_in):
        bound = 1.0 / np.sqrt(fan_in)
        return jax.random.uniform(k, shape, jnp.float32, -bound, bound)

    p = {}
    # conv weights stored directly in HWIO (kh, kw, Cin, Cout)
    p["w1"] = uni(k1, (2, 2, in_channels, out_channels), in_channels * 4)
    p["b1"] = uni(k2, (1, out_channels), in_channels * 4)
    p["w2"] = uni(k3, (4, 4, out_channels, out_channels), out_channels * 16)
    p["b2"] = uni(k4, (1, out_channels), out_channels * 16)
    if in_channels != out_channels:
        p["wx"] = uni(k5, (in_channels, out_channels), in_channels)
        p["bx"] = uni(k6, (1, out_channels), in_channels)
    # BatchNorm affine params (PyTorch default init: gamma=1, beta=0)
    p["g1"] = jnp.ones((1, out_channels), jnp.float32)
    p["be1"] = jnp.zeros((1, out_channels), jnp.float32)
    p["g2"] = jnp.ones((1, out_channels), jnp.float32)
    p["be2"] = jnp.zeros((1, out_channels), jnp.float32)
    return p


# ---------------------------------------------------------------------------
# Pure-JAX reference (correctness check only; includes b1/b2 to demonstrate
# that they are cancelled by training-mode BatchNorm)
# ---------------------------------------------------------------------------
def _ref_forward(x_nchw, p):
    x = jnp.transpose(x_nchw, (0, 2, 3, 1)).astype(jnp.float32)
    dn = ("NHWC", "HWIO", "NHWC")

    def bn(y, g, b):
        m = jnp.mean(y, axis=(0, 1, 2), keepdims=True)
        v = jnp.mean((y - m) ** 2, axis=(0, 1, 2), keepdims=True)
        return (y - m) * lax.rsqrt(v + _EPS) * g + b

    y1 = lax.conv_general_dilated(x, p["w1"], (1, 1), ((1, 1), (1, 1)),
                                  dimension_numbers=dn) + p["b1"]
    y1 = jnp.maximum(bn(y1, p["g1"], p["be1"]), 0.0)
    y2 = lax.conv_general_dilated(y1, p["w2"], (1, 1), ((1, 1), (1, 1)),
                                  dimension_numbers=dn) + p["b2"]
    y2 = bn(y2, p["g2"], p["be2"])
    if "wx" in p:
        sc = jnp.einsum("nhwc,cd->nhwd", x, p["wx"]) + p["bx"]
    else:
        sc = x
    out = jnp.maximum(y2 + sc, 0.0)
    return jnp.transpose(out, (0, 3, 1, 2))


if __name__ == "__main__":
    fwd = jax.jit(residual2d_forward)

    # Case 1: in_channels != out_channels  (1x1 shortcut conv path)
    key = jax.random.PRNGKey(0)
    kx, kp = jax.random.split(key)
    x = jax.random.normal(kx, (2, 4, 16, 16), jnp.float32)
    params = init_params(kp, 4, 8)
    out = jax.block_until_ready(fwd(x, params))
    ref = jax.block_until_ready(_ref_forward(x, params))
    np.testing.assert_allclose(np.asarray(out), np.asarray(ref),
                               rtol=1e-3, atol=1e-3)

    # Case 2: in_channels == out_channels  (identity shortcut, matmul skipped)
    kx2, kp2 = jax.random.split(jax.random.PRNGKey(1))
    x2 = jax.random.normal(kx2, (2, 8, 16, 16), jnp.float32)
    params2 = init_params(kp2, 8, 8)
    out2 = jax.block_until_ready(fwd(x2, params2))
    ref2 = jax.block_until_ready(_ref_forward(x2, params2))
    np.testing.assert_allclose(np.asarray(out2), np.asarray(ref2),
                               rtol=1e-3, atol=1e-3)

    print("KERNEL_OK")
</pallas_src>

<mosaic_0001>
module attributes {stable_mosaic.version = 11 : i64} {
  func.func @_residual2d_kernel(%arg0: memref<2x16x64xf32, #tpu.memory_space<vmem>>, %arg1: memref<4x68x136xf32, #tpu.memory_space<vmem>>, %arg2: memref<16x128x128xf32, #tpu.memory_space<vmem>>, %arg3: memref<136x136xf32, #tpu.memory_space<vmem>>, %arg4: memref<128x128xf32, #tpu.memory_space<vmem>>, %arg5: memref<2x136xf32, #tpu.memory_space<vmem>>, %arg6: memref<3x128xf32, #tpu.memory_space<vmem>>, %arg7: memref<64x128xf32, #tpu.memory_space<vmem>>, %arg8: memref<32x128xf32, #tpu.memory_space<vmem>>, %arg9: memref<2x18x72xf32, #tpu.memory_space<vmem>>, %arg10: memref<2x19x152xf32, #tpu.memory_space<vmem>>) attributes {dimension_semantics = [], scalar_prefetch = 0 : i64, scratch_operands = 2 : i64, tpu.core_type = #tpu.core_type<tc>} {
    %cst = arith.constant 0.000000e+00 : f32
    %0 = vector.broadcast %cst : f32 to vector<2x1x72xf32>
    %c0 = arith.constant 0 : index
    %c0_0 = arith.constant 0 : index
    %c0_1 = arith.constant 0 : index
    %1 = vector.load %arg9[%c0, %c0_0, %c0_1] : memref<2x18x72xf32, #tpu.memory_space<vmem>>, vector<2x1x72xf32>
    tpu.vector_store %arg9[%c0, %c0_0, %c0_1], %0 {strides = array<i32>} : memref<2x18x72xf32, #tpu.memory_space<vmem>>, vector<2x1x72xf32>,
    %cst_2 = arith.constant 0.000000e+00 : f32
    %2 = vector.broadcast %cst_2 : f32 to vector<2x1x72xf32>
    %c0_3 = arith.constant 0 : index
    %c17 = arith.constant 17 : index
    %c0_4 = arith.constant 0 : index
    %3 = vector.load %arg9[%c0_3, %c17, %c0_4] : memref<2x18x72xf32, #tpu.memory_space<vmem>>, vector<2x1x72xf32>
    tpu.vector_store %arg9[%c0_3, %c17, %c0_4], %2 {strides = array<i32>} : memref<2x18x72xf32, #tpu.memory_space<vmem>>, vector<2x1x72xf32>,
    %cst_5 = arith.constant 0.000000e+00 : f32
    %4 = vector.broadcast %cst_5 : f32 to vector<2x16x4xf32>
    %c0_6 = arith.constant 0 : index
    %c1 = arith.constant 1 : index
    %c0_7 = arith.constant 0 : index
    %5 = vector.load %arg9[%c0_6, %c1, %c0_7] : memref<2x18x72xf32, #tpu.memory_space<vmem>>, vector<2x16x4xf32>
    tpu.vector_store %arg9[%c0_6, %c1, %c0_7], %4 {strides = array<i32>} : memref<2x18x72xf32, #tpu.memory_space<vmem>>, vector<2x16x4xf32>,
    %cst_8 = arith.constant 0.000000e+00 : f32
    %6 = vector.broadcast %cst_8 : f32 to vector<2x16x4xf32>
    %c0_9 = arith.constant 0 : index
    %c1_10 = arith.constant 1 : index
    %c68 = arith.constant 68 : index
    %7 = vector.load %arg9[%c0_9, %c1_10, %c68] : memref<2x18x72xf32, #tpu.memory_space<vmem>>, vector<2x16x4xf32>
    tpu.vector_store %arg9[%c0_9, %c1_10, %c68], %6 {strides = array<i32>} : memref<2x18x72xf32, #tpu.memory_space<vmem>>, vector<2x16x4xf32>,
    %c0_11 = arith.constant 0 : index
    %c0_12 = arith.constant 0 : index
    %c0_13 = arith.constant 0 : index
    %8 = vector.load %arg0[%c0_11, %c0_12, %c0_13] : memref<2x16x64xf32, #tpu.memory_space<vmem>>, vector<2x16x64xf32>
    %c0_14 = arith.constant 0 : index
    %c1_15 = arith.constant 1 : index
    %c4 = arith.constant 4 : index
    %9 = vector.load %arg9[%c0_14, %c1_15, %c4] : memref<2x18x72xf32, #tpu.memory_space<vmem>>, vector<2x16x64xf32>
    tpu.vector_store %arg9[%c0_14, %c1_15, %c4], %8 {strides = array<i32>} : memref<2x18x72xf32, #tpu.memory_space<vmem>>, vector<2x16x64xf32>,
    %cst_16 = arith.constant 0.000000e+00 : f32
    %10 = vector.broadcast %cst_16 : f32 to vector<2x1x152xf32>
    %c0_17 = arith.constant 0 : index
    %c0_18 = arith.constant 0 : index
    %c0_19 = arith.constant 0 : index
    %11 = vector.load %arg10[%c0_17, %c0_18, %c0_19] : memref<2x19x152xf32, #tpu.memory_space<vmem>>, vector<2x1x152xf32>
    tpu.vector_store %arg10[%c0_17, %c0_18, %c0_19], %10 {strides = array<i32>} : memref<2x19x152xf32, #tpu.memory_space<vmem>>, vector<2x1x152xf32>,
    %cst_20 = arith.constant 0.000000e+00 : f32
    %12 = vector.broadcast %cst_20 : f32 to vector<2x1x152xf32>
    %c0_21 = arith.constant 0 : index
    %c18 = arith.constant 18 : index
    %c0_22 = arith.constant 0 : index
    %13 = vector.load %arg10[%c0_21, %c18, %c0_22] : memref<2x19x152xf32, #tpu.memory_space<vmem>>, vector<2x1x152xf32>
    tpu.vector_store %arg10[%c0_21, %c18, %c0_22], %12 {strides = array<i32>} : memref<2x19x152xf32, #tpu.memory_space<vmem>>, vector<2x1x152xf32>,
    %cst_23 = arith.constant 0.000000e+00 : f32
    %14 = vector.broadcast %cst_23 : f32 to vector<2x17x8xf32>
    %c0_24 = arith.constant 0 : index
    %c1_25 = arith.constant 1 : index
    %c0_26 = arith.constant 0 : index
    %15 = vector.load %arg10[%c0_24, %c1_25, %c0_26] : memref<2x19x152xf32, #tpu.memory_space<vmem>>, vector<2x17x8xf32>
    tpu.vector_store %arg10[%c0_24, %c1_25, %c0_26], %14 {strides = array<i32>} : memref<2x19x152xf32, #tpu.memory_space<vmem>>, vector<2x17x8xf32>,
    %cst_27 = arith.constant 0.000000e+00 : f32
    %16 = vector.broadcast %cst_27 : f32 to vector<2x17x8xf32>
    %c0_28 = arith.constant 0 : index
    %c1_29 = arith.constant 1 : index
    %c144 = arith.constant 144 : index
    %17 = vector.load %arg10[%c0_28, %c1_29, %c144] : memref<2x19x152xf32, #tpu.memory_space<vmem>>, vector<2x17x8xf32>
    tpu.vector_store %arg10[%c0_28, %c1_29, %c144], %16 {strides = array<i32>} : memref<2x19x152xf32, #tpu.memory_space<vmem>>, vector<2x17x8xf32>,
    %cst_30 = arith.constant 0.000000e+00 : f32
    %18 = vector.broadcast %cst_30 : f32 to vector<17x136xf32>
    %c0_31 = arith.constant 0 : index
    %c0_32 = arith.constant 0 : index
    %c0_33 = arith.constant 0 : index
    %19 = vector.load %arg9[%c0_31, %c0_32, %c0_33] : memref<2x18x72xf32, #tpu.memory_space<vmem>>, vector<1x17x68xf32>
    %20 = vector.shape_cast %19 : vector<1x17x68xf32> to vector<17x68xf32>
    %c0_34 = arith.constant 0 : index
    %c0_35 = arith.constant 0 : index
    %c0_36 = arith.constant 0 : index
    %21 = vector.load %arg1[%c0_34, %c0_35, %c0_36] : memref<4x68x136xf32, #tpu.memory_space<vmem>>, vector<1x68x136xf32>
    %22 = vector.shape_cast %21 : vector<1x68x136xf32> to vector<68x136xf32>
    %cst_37 = arith.constant dense<0.000000e+00> : vector<17x136xf32>
    %23 = tpu.matmul %20, %22, %cst_37 {dimension_numbers = #tpu.dot_dimension_numbers<[1], [0], [0], [1], [0, 0, 1, 1], [], []>} : vector<17x68xf32>, vector<68x136xf32>, vector<17x136xf32> -> vector<17x136xf32>
    %24 = arith.addf %18, %23 : vector<17x136xf32>
    %c0_38 = arith.constant 0 : index
    %c0_39 = arith.constant 0 : index
    %c4_40 = arith.constant 4 : index
    %25 = vector.load %arg9[%c0_38, %c0_39, %c4_40] : memref<2x18x72xf32, #tpu.memory_space<vmem>>, vector<1x17x68xf32>
    %26 = vector.shape_cast %25 : vector<1x17x68xf32> to vector<17x68xf32>
    %c1_41 = arith.constant 1 : index
    %c0_42 = arith.constant 0 : index
    %c0_43 = arith.constant 0 : index
    %27 = vector.load %arg1[%c1_41, %c0_42, %c0_43] : memref<4x68x136xf32, #tpu.memory_space<vmem>>, vector<1x68x136xf32>
    %28 = vector.shape_cast %27 : vector<1x68x136xf32> to vector<68x136xf32>
    %cst_44 = arith.constant dense<0.000000e+00> : vector<17x136xf32>
    %29 = tpu.matmul %26, %28, %cst_44 {dimension_numbers = #tpu.dot_dimension_numbers<[1], [0], [0], [1], [0, 0, 1, 1], [], []>} : vector<17x68xf32>, vector<68x136xf32>, vector<17x136xf32> -> vector<17x136xf32>
    %30 = arith.addf %24, %29 : vector<17x136xf32>
    %c0_45 = arith.constant 0 : index
    %c1_46 = arith.constant 1 : index
    %c0_47 = arith.constant 0 : index
    %31 = vector.load %arg9[%c0_45, %c1_46, %c0_47] : memref<2x18x72xf32, #tpu.memory_space<vmem>>, vector<1x17x68xf32>
    %32 = vector.shape_cast %31 : vector<1x17x68xf32> to vector<17x68xf32>
    %c2 = arith.constant 2 : index
    %c0_48 = arith.constant 0 : index
    %c0_49 = arith.constant 0 : index
    %33 = vector.load %arg1[%c2, %c0_48, %c0_49] : memref<4x68x136xf32, #tpu.memory_space<vmem>>, vector<1x68x136xf32>
    %34 = vector.shape_cast %33 : vector<1x68x136xf32> to vector<68x136xf32>
    %cst_50 = arith.constant dense<0.000000e+00> : vector<17x136xf32>
    %35 = tpu.matmul %32, %34, %cst_50 {dimension_numbers = #tpu.dot_dimension_numbers<[1], [0], [0], [1], [0, 0, 1, 1], [], []>} : vector<17x68xf32>, vector<68x136xf32>, vector<17x136xf32> -> vector<17x136xf32>
    %36 = arith.addf %30, %35 : vector<17x136xf32>
    %c0_51 = arith.constant 0 : index
    %c1_52 = arith.constant 1 : index
    %c4_53 = arith.constant 4 : index
    %37 = vector.load %arg9[%c0_51, %c1_52, %c4_53] : memref<2x18x72xf32, #tpu.memory_space<vmem>>, vector<1x17x68xf32>
    %38 = vector.shape_cast %37 : vector<1x17x68xf32> to vector<17x68xf32>
    %c3 = arith.constant 3 : index
    %c0_54 = arith.constant 0 : index
    %c0_55 = arith.constant 0 : index
    %39 = vector.load %arg1[%c3, %c0_54, %c0_55] : memref<4x68x136xf32, #tpu.memory_space<vmem>>, vector<1x68x136xf32>
    %40 = vector.shape_cast %39 : vector<1x68x136xf32> to vector<68x136xf32>
    %cst_56 = arith.constant dense<0.000000e+00> : vector<17x136xf32>
    %41 = tpu.matmul %38, %40, %cst_56 {dimension_numbers = #tpu.dot_dimension_numbers<[1], [0], [0], [1], [0, 0, 1, 1], [], []>} : vector<17x68xf32>, vector<68x136xf32>, vector<17x136xf32> -> vector<17x136xf32>
    %42 = arith.addf %36, %41 : vector<17x136xf32>
    %cst_57 = arith.constant 0.000000e+00 : f32
    %43 = vector.broadcast %cst_57 : f32 to vector<17x136xf32>
    %c1_58 = arith.constant 1 : index
    %c0_59 = arith.constant 0 : index
    %c0_60 = arith.constant 0 : index
    %44 = vector.load %arg9[%c1_58, %c0_59, %c0_60] : memref<2x18x72xf32, #tpu.memory_space<vmem>>, vector<1x17x68xf32>
    %45 = vector.shape_cast %44 : vector<1x17x68xf32> to vector<17x68xf32>
    %c0_61 = arith.constant 0 : index
    %c0_62 = arith.constant 0 : index
    %c0_63 = arith.constant 0 : index
    %46 = vector.load %arg1[%c0_61, %c0_62, %c0_63] : memref<4x68x136xf32, #tpu.memory_space<vmem>>, vector<1x68x136xf32>
    %47 = vector.shape_cast %46 : vector<1x68x136xf32> to vector<68x136xf32>
    %cst_64 = arith.constant dense<0.000000e+00> : vector<17x136xf32>
    %48 = tpu.matmul %45, %47, %cst_64 {dimension_numbers = #tpu.dot_dimension_numbers<[1], [0], [0], [1], [0, 0, 1, 1], [], []>} : vector<17x68xf32>, vector<68x136xf32>, vector<17x136xf32> -> vector<17x136xf32>
    %49 = arith.addf %43, %48 : vector<17x136xf32>
    %c1_65 = arith.constant 1 : index
    %c0_66 = arith.constant 0 : index
    %c4_67 = arith.constant 4 : index
    %50 = vector.load %arg9[%c1_65, %c0_66, %c4_67] : memref<2x18x72xf32, #tpu.memory_space<vmem>>, vector<1x17x68xf32>
    %51 = vector.shape_cast %50 : vector<1x17x68xf32> to vector<17x68xf32>
    %c1_68 = arith.constant 1 : index
    %c0_69 = arith.constant 0 : index
    %c0_70 = arith.constant 0 : index
    %52 = vector.load %arg1[%c1_68, %c0_69, %c0_70] : memref<4x68x136xf32, #tpu.memory_space<vmem>>, vector<1x68x136xf32>
    %53 = vector.shape_cast %52 : vector<1x68x136xf32> to vector<68x136xf32>
    %cst_71 = arith.constant dense<0.000000e+00> : vector<17x136xf32>
    %54 = tpu.matmul %51, %53, %cst_71 {dimension_numbers = #tpu.dot_dimension_numbers<[1], [0], [0], [1], [0, 0, 1, 1], [], []>} : vector<17x68xf32>, vector<68x136xf32>, vector<17x136xf32> -> vector<17x136xf32>
    %55 = arith.addf %49, %54 : vector<17x136xf32>
    %c1_72 = arith.constant 1 : index
    %c1_73 = arith.constant 1 : index
    %c0_74 = arith.constant 0 : index
    %56 = vector.load %arg9[%c1_72, %c1_73, %c0_74] : memref<2x18x72xf32, #tpu.memory_space<vmem>>, vector<1x17x68xf32>
    %57 = vector.shape_cast %56 : vector<1x17x68xf32> to vector<17x68xf32>
    %c2_75 = arith.constant 2 : index
    %c0_76 = arith.constant 0 : index
    %c0_77 = arith.constant 0 : index
    %58 = vector.load %arg1[%c2_75, %c0_76, %c0_77] : memref<4x68x136xf32, #tpu.memory_space<vmem>>, vector<1x68x136xf32>
    %59 = vector.shape_cast %58 : vector<1x68x136xf32> to vector<68x136xf32>
    %cst_78 = arith.constant dense<0.000000e+00> : vector<17x136xf32>
    %60 = tpu.matmul %57, %59, %cst_78 {dimension_numbers = #tpu.dot_dimension_numbers<[1], [0], [0], [1], [0, 0, 1, 1], [], []>} : vector<17x68xf32>, vector<68x136xf32>, vector<17x136xf32> -> vector<17x136xf32>
    %61 = arith.addf %55, %60 : vector<17x136xf32>
    %c1_79 = arith.constant 1 : index
    %c1_80 = arith.constant 1 : index
    %c4_81 = arith.constant 4 : index
    %62 = vector.load %arg9[%c1_79, %c1_80, %c4_81] : memref<2x18x72xf32, #tpu.memory_space<vmem>>, vector<1x17x68xf32>
    %63 = vector.shape_cast %62 : vector<1x17x68xf32> to vector<17x68xf32>
    %c3_82 = arith.constant 3 : index
    %c0_83 = arith.constant 0 : index
    %c0_84 = arith.constant 0 : index
    %64 = vector.load %arg1[%c3_82, %c0_83, %c0_84] : memref<4x68x136xf32, #tpu.memory_space<vmem>>, vector<1x68x136xf32>
    %65 = vector.shape_cast %64 : vector<1x68x136xf32> to vector<68x136xf32>
    %cst_85 = arith.constant dense<0.000000e+00> : vector<17x136xf32>
    %66 = tpu.matmul %63, %65, %cst_85 {dimension_numbers = #tpu.dot_dimension_numbers<[1], [0], [0], [1], [0, 0, 1, 1], [], []>} : vector<17x68xf32>, vector<68x136xf32>, vector<17x136xf32> -> vector<17x136xf32>
    %67 = arith.addf %61, %66 : vector<17x136xf32>
    %cst_86 = arith.constant 0.000000e+00 : f32
    %68 = vector.broadcast %cst_86 : f32 to vector<1x136xf32>
    %cst_87 = arith.constant 0.000000e+00 : f32
    %69 = vector.broadcast %cst_87 : f32 to vector<1x136xf32>
    %cst_88 = arith.constant dense<0.000000e+00> : vector<136xf32>
    %70 = vector.multi_reduction <add>, %42, %cst_88 [0] : vector<17x136xf32> to vector<136xf32>
    %71 = vector.shape_cast %70 : vector<136xf32> to vector<1x136xf32>
    %72 = arith.addf %68, %71 : vector<1x136xf32>
    %73 = arith.mulf %42, %42 : vector<17x136xf32>
    %cst_89 = arith.constant dense<0.000000e+00> : vector<136xf32>
    %74 = vector.multi_reduction <add>, %73, %cst_89 [0] : vector<17x136xf32> to vector<136xf32>
    %75 = vector.shape_cast %74 : vector<136xf32> to vector<1x136xf32>
    %76 = arith.addf %69, %75 : vector<1x136xf32>
    %cst_90 = arith.constant dense<0.000000e+00> : vector<136xf32>
    %77 = vector.multi_reduction <add>, %67, %cst_90 [0] : vector<17x136xf32> to vector<136xf32>
    %78 = vector.shape_cast %77 : vector<136xf32> to vector<1x136xf32>
    %79 = arith.addf %72, %78 : vector<1x136xf32>
    %80 = arith.mulf %67, %67 : vector<17x136xf32>
    %cst_91 = arith.constant dense<0.000000e+00> : vector<136xf32>
    %81 = vector.multi_reduction <add>, %80, %cst_91 [0] : vector<17x136xf32> to vector<136xf32>
    %82 = vector.shape_cast %81 : vector<136xf32> to vector<1x136xf32>
    %83 = arith.addf %76, %82 : vector<1x136xf32>
    %c0_92 = arith.constant 0 : index
    %c0_93 = arith.constant 0 : index
    %84 = vector.load %arg3[%c0_92, %c0_93] : memref<136x136xf32, #tpu.memory_space<vmem>>, vector<136x136xf32>
    %cst_94 = arith.constant dense<0.000000e+00> : vector<1x136xf32>
    %85 = tpu.matmul %79, %84, %cst_94 {dimension_numbers = #tpu.dot_dimension_numbers<[1], [0], [0], [1], [0, 0, 1, 1], [], []>} : vector<1x136xf32>, vector<136x136xf32>, vector<1x136xf32> -> vector<1x136xf32>
    %cst_95 = arith.constant 0.00173010386 : f32
    %86 = vector.broadcast %cst_95 : f32 to vector<1x136xf32>
    %87 = arith.mulf %85, %86 : vector<1x136xf32>
    %c0_96 = arith.constant 0 : index
    %c0_97 = arith.constant 0 : index
    %88 = vector.load %arg3[%c0_96, %c0_97] : memref<136x136xf32, #tpu.memory_space<vmem>>, vector<136x136xf32>
    %cst_98 = arith.constant dense<0.000000e+00> : vector<1x136xf32>
    %89 = tpu.matmul %83, %88, %cst_98 {dimension_numbers = #tpu.dot_dimension_numbers<[1], [0], [0], [1], [0, 0, 1, 1], [], []>} : vector<1x136xf32>, vector<136x136xf32>, vector<1x136xf32> -> vector<1x136xf32>
    %cst_99 = arith.constant 0.00173010386 : f32
    %90 = vector.broadcast %cst_99 : f32 to vector<1x136xf32>
    %91 = arith.mulf %89, %90 : vector<1x136xf32>
    %92 = arith.mulf %87, %87 : vector<1x136xf32>
    %93 = arith.subf %91, %92 : vector<1x136xf32>
    %c0_100 = arith.constant 0 : index
    %c0_101 = arith.constant 0 : index
    %94 = vector.load %arg5[%c0_100, %c0_101] : memref<2x136xf32, #tpu.memory_space<vmem>>, vector<1x136xf32>
    %cst_102 = arith.constant 9.99999974E-6 : f32
    %95 = vector.broadcast %cst_102 : f32 to vector<1x136xf32>
    %96 = arith.addf %93, %95 : vector<1x136xf32>
    %97 = math.rsqrt %96 : vector<1x136xf32>
    %98 = arith.mulf %94, %97 : vector<1x136xf32>
    %c1_103 = arith.constant 1 : index
    %c0_104 = arith.constant 0 : index
    %99 = vector.load %arg5[%c1_103, %c0_104] : memref<2x136xf32, #tpu.memory_space<vmem>>, vector<1x136xf32>
    %100 = arith.mulf %87, %98 : vector<1x136xf32>
    %101 = arith.subf %99, %100 : vector<1x136xf32>
    %102 = vector.broadcast %98 : vector<1x136xf32> to vector<17x136xf32>
    %103 = arith.mulf %42, %102 : vector<17x136xf32>
    %104 = vector.broadcast %101 : vector<1x136xf32> to vector<17x136xf32>
    %105 = arith.addf %103, %104 : vector<17x136xf32>
    %cst_105 = arith.constant 0.000000e+00 : f32
    %106 = vector.broadcast %cst_105 : f32 to vector<17x136xf32>
    %107 = arith.maximumf %105, %106 : vector<17x136xf32>
    %108 = vector.shape_cast %107 : vector<17x136xf32> to vector<1x17x136xf32>
    %c0_106 = arith.constant 0 : index
    %c1_107 = arith.constant 1 : index
    %c8 = arith.constant 8 : index
    %109 = vector.load %arg10[%c0_106, %c1_107, %c8] : memref<2x19x152xf32, #tpu.memory_space<vmem>>, vector<1x17x136xf32>
    tpu.vector_store %arg10[%c0_106, %c1_107, %c8], %108 {strides = array<i32>} : memref<2x19x152xf32, #tpu.memory_space<vmem>>, vector<1x17x136xf32>,
    %110 = vector.broadcast %98 : vector<1x136xf32> to vector<17x136xf32>
    %111 = arith.mulf %67, %110 : vector<17x136xf32>
    %112 = vector.broadcast %101 : vector<1x136xf32> to vector<17x136xf32>
    %113 = arith.addf %111, %112 : vector<17x136xf32>
    %cst_108 = arith.constant 0.000000e+00 : f32
    %114 = vector.broadcast %cst_108 : f32 to vector<17x136xf32>
    %115 = arith.maximumf %113, %114 : vector<17x136xf32>
    %116 = vector.shape_cast %115 : vector<17x136xf32> to vector<1x17x136xf32>
    %c1_109 = arith.constant 1 : index
    %c1_110 = arith.constant 1 : index
    %c8_111 = arith.constant 8 : index
    %117 = vector.load %arg10[%c1_109, %c1_110, %c8_111] : memref<2x19x152xf32, #tpu.memory_space<vmem>>, vector<1x17x136xf32>
    tpu.vector_store %arg10[%c1_109, %c1_110, %c8_111], %116 {strides = array<i32>} : memref<2x19x152xf32, #tpu.memory_space<vmem>>, vector<1x17x136xf32>,
    %cst_112 = arith.constant 0.000000e+00 : f32
    %118 = vector.broadcast %cst_112 : f32 to vector<32x128xf32>
    %c0_113 = arith.constant 0 : index
    %c0_114 = arith.constant 0 : index
    %c0_115 = arith.constant 0 : index
    %119 = vector.load %arg10[%c0_113, %c0_114, %c0_115] : memref<2x19x152xf32, #tpu.memory_space<vmem>>, vector<2x16x128xf32>
    %c0_116 = arith.constant 0 : index
    %c0_117 = arith.constant 0 : index
    %c0_118 = arith.constant 0 : index
    %120 = vector.load %arg2[%c0_116, %c0_117, %c0_118] : memref<16x128x128xf32, #tpu.memory_space<vmem>>, vector<1x128x128xf32>
    %121 = vector.shape_cast %120 : vector<1x128x128xf32> to vector<128x128xf32>
    %122 = vector.shape_cast %119 : vector<2x16x128xf32> to vector<32x128xf32>
    %cst_119 = arith.constant dense<0.000000e+00> : vector<32x128xf32>
    %123 = tpu.matmul %122, %121, %cst_119 {dimension_numbers = #tpu.dot_dimension_numbers<[1], [0], [0], [1], [0, 0, 1, 1], [], []>} : vector<32x128xf32>, vector<128x128xf32>, vector<32x128xf32> -> vector<32x128xf32>
    %124 = arith.addf %118, %123 : vector<32x128xf32>
    %c0_120 = arith.constant 0 : index
    %c0_121 = arith.constant 0 : index
    %c8_122 = arith.constant 8 : index
    %125 = vector.load %arg10[%c0_120, %c0_121, %c8_122] : memref<2x19x152xf32, #tpu.memory_space<vmem>>, vector<2x16x128xf32>
    %c1_123 = arith.constant 1 : index
    %c0_124 = arith.constant 0 : index
    %c0_125 = arith.constant 0 : index
    %126 = vector.load %arg2[%c1_123, %c0_124, %c0_125] : memref<16x128x128xf32, #tpu.memory_space<vmem>>, vector<1x128x128xf32>
    %127 = vector.shape_cast %126 : vector<1x128x128xf32> to vector<128x128xf32>
    %128 = vector.shape_cast %125 : vector<2x16x128xf32> to vector<32x128xf32>
    %cst_126 = arith.constant dense<0.000000e+00> : vector<32x128xf32>
    %129 = tpu.matmul %128, %127, %cst_126 {dimension_numbers = #tpu.dot_dimension_numbers<[1], [0], [0], [1], [0, 0, 1, 1], [], []>} : vector<32x128xf32>, vector<128x128xf32>, vector<32x128xf32> -> vector<32x128xf32>
    %130 = arith.addf %124, %129 : vector<32x128xf32>
    %c0_127 = arith.constant 0 : index
    %c0_128 = arith.constant 0 : index
    %c16 = arith.constant 16 : index
    %131 = vector.load %arg10[%c0_127, %c0_128, %c16] : memref<2x19x152xf32, #tpu.memory_space<vmem>>, vector<2x16x128xf32>
    %c2_129 = arith.constant 2 : index
    %c0_130 = arith.constant 0 : index
    %c0_131 = arith.constant 0 : index
    %132 = vector.load %arg2[%c2_129, %c0_130, %c0_131] : memref<16x128x128xf32, #tpu.memory_space<vmem>>, vector<1x128x128xf32>
    %133 = vector.shape_cast %132 : vector<1x128x128xf32> to vector<128x128xf32>
    %134 = vector.shape_cast %131 : vector<2x16x128xf32> to vector<32x128xf32>
    %cst_132 = arith.constant dense<0.000000e+00> : vector<32x128xf32>
    %135 = tpu.matmul %134, %133, %cst_132 {dimension_numbers = #tpu.dot_dimension_numbers<[1], [0], [0], [1], [0, 0, 1, 1], [], []>} : vector<32x128xf32>, vector<128x128xf32>, vector<32x128xf32> -> vector<32x128xf32>
    %136 = arith.addf %130, %135 : vector<32x128xf32>
    %c0_133 = arith.constant 0 : index
    %c0_134 = arith.constant 0 : index
    %c24 = arith.constant 24 : index
    %137 = vector.load %arg10[%c0_133, %c0_134, %c24] : memref<2x19x152xf32, #tpu.memory_space<vmem>>, vector<2x16x128xf32>
    %c3_135 = arith.constant 3 : index
    %c0_136 = arith.constant 0 : index
    %c0_137 = arith.constant 0 : index
    %138 = vector.load %arg2[%c3_135, %c0_136, %c0_137] : memref<16x128x128xf32, #tpu.memory_space<vmem>>, vector<1x128x128xf32>
    %139 = vector.shape_cast %138 : vector<1x128x128xf32> to vector<128x128xf32>
    %140 = vector.shape_cast %137 : vector<2x16x128xf32> to vector<32x128xf32>
    %cst_138 = arith.constant dense<0.000000e+00> : vector<32x128xf32>
    %141 = tpu.matmul %140, %139, %cst_138 {dimension_numbers = #tpu.dot_dimension_numbers<[1], [0], [0], [1], [0, 0, 1, 1], [], []>} : vector<32x128xf32>, vector<128x128xf32>, vector<32x128xf32> -> vector<32x128xf32>
    %142 = arith.addf %136, %141 : vector<32x128xf32>
    %c0_139 = arith.constant 0 : index
    %c1_140 = arith.constant 1 : index
    %c0_141 = arith.constant 0 : index
    %143 = vector.load %arg10[%c0_139, %c1_140, %c0_141] : memref<2x19x152xf32, #tpu.memory_space<vmem>>, vector<2x16x128xf32>
    %c4_142 = arith.constant 4 : index
    %c0_143 = arith.constant 0 : index
    %c0_144 = arith.constant 0 : index
    %144 = vector.load %arg2[%c4_142, %c0_143, %c0_144] : memref<16x128x128xf32, #tpu.memory_space<vmem>>, vector<1x128x128xf32>
    %145 = vector.shape_cast %144 : vector<1x128x128xf32> to vector<128x128xf32>
    %146 = vector.shape_cast %143 : vector<2x16x128xf32> to vector<32x128xf32>
    %cst_145 = arith.constant dense<0.000000e+00> : vector<32x128xf32>
    %147 = tpu.matmul %146, %145, %cst_145 {dimension_numbers = #tpu.dot_dimension_numbers<[1], [0], [0], [1], [0, 0, 1, 1], [], []>} : vector<32x128xf32>, vector<128x128xf32>, vector<32x128xf32> -> vector<32x128xf32>
    %148 = arith.addf %142, %147 : vector<32x128xf32>
    %c0_146 = arith.constant 0 : index
    %c1_147 = arith.constant 1 : index
    %c8_148 = arith.constant 8 : index
    %149 = vector.load %arg10[%c0_146, %c1_147, %c8_148] : memref<2x19x152xf32, #tpu.memory_space<vmem>>, vector<2x16x128xf32>
    %c5 = arith.constant 5 : index
    %c0_149 = arith.constant 0 : index
    %c0_150 = arith.constant 0 : index
    %150 = vector.load %arg2[%c5, %c0_149, %c0_150] : memref<16x128x128xf32, #tpu.memory_space<vmem>>, vector<1x128x128xf32>
    %151 = vector.shape_cast %150 : vector<1x128x128xf32> to vector<128x128xf32>
    %152 = vector.shape_cast %149 : vector<2x16x128xf32> to vector<32x128xf32>
    %cst_151 = arith.constant dense<0.000000e+00> : vector<32x128xf32>
    %153 = tpu.matmul %152, %151, %cst_151 {dimension_numbers = #tpu.dot_dimension_numbers<[1], [0], [0], [1], [0, 0, 1, 1], [], []>} : vector<32x128xf32>, vector<128x128xf32>, vector<32x128xf32> -> vector<32x128xf32>
    %154 = arith.addf %148, %153 : vector<32x128xf32>
    %c0_152 = arith.constant 0 : index
    %c1_153 = arith.constant 1 : index
    %c16_154 = arith.constant 16 : index
    %155 = vector.load %arg10[%c0_152, %c1_153, %c16_154] : memref<2x19x152xf32, #tpu.memory_space<vmem>>, vector<2x16x128xf32>
    %c6 = arith.constant 6 : index
    %c0_155 = arith.constant 0 : index
    %c0_156 = arith.constant 0 : index
    %156 = vector.load %arg2[%c6, %c0_155, %c0_156] : memref<16x128x128xf32, #tpu.memory_space<vmem>>, vector<1x128x128xf32>
    %157 = vector.shape_cast %156 : vector<1x128x128xf32> to vector<128x128xf32>
    %158 = vector.shape_cast %155 : vector<2x16x128xf32> to vector<32x128xf32>
    %cst_157 = arith.constant dense<0.000000e+00> : vector<32x128xf32>
    %159 = tpu.matmul %158, %157, %cst_157 {dimension_numbers = #tpu.dot_dimension_numbers<[1], [0], [0], [1], [0, 0, 1, 1], [], []>} : vector<32x128xf32>, vector<128x128xf32>, vector<32x128xf32> -> vector<32x128xf32>
    %160 = arith.addf %154, %159 : vector<32x128xf32>
    %c0_158 = arith.constant 0 : index
    %c1_159 = arith.constant 1 : index
    %c24_160 = arith.constant 24 : index
    %161 = vector.load %arg10[%c0_158, %c1_159, %c24_160] : memref<2x19x152xf32, #tpu.memory_space<vmem>>, vector<2x16x128xf32>
    %c7 = arith.constant 7 : index
    %c0_161 = arith.constant 0 : index
    %c0_162 = arith.constant 0 : index
    %162 = vector.load %arg2[%c7, %c0_161, %c0_162] : memref<16x128x128xf32, #tpu.memory_space<vmem>>, vector<1x128x128xf32>
    %163 = vector.shape_cast %162 : vector<1x128x128xf32> to vector<128x128xf32>
    %164 = vector.shape_cast %161 : vector<2x16x128xf32> to vector<32x128xf32>
    %cst_163 = arith.constant dense<0.000000e+00> : vector<32x128xf32>
    %165 = tpu.matmul %164, %163, %cst_163 {dimension_numbers = #tpu.dot_dimension_numbers<[1], [0], [0], [1], [0, 0, 1, 1], [], []>} : vector<32x128xf32>, vector<128x128xf32>, vector<32x128xf32> -> vector<32x128xf32>
    %166 = arith.addf %160, %165 : vector<32x128xf32>
    %c0_164 = arith.constant 0 : index
    %c2_165 = arith.constant 2 : index
    %c0_166 = arith.constant 0 : index
    %167 = vector.load %arg10[%c0_164, %c2_165, %c0_166] : memref<2x19x152xf32, #tpu.memory_space<vmem>>, vector<2x16x128xf32>
    %c8_167 = arith.constant 8 : index
    %c0_168 = arith.constant 0 : index
    %c0_169 = arith.constant 0 : index
    %168 = vector.load %arg2[%c8_167, %c0_168, %c0_169] : memref<16x128x128xf32, #tpu.memory_space<vmem>>, vector<1x128x128xf32>
    %169 = vector.shape_cast %168 : vector<1x128x128xf32> to vector<128x128xf32>
    %170 = vector.shape_cast %167 : vector<2x16x128xf32> to vector<32x128xf32>
    %cst_170 = arith.constant dense<0.000000e+00> : vector<32x128xf32>
    %171 = tpu.matmul %170, %169, %cst_170 {dimension_numbers = #tpu.dot_dimension_numbers<[1], [0], [0], [1], [0, 0, 1, 1], [], []>} : vector<32x128xf32>, vector<128x128xf32>, vector<32x128xf32> -> vector<32x128xf32>
    %172 = arith.addf %166, %171 : vector<32x128xf32>
    %c0_171 = arith.constant 0 : index
    %c2_172 = arith.constant 2 : index
    %c8_173 = arith.constant 8 : index
    %173 = vector.load %arg10[%c0_171, %c2_172, %c8_173] : memref<2x19x152xf32, #tpu.memory_space<vmem>>, vector<2x16x128xf32>
    %c9 = arith.constant 9 : index
    %c0_174 = arith.constant 0 : index
    %c0_175 = arith.constant 0 : index
    %174 = vector.load %arg2[%c9, %c0_174, %c0_175] : memref<16x128x128xf32, #tpu.memory_space<vmem>>, vector<1x128x128xf32>
    %175 = vector.shape_cast %174 : vector<1x128x128xf32> to vector<128x128xf32>
    %176 = vector.shape_cast %173 : vector<2x16x128xf32> to vector<32x128xf32>
    %cst_176 = arith.constant dense<0.000000e+00> : vector<32x128xf32>
    %177 = tpu.matmul %176, %175, %cst_176 {dimension_numbers = #tpu.dot_dimension_numbers<[1], [0], [0], [1], [0, 0, 1, 1], [], []>} : vector<32x128xf32>, vector<128x128xf32>, vector<32x128xf32> -> vector<32x128xf32>
    %178 = arith.addf %172, %177 : vector<32x128xf32>
    %c0_177 = arith.constant 0 : index
    %c2_178 = arith.constant 2 : index
    %c16_179 = arith.constant 16 : index
    %179 = vector.load %arg10[%c0_177, %c2_178, %c16_179] : memref<2x19x152xf32, #tpu.memory_space<vmem>>, vector<2x16x128xf32>
    %c10 = arith.constant 10 : index
    %c0_180 = arith.constant 0 : index
    %c0_181 = arith.constant 0 : index
    %180 = vector.load %arg2[%c10, %c0_180, %c0_181] : memref<16x128x128xf32, #tpu.memory_space<vmem>>, vector<1x128x128xf32>
    %181 = vector.shape_cast %180 : vector<1x128x128xf32> to vector<128x128xf32>
    %182 = vector.shape_cast %179 : vector<2x16x128xf32> to vector<32x128xf32>
    %cst_182 = arith.constant dense<0.000000e+00> : vector<32x128xf32>
    %183 = tpu.matmul %182, %181, %cst_182 {dimension_numbers = #tpu.dot_dimension_numbers<[1], [0], [0], [1], [0, 0, 1, 1], [], []>} : vector<32x128xf32>, vector<128x128xf32>, vector<32x128xf32> -> vector<32x128xf32>
    %184 = arith.addf %178, %183 : vector<32x128xf32>
    %c0_183 = arith.constant 0 : index
    %c2_184 = arith.constant 2 : index
    %c24_185 = arith.constant 24 : index
    %185 = vector.load %arg10[%c0_183, %c2_184, %c24_185] : memref<2x19x152xf32, #tpu.memory_space<vmem>>, vector<2x16x128xf32>
    %c11 = arith.constant 11 : index
    %c0_186 = arith.constant 0 : index
    %c0_187 = arith.constant 0 : index
    %186 = vector.load %arg2[%c11, %c0_186, %c0_187] : memref<16x128x128xf32, #tpu.memory_space<vmem>>, vector<1x128x128xf32>
    %187 = vector.shape_cast %186 : vector<1x128x128xf32> to vector<128x128xf32>
    %188 = vector.shape_cast %185 : vector<2x16x128xf32> to vector<32x128xf32>
    %cst_188 = arith.constant dense<0.000000e+00> : vector<32x128xf32>
    %189 = tpu.matmul %188, %187, %cst_188 {dimension_numbers = #tpu.dot_dimension_numbers<[1], [0], [0], [1], [0, 0, 1, 1], [], []>} : vector<32x128xf32>, vector<128x128xf32>, vector<32x128xf32> -> vector<32x128xf32>
    %190 = arith.addf %184, %189 : vector<32x128xf32>
    %c0_189 = arith.constant 0 : index
    %c3_190 = arith.constant 3 : index
    %c0_191 = arith.constant 0 : index
    %191 = vector.load %arg10[%c0_189, %c3_190, %c0_191] : memref<2x19x152xf32, #tpu.memory_space<vmem>>, vector<2x16x128xf32>
    %c12 = arith.constant 12 : index
    %c0_192 = arith.constant 0 : index
    %c0_193 = arith.constant 0 : index
    %192 = vector.load %arg2[%c12, %c0_192, %c0_193] : memref<16x128x128xf32, #tpu.memory_space<vmem>>, vector<1x128x128xf32>
    %193 = vector.shape_cast %192 : vector<1x128x128xf32> to vector<128x128xf32>
    %194 = vector.shape_cast %191 : vector<2x16x128xf32> to vector<32x128xf32>
    %cst_194 = arith.constant dense<0.000000e+00> : vector<32x128xf32>
    %195 = tpu.matmul %194, %193, %cst_194 {dimension_numbers = #tpu.dot_dimension_numbers<[1], [0], [0], [1], [0, 0, 1, 1], [], []>} : vector<32x128xf32>, vector<128x128xf32>, vector<32x128xf32> -> vector<32x128xf32>
    %196 = arith.addf %190, %195 : vector<32x128xf32>
    %c0_195 = arith.constant 0 : index
    %c3_196 = arith.constant 3 : index
    %c8_197 = arith.constant 8 : index
    %197 = vector.load %arg10[%c0_195, %c3_196, %c8_197] : memref<2x19x152xf32, #tpu.memory_space<vmem>>, vector<2x16x128xf32>
    %c13 = arith.constant 13 : index
    %c0_198 = arith.constant 0 : index
    %c0_199 = arith.constant 0 : index
    %198 = vector.load %arg2[%c13, %c0_198, %c0_199] : memref<16x128x128xf32, #tpu.memory_space<vmem>>, vector<1x128x128xf32>
    %199 = vector.shape_cast %198 : vector<1x128x128xf32> to vector<128x128xf32>
    %200 = vector.shape_cast %197 : vector<2x16x128xf32> to vector<32x128xf32>
    %cst_200 = arith.constant dense<0.000000e+00> : vector<32x128xf32>
    %201 = tpu.matmul %200, %199, %cst_200 {dimension_numbers = #tpu.dot_dimension_numbers<[1], [0], [0], [1], [0, 0, 1, 1], [], []>} : vector<32x128xf32>, vector<128x128xf32>, vector<32x128xf32> -> vector<32x128xf32>
    %202 = arith.addf %196, %201 : vector<32x128xf32>
    %c0_201 = arith.constant 0 : index
    %c3_202 = arith.constant 3 : index
    %c16_203 = arith.constant 16 : index
    %203 = vector.load %arg10[%c0_201, %c3_202, %c16_203] : memref<2x19x152xf32, #tpu.memory_space<vmem>>, vector<2x16x128xf32>
    %c14 = arith.constant 14 : index
    %c0_204 = arith.constant 0 : index
    %c0_205 = arith.constant 0 : index
    %204 = vector.load %arg2[%c14, %c0_204, %c0_205] : memref<16x128x128xf32, #tpu.memory_space<vmem>>, vector<1x128x128xf32>
    %205 = vector.shape_cast %204 : vector<1x128x128xf32> to vector<128x128xf32>
    %206 = vector.shape_cast %203 : vector<2x16x128xf32> to vector<32x128xf32>
    %cst_206 = arith.constant dense<0.000000e+00> : vector<32x128xf32>
    %207 = tpu.matmul %206, %205, %cst_206 {dimension_numbers = #tpu.dot_dimension_numbers<[1], [0], [0], [1], [0, 0, 1, 1], [], []>} : vector<32x128xf32>, vector<128x128xf32>, vector<32x128xf32> -> vector<32x128xf32>
    %208 = arith.addf %202, %207 : vector<32x128xf32>
    %c0_207 = arith.constant 0 : index
    %c3_208 = arith.constant 3 : index
    %c24_209 = arith.constant 24 : index
    %209 = vector.load %arg10[%c0_207, %c3_208, %c24_209] : memref<2x19x152xf32, #tpu.memory_space<vmem>>, vector<2x16x128xf32>
    %c15 = arith.constant 15 : index
    %c0_210 = arith.constant 0 : index
    %c0_211 = arith.constant 0 : index
    %210 = vector.load %arg2[%c15, %c0_210, %c0_211] : memref<16x128x128xf32, #tpu.memory_space<vmem>>, vector<1x128x128xf32>
    %211 = vector.shape_cast %210 : vector<1x128x128xf32> to vector<128x128xf32>
    %212 = vector.shape_cast %209 : vector<2x16x128xf32> to vector<32x128xf32>
    %cst_212 = arith.constant dense<0.000000e+00> : vector<32x128xf32>
    %213 = tpu.matmul %212, %211, %cst_212 {dimension_numbers = #tpu.dot_dimension_numbers<[1], [0], [0], [1], [0, 0, 1, 1], [], []>} : vector<32x128xf32>, vector<128x128xf32>, vector<32x128xf32> -> vector<32x128xf32>
    %214 = arith.addf %208, %213 : vector<32x128xf32>
    %cst_213 = arith.constant dense<0.000000e+00> : vector<128xf32>
    %215 = vector.multi_reduction <add>, %214, %cst_213 [0] : vector<32x128xf32> to vector<128xf32>
    %216 = vector.shape_cast %215 : vector<128xf32> to vector<1x128xf32>
    %217 = arith.mulf %214, %214 : vector<32x128xf32>
    %cst_214 = arith.constant dense<0.000000e+00> : vector<128xf32>
    %218 = vector.multi_reduction <add>, %217, %cst_214 [0] : vector<32x128xf32> to vector<128xf32>
    %219 = vector.shape_cast %218 : vector<128xf32> to vector<1x128xf32>
    %c0_215 = arith.constant 0 : index
    %c0_216 = arith.constant 0 : index
    %220 = vector.load %arg4[%c0_215, %c0_216] : memref<128x128xf32, #tpu.memory_space<vmem>>, vector<128x128xf32>
    %cst_217 = arith.constant dense<0.000000e+00> : vector<1x128xf32>
    %221 = tpu.matmul %216, %220, %cst_217 {dimension_numbers = #tpu.dot_dimension_numbers<[1], [0], [0], [1], [0, 0, 1, 1], [], []>} : vector<1x128xf32>, vector<128x128xf32>, vector<1x128xf32> -> vector<1x128xf32>
    %cst_218 = arith.constant 0.001953125 : f32
    %222 = vector.broadcast %cst_218 : f32 to vector<1x128xf32>
    %223 = arith.mulf %221, %222 : vector<1x128xf32>
    %c0_219 = arith.constant 0 : index
    %c0_220 = arith.constant 0 : index
    %224 = vector.load %arg4[%c0_219, %c0_220] : memref<128x128xf32, #tpu.memory_space<vmem>>, vector<128x128xf32>
    %cst_221 = arith.constant dense<0.000000e+00> : vector<1x128xf32>
    %225 = tpu.matmul %219, %224, %cst_221 {dimension_numbers = #tpu.dot_dimension_numbers<[1], [0], [0], [1], [0, 0, 1, 1], [], []>} : vector<1x128xf32>, vector<128x128xf32>, vector<1x128xf32> -> vector<1x128xf32>
    %cst_222 = arith.constant 0.001953125 : f32
    %226 = vector.broadcast %cst_222 : f32 to vector<1x128xf32>
    %227 = arith.mulf %225, %226 : vector<1x128xf32>
    %228 = arith.mulf %223, %223 : vector<1x128xf32>
    %229 = arith.subf %227, %228 : vector<1x128xf32>
    %c0_223 = arith.constant 0 : index
    %c0_224 = arith.constant 0 : index
    %230 = vector.load %arg6[%c0_223, %c0_224] : memref<3x128xf32, #tpu.memory_space<vmem>>, vector<1x128xf32>
    %cst_225 = arith.constant 9.99999974E-6 : f32
    %231 = vector.broadcast %cst_225 : f32 to vector<1x128xf32>
    %232 = arith.addf %229, %231 : vector<1x128xf32>
    %233 = math.rsqrt %232 : vector<1x128xf32>
    %234 = arith.mulf %230, %233 : vector<1x128xf32>
    %c1_226 = arith.constant 1 : index
    %c0_227 = arith.constant 0 : index
    %235 = vector.load %arg6[%c1_226, %c0_227] : memref<3x128xf32, #tpu.memory_space<vmem>>, vector<1x128xf32>
    %236 = arith.mulf %223, %234 : vector<1x128xf32>
    %237 = arith.subf %235, %236 : vector<1x128xf32>
    %238 = vector.broadcast %234 : vector<1x128xf32> to vector<32x128xf32>
    %239 = arith.mulf %214, %238 : vector<32x128xf32>
    %240 = vector.broadcast %237 : vector<1x128xf32> to vector<32x128xf32>
    %241 = arith.addf %239, %240 : vector<32x128xf32>
    %c0_228 = arith.constant 0 : index
    %c0_229 = arith.constant 0 : index
    %c0_230 = arith.constant 0 : index
    %242 = vector.load %arg0[%c0_228, %c0_229, %c0_230] : memref<2x16x64xf32, #tpu.memory_space<vmem>>, vector<2x16x64xf32>
    %243 = vector.shape_cast %242 : vector<2x16x64xf32> to vector<32x64xf32>
    %c0_231 = arith.constant 0 : index
    %c0_232 = arith.constant 0 : index
    %244 = vector.load %arg7[%c0_231, %c0_232] : memref<64x128xf32, #tpu.memory_space<vmem>>, vector<64x128xf32>
    %cst_233 = arith.constant dense<0.000000e+00> : vector<32x128xf32>
    %245 = tpu.matmul %243, %244, %cst_233 {dimension_numbers = #tpu.dot_dimension_numbers<[1], [0], [0], [1], [0, 0, 1, 1], [], []>} : vector<32x64xf32>, vector<64x128xf32>, vector<32x128xf32> -> vector<32x128xf32>
    %c2_234 = arith.constant 2 : index
    %c0_235 = arith.constant 0 : index
    %246 = vector.load %arg6[%c2_234, %c0_235] : memref<3x128xf32, #tpu.memory_space<vmem>>, vector<1x128xf32>
    %247 = vector.broadcast %246 : vector<1x128xf32> to vector<32x128xf32>
    %248 = arith.addf %245, %247 : vector<32x128xf32>
    %249 = arith.addf %241, %248 : vector<32x128xf32>
    %cst_236 = arith.constant 0.000000e+00 : f32
    %250 = vector.broadcast %cst_236 : f32 to vector<32x128xf32>
    %251 = arith.maximumf %249, %250 : vector<32x128xf32>
    %c0_237 = arith.constant 0 : index
    %c0_238 = arith.constant 0 : index
    %252 = vector.load %arg8[%c0_237, %c0_238] : memref<32x128xf32, #tpu.memory_space<vmem>>, vector<32x128xf32>
    tpu.vector_store %arg8[%c0_237, %c0_238], %251 {strides = array<i32>} : memref<32x128xf32, #tpu.memory_space<vmem>>, vector<32x128xf32>,
    return
  }
}

</mosaic_0001>

<bundles_post_ra>
// kernel: tile.22
= control target key start
LH: loop header
LB: loop body
LE: loop exit
PB: predicated region body
PF: predicated region fallthrough
CT: control target
= control target key end

     0   :  { %s34_s0 = inlined_call_operand.vmem [shape: f32[8], index: 0, kind: input, shape index: {}]   ;;  %s35_s1 = inlined_call_operand.vmem [shape: f32[17,8], index: 1, kind: output, shape index: {}]  }
   0x1   :  { %v4_v0 = vld [vmem:[%s34_s0] ss:$0 sm:$0xff] }
   0x2   :  { %5 = vst [vmem:[%s35_s1] sm:$0xff] %v4_v0 }
   0x3   :  { %10 = vst [vmem:[%s35_s1 + $0x8] sm:$0xff] %v4_v0 }
   0x4   :  { %11 = vst [vmem:[%s35_s1 + $0x10] sm:$0xff] %v4_v0 }

// kernel: tile.26
= control target key start
LH: loop header
LB: loop body
LE: loop exit
PB: predicated region body
PF: predicated region fallthrough
CT: control target
= control target key end

     0   :  { %s139_s10 = smov 120   ;;  %s140_s11 = smov 104   ;;  %vm4_vm0 = vcmask 64512   ;;  %vm10_vm1 = vcmask 1048512   ;;  %vm16_vm2 = vcmask 982912   ;;  %vm22_vm3 = vcmask 917312   ;;  %s218_s0 = inlined_call_operand.vmem [shape: f32[17,8], index: 0, kind: input, shape index: {}]   ;;  %s219_s1 = inlined_call_operand.vmem [shape: f32[1,136], index: 1, kind: output, shape index: {}]  }
   0x1   :  { %v108_v0 = vld [vmem:[%s218_s0 + $0xf] sm:$0x1]   ;;  %v110_v1 = vld [vmem:[%s218_s0 + $0xd] sm:$0x1]   ;;  %v112_v2 = vld [vmem:[%s218_s0 + $0xb] sm:$0x1]  }
   0x2   :  { %8 = vrot.lane.b32.xlu0 %v108_v0, %s139_s10  ;;  %20 = vrot.lane.b32.xlu1 %v110_v1, %s140_s11  ;;  %s141_s14 = smov 88   ;;  %v109_v3 = vld [vmem:[%s218_s0 + $0xe] sm:$0x1]   ;;  %v111_v4 = vld [vmem:[%s218_s0 + $0xc] sm:$0x1]   ;;  %s142_s19 = smov 112  }
   0x3   :  { %32 = vrot.lane.b32.xlu2 %v112_v2, %s141_s14  ;;  %s143_s20 = smov 96   ;;  %v113_v5 = vld [vmem:[%s218_s0 + $0xa] sm:$0x1]   ;;  %s144_s23 = smov 80   ;;  %v114_v6 = vld [vmem:[%s218_s0 + $0x9] sm:$0x1]  }
   0x4   :  { %v115_v7 = vld [vmem:[%s218_s0 + $0x8] sm:$0x1]   ;;  %s145_s28 = smov 72   ;;  %s146_s29 = smov 64   ;;  %v116_v8 = vld [vmem:[%s218_s0 + $0x7] sm:$0x1]  }
   0x5   :  { %s147_s3 = smov 56   ;;  %v117_v9 = vld [vmem:[%s218_s0 + $0x6] sm:$0x1]   ;;  %v118_v10 = vld [vmem:[%s218_s0 + $0x5] sm:$0x1]   ;;  %s148_s8 = smov 48  }
   0x6   :  { %s149_s9 = smov 40   ;;  %v119_v11 = vld [vmem:[%s218_s0 + $0x4] sm:$0x1]   ;;  %s150_s12 = smov 32   ;;  %v120_v12 = vld [vmem:[%s218_s0 + $0x3] sm:$0x1]  }
   0x7   :  { %v121_v13 = vld [vmem:[%s218_s0 + $0x2] sm:$0x1]   ;;  %s151_s17 = smov 24   ;;  %s152_s18 = smov 16   ;;  %v122_v14 = vld [vmem:[%s218_s0 + $0x1] sm:$0x1]  }
   0x8   :  { %s153_s21 = smov 8   ;;  %s2_s22 = smov 3  ;;  %vm28_vm4 = vcmask 851712   ;;  %vm34_vm5 = vcmask 786112   ;;  %vm40_vm6 = vcmask 720512   ;;  %vm46_vm7 = vcmask 654912  }
   0x9   :  { %v3_v15 = vld [vmem:[%s218_s0] ss:$16 sm:%s2_s22]   ;;  %vm52_vm8 = vcmask 589312   ;;  %vm58_vm9 = vcmask 523712   ;;  %vm64_vm10 = vcmask 458112   ;;  %vm70_vm11 = vcmask 392512  }
   0xa   :  { %14 = vrot.lane.b32.xlu0 %v109_v3, %s142_s19  ;;  %26 = vrot.lane.b32.xlu1 %v111_v4, %s143_s20  ;;  %5 = vst.msk [vmem:[#allocation0] ss:$8 sm:$0x3] %vm4_vm0, %v3_v15   ;;  %vm76_vm12 = vcmask 326912   ;;  %vm82_vm13 = vcmask 261312   ;;  %vm88_vm14 = vcmask 195712  }
   0xb   :  { %38 = vrot.lane.b32.xlu2 %v113_v5, %s144_s23  ;;  %vm94_vm15 = vcmask 130112  }
  0x11   :  { %v103_v16 = vld [vmem:[#allocation0 + $0x8] sm:$0x1] }
  0x12   :  { %44 = vrot.lane.b32.xlu0 %v114_v6, %s145_s28  ;;  %50 = vrot.lane.b32.xlu1 %v115_v7, %s146_s29  ;;  %123 = vst [vmem:[%s219_s1 + $0x1] sm:$0x1] %v103_v16 }
  0x13   :  { %56 = vrot.lane.b32.xlu2 %v116_v8, %s147_s3 }
  0x1a   :  { %62 = vrot.lane.b32.xlu0 %v117_v9, %s148_s8  ;;  %68 = vrot.lane.b32.xlu1 %v118_v10, %s149_s9 }
  0x1b   :  { %74 = vrot.lane.b32.xlu2 %v119_v11, %s150_s12 }
  0x22   :  { %80 = vrot.lane.b32.xlu0 %v120_v12, %s151_s17  ;;  %86 = vrot.lane.b32.xlu1 %v121_v13, %s152_s18 }
  0x23   :  { %92 = vrot.lane.b32.xlu2 %v122_v14, %s153_s21 }
  0x5d   :  { %v33_v17 = vpop.permute.xlu2 %32  }
  0x65   :  { %v39_v18 = vpop.permute.xlu2 %38  }
  0x6d   :  { %v57_v19 = vpop.permute.xlu2 %56  }
  0x74   :  { %v9_v20 = vpop.permute.xlu0 %8   ;;  %v21_v21 = vpop.permute.xlu1 %20  }
  0x75   :  { %11 = vst.msk [vmem:[#allocation0] sm:$0x1] %vm10_vm1, %v9_v20   ;;  %v75_v22 = vpop.permute.xlu2 %74  }
  0x7c   :  { %v15_v23 = vpop.permute.xlu0 %14   ;;  %v27_v24 = vpop.permute.xlu1 %26  }
  0x7d   :  { %17 = vst.msk [vmem:[#allocation0] sm:$0x1] %vm16_vm2, %v15_v23   ;;  %v93_v25 = vpop.permute.xlu2 %92  }
  0x7e   :  { %23 = vst.msk [vmem:[#allocation0] sm:$0x1] %vm22_vm3, %v21_v21  }
  0x7f   :  { %29 = vst.msk [vmem:[#allocation0] sm:$0x1] %vm28_vm4, %v27_v24  }
  0x80   :  { %35 = vst.msk [vmem:[#allocation0] sm:$0x1] %vm34_vm5, %v33_v17  }
  0x81   :  { %41 = vst.msk [vmem:[#allocation0] sm:$0x1] %vm40_vm6, %v39_v18  }
  0x84   :  { %v45_v26 = vpop.permute.xlu0 %44   ;;  %v51_v27 = vpop.permute.xlu1 %50  }
  0x85   :  { %47 = vst.msk [vmem:[#allocation0] sm:$0x1] %vm46_vm7, %v45_v26  }
  0x86   :  { %53 = vst.msk [vmem:[#allocation0] sm:$0x1] %vm52_vm8, %v51_v27  }
  0x87   :  { %59 = vst.msk [vmem:[#allocation0] sm:$0x1] %vm58_vm9, %v57_v19  }
  0x8c   :  { %v63_v28 = vpop.permute.xlu0 %62   ;;  %v69_v29 = vpop.permute.xlu1 %68  }
  0x8d   :  { %65 = vst.msk [vmem:[#allocation0] sm:$0x1] %vm64_vm10, %v63_v28  }
  0x8e   :  { %71 = vst.msk [vmem:[#allocation0] sm:$0x1] %vm70_vm11, %v69_v29  }
  0x8f   :  { %77 = vst.msk [vmem:[#allocation0] sm:$0x1] %vm76_vm12, %v75_v22  }
  0x94   :  { %v81_v30 = vpop.permute.xlu0 %80   ;;  %v87_v31 = vpop.permute.xlu1 %86  }
  0x95   :  { %83 = vst.msk [vmem:[#allocation0] sm:$0x1] %vm82_vm13, %v81_v30  }
  0x96   :  { %89 = vst.msk [vmem:[#allocation0] sm:$0x1] %vm88_vm14, %v87_v31  }
  0x97   :  { %95 = vst.msk [vmem:[#allocation0] sm:$0x1] %vm94_vm15, %v93_v25  }
  0x9e   :  { %v98_v32 = vld [vmem:[#allocation0] sm:$0x1] }
  0x9f   :  { %101 = vst [vmem:[%s219_s1] sm:$0x1] %v98_v32 }

// kernel: tile.33
= control target key start
LH: loop header
LB: loop body
LE: loop exit
PB: predicated region body
PF: predicated region fallthrough
CT: control target
= control target key end

     0   :  { %s28_s0 = inlined_call_operand.vmem [shape: f32[8], index: 0, kind: input, shape index: {}]   ;;  %s29_s1 = inlined_call_operand.vmem [shape: f32[16,8], index: 1, kind: output, shape index: {}]  }
   0x1   :  { %v4_v0 = vld [vmem:[%s28_s0] ss:$0 sm:$0xff] }
   0x2   :  { %5 = vst [vmem:[%s29_s1] sm:$0xff] %v4_v0 }
   0x3   :  { %8 = vst [vmem:[%s29_s1 + $0x8] sm:$0xff] %v4_v0 }

// kernel: tile.37
= control target key start
LH: loop header
LB: loop body
LE: loop exit
PB: predicated region body
PF: predicated region fallthrough
CT: control target
= control target key end

     0   :  { %s131_s10 = smov 120   ;;  %s132_s11 = smov 104   ;;  %vm3_vm0 = vcmask 64512   ;;  %vm9_vm1 = vcmask 1048512   ;;  %vm15_vm2 = vcmask 982912   ;;  %vm21_vm3 = vcmask 917312   ;;  %s207_s0 = inlined_call_operand.vmem [shape: f32[16,8], index: 0, kind: input, shape index: {}]   ;;  %s208_s1 = inlined_call_operand.vmem [shape: f32[1,128], index: 1, kind: output, shape index: {}]  }
   0x1   :  { %v101_v0 = vld [vmem:[%s207_s0 + $0xf] sm:$0x1]   ;;  %v103_v1 = vld [vmem:[%s207_s0 + $0xd] sm:$0x1]   ;;  %v105_v2 = vld [vmem:[%s207_s0 + $0xb] sm:$0x1]  }
   0x2   :  { %7 = vrot.lane.b32.xlu0 %v101_v0, %s131_s10  ;;  %19 = vrot.lane.b32.xlu1 %v103_v1, %s132_s11  ;;  %s133_s14 = smov 88   ;;  %v102_v3 = vld [vmem:[%s207_s0 + $0xe] sm:$0x1]   ;;  %v104_v4 = vld [vmem:[%s207_s0 + $0xc] sm:$0x1]   ;;  %s134_s19 = smov 112  }
   0x3   :  { %31 = vrot.lane.b32.xlu2 %v105_v2, %s133_s14  ;;  %s135_s20 = smov 96   ;;  %v106_v5 = vld [vmem:[%s207_s0 + $0xa] sm:$0x1]   ;;  %s136_s23 = smov 80   ;;  %v107_v6 = vld [vmem:[%s207_s0 + $0x9] sm:$0x1]  }
   0x4   :  { %v108_v7 = vld [vmem:[%s207_s0 + $0x8] sm:$0x1]   ;;  %s137_s28 = smov 72   ;;  %s138_s29 = smov 64   ;;  %v109_v8 = vld [vmem:[%s207_s0 + $0x7] sm:$0x1]  }
   0x5   :  { %s139_s3 = smov 56   ;;  %v110_v9 = vld [vmem:[%s207_s0 + $0x6] sm:$0x1]   ;;  %v111_v10 = vld [vmem:[%s207_s0 + $0x5] sm:$0x1]   ;;  %s140_s8 = smov 48  }
   0x6   :  { %s141_s9 = smov 40   ;;  %v112_v11 = vld [vmem:[%s207_s0 + $0x4] sm:$0x1]   ;;  %s142_s12 = smov 32   ;;  %v113_v12 = vld [vmem:[%s207_s0 + $0x3] sm:$0x1]  }
   0x7   :  { %v114_v13 = vld [vmem:[%s207_s0 + $0x2] sm:$0x1]   ;;  %s143_s17 = smov 24   ;;  %s144_s18 = smov 16   ;;  %v115_v14 = vld [vmem:[%s207_s0 + $0x1] sm:$0x1]  }
   0x8   :  { %s145_s21 = smov 8   ;;  %v2_v15 = vld [vmem:[%s207_s0] sm:$0x1]   ;;  %vm27_vm4 = vcmask 851712   ;;  %vm33_vm5 = vcmask 786112   ;;  %vm39_vm6 = vcmask 720512  }
   0x9   :  { %4 = vst.msk [vmem:[#allocation0] sm:$0x1] %vm3_vm0, %v2_v15   ;;  %vm45_vm7 = vcmask 654912   ;;  %vm51_vm8 = vcmask 589312   ;;  %vm57_vm9 = vcmask 523712   ;;  %vm63_vm10 = vcmask 458112  }
   0xa   :  { %13 = vrot.lane.b32.xlu0 %v102_v3, %s134_s19  ;;  %25 = vrot.lane.b32.xlu1 %v104_v4, %s135_s20  ;;  %vm69_vm11 = vcmask 392512   ;;  %vm75_vm12 = vcmask 326912   ;;  %vm81_vm13 = vcmask 261312   ;;  %vm87_vm14 = vcmask 195712  }
   0xb   :  { %37 = vrot.lane.b32.xlu2 %v106_v5, %s136_s23  ;;  %vm93_vm15 = vcmask 130112  }
  0x12   :  { %43 = vrot.lane.b32.xlu0 %v107_v6, %s137_s28  ;;  %49 = vrot.lane.b32.xlu1 %v108_v7, %s138_s29 }
  0x13   :  { %55 = vrot.lane.b32.xlu2 %v109_v8, %s139_s3 }
  0x1a   :  { %61 = vrot.lane.b32.xlu0 %v110_v9, %s140_s8  ;;  %67 = vrot.lane.b32.xlu1 %v111_v10, %s141_s9 }
  0x1b   :  { %73 = vrot.lane.b32.xlu2 %v112_v11, %s142_s12 }
  0x22   :  { %79 = vrot.lane.b32.xlu0 %v113_v12, %s143_s17  ;;  %85 = vrot.lane.b32.xlu1 %v114_v13, %s144_s18 }
  0x23   :  { %91 = vrot.lane.b32.xlu2 %v115_v14, %s145_s21 }
  0x5d   :  { %v32_v16 = vpop.permute.xlu2 %31  }
  0x65   :  { %v38_v17 = vpop.permute.xlu2 %37  }
  0x6d   :  { %v56_v18 = vpop.permute.xlu2 %55  }
  0x74   :  { %v8_v19 = vpop.permute.xlu0 %7   ;;  %v20_v20 = vpop.permute.xlu1 %19  }
  0x75   :  { %10 = vst.msk [vmem:[#allocation0] sm:$0x1] %vm9_vm1, %v8_v19   ;;  %v74_v21 = vpop.permute.xlu2 %73  }
  0x7c   :  { %v14_v22 = vpop.permute.xlu0 %13   ;;  %v26_v23 = vpop.permute.xlu1 %25  }
  0x7d   :  { %16 = vst.msk [vmem:[#allocation0] sm:$0x1] %vm15_vm2, %v14_v22   ;;  %v92_v24 = vpop.permute.xlu2 %91  }
  0x7e   :  { %22 = vst.msk [vmem:[#allocation0] sm:$0x1] %vm21_vm3, %v20_v20  }
  0x7f   :  { %28 = vst.msk [vmem:[#allocation0] sm:$0x1] %vm27_vm4, %v26_v23  }
  0x80   :  { %34 = vst.msk [vmem:[#allocation0] sm:$0x1] %vm33_vm5, %v32_v16  }
  0x81   :  { %40 = vst.msk [vmem:[#allocation0] sm:$0x1] %vm39_vm6, %v38_v17  }
  0x84   :  { %v44_v25 = vpop.permute.xlu0 %43   ;;  %v50_v26 = vpop.permute.xlu1 %49  }
  0x85   :  { %46 = vst.msk [vmem:[#allocation0] sm:$0x1] %vm45_vm7, %v44_v25  }
  0x86   :  { %52 = vst.msk [vmem:[#allocation0] sm:$0x1] %vm51_vm8, %v50_v26  }
  0x87   :  { %58 = vst.msk [vmem:[#allocation0] sm:$0x1] %vm57_vm9, %v56_v18  }
  0x8c   :  { %v62_v27 = vpop.permute.xlu0 %61   ;;  %v68_v28 = vpop.permute.xlu1 %67  }
  0x8d   :  { %64 = vst.msk [vmem:[#allocation0] sm:$0x1] %vm63_vm10, %v62_v27  }
  0x8e   :  { %70 = vst.msk [vmem:[#allocation0] sm:$0x1] %vm69_vm11, %v68_v28  }
  0x8f   :  { %76 = vst.msk [vmem:[#allocation0] sm:$0x1] %vm75_vm12, %v74_v21  }
  0x94   :  { %v80_v29 = vpop.permute.xlu0 %79   ;;  %v86_v30 = vpop.permute.xlu1 %85  }
  0x95   :  { %82 = vst.msk [vmem:[#allocation0] sm:$0x1] %vm81_vm13, %v80_v29  }
  0x96   :  { %88 = vst.msk [vmem:[#allocation0] sm:$0x1] %vm87_vm14, %v86_v30  }
  0x97   :  { %94 = vst.msk [vmem:[#allocation0] sm:$0x1] %vm93_vm15, %v92_v24  }
  0x9e   :  { %v97_v31 = vld [vmem:[#allocation0] sm:$0x1] }
  0x9f   :  { %100 = vst [vmem:[%s208_s1] sm:$0x1] %v97_v31 }

// kernel: residual2d_forward.1
= control target key start
LH: loop header
LB: loop body
LE: loop exit
PB: predicated region body
PF: predicated region fallthrough
CT: control target
= control target key end

     0   :  { %vm158_vm0 = vcmask 1043456   ;;  %vm34_vm1 = vcmask 31744   ;;  %vm39_vm2 = vcmask 589344   ;;  %v5700_v2 = vmov 0.0   ;;  %s3317_s9 = smov 4   ;;  %s3318_s25 = smov 124   ;;  %s5691_s0 = inlined_call_operand.vmem [shape: f32[2,16,64], index: 0, kind: input, shape index: {}]   ;;  %s5692_s1 = inlined_call_operand.vmem [shape: f32[4,68,136], index: 1, kind: input, shape index: {}]   ;;  %s5693_s3 = inlined_call_operand.vmem [shape: f32[136,136], index: 3, kind: input, shape index: {}]   ;;  %s5694_s5 = inlined_call_operand.vmem [shape: f32[2,136], index: 5, kind: input, shape index: {}]   ;;  %s5695_s2 = inlined_call_operand.vmem [shape: f32[16,128,128], index: 2, kind: input, shape index: {}]   ;;  %s5696_s4 = inlined_call_operand.vmem [shape: f32[128,128], index: 4, kind: input, shape index: {}]   ;;  %s5697_s7 = inlined_call_operand.vmem [shape: f32[64,128], index: 7, kind: input, shape index: {}]   ;;  %s5698_s6 = inlined_call_operand.vmem [shape: f32[3,128], index: 6, kind: input, shape index: {}]   ;;  %s5699_s8 = inlined_call_operand.vmem [shape: f32[32,128], index: 8, kind: output, shape index: {}]  }
   0x1   :  { %v44_v0 = vld [vmem:[%s5691_s0] sm:$0xff]  ;;  %35 = vst.msk [vmem:[#allocation2 + $0x1] sm:$0xff] %vm34_vm1, %v5700_v2  ;;  %v3384_v3 = vld [vmem:[%s5692_s1 + $0x70] sm:$0xff]  ;;  %v45_v6 = vld [vmem:[%s5691_s0 + $0x8] sm:$0xff]  ;;  %vm29_vm3 = vcmask 581632   ;;  %vm64_vm4 = vcmask 556064  }
   0x2   :  { %v3374_v1 = vld [vmem:[%s5692_s1 + $0x80] sm:$0xf]  ;;  %52 = vrot.lane.b32.xlu0 %v44_v0, %s3317_s9  ;;  %40 = vst.msk [vmem:[#allocation2 + $0x1] sm:$0xff] %vm39_vm2, %v5700_v2  ;;  %v3401_v5 = vld [vmem:[%s5692_s1 + $0x50] sm:$0xff]  ;;  %v3454_v12 = vld [vmem:[%s5692_s1 + $0x88] sm:$0xf] }
   0x3   :  { %2721 = vmatpush.msk.msra.mxu2 %vm158_vm0, %v3374_v1  ;;  %v3391_v4 = vld [vmem:[%s5692_s1 + $0x60] sm:$0xff]  ;;  %36 = vst.msk [vmem:[#allocation2 + $0x9] sm:$0xff] %vm34_vm1, %v5700_v2  ;;  %v3426_v8 = vld [vmem:[%s5692_s1 + $0x30] sm:$0xff]  ;;  %v3461_v13 = vld [vmem:[%s5692_s1 + $0x78] sm:$0xff]  ;;  %vm151_vm5 = vcmask 556032   ;;  %vm86_vm6 = vcmask 64512  }
   0x4   :  { %37 = vst.msk [vmem:[#allocation2 + $0x19] sm:$0xff] %vm34_vm1, %v5700_v2  ;;  %v3414_v7 = vld [vmem:[%s5692_s1 + $0x40] sm:$0xff]  ;;  %v3439_v10 = vld [vmem:[%s5692_s1 + $0x10] sm:$0xff]  ;;  %v3466_v14 = vld [vmem:[%s5692_s1 + $0x68] sm:$0xff]  ;;  %vm741_vm7 = vcmask 1040384   ;;  %vm753_vm8 = vcmask 57344  }
   0x5   :  { %237 = vmatpush.msra.mxu2 %v3384_v3  ;;  %38 = vst.msk [vmem:[#allocation2 + $0x21] sm:$0xff] %vm34_vm1, %v5700_v2  ;;  %v3431_v9 = vld [vmem:[%s5692_s1 + $0x20] sm:$0xff]  ;;  %v3472_v15 = vld [vmem:[%s5692_s1 + $0x58] sm:$0xff]  ;;  %v3478_v16 = vld [vmem:[%s5692_s1 + $0x48] sm:$0xff]  ;;  %vm84_vm15 = vcmask 64513   ;;  %s3320_s18 = smov 104  }
   0x6   :  { %41 = vst.msk [vmem:[#allocation2 + $0x9] sm:$0xff] %vm39_vm2, %v5700_v2  ;;  %v3447_v11 = vld [vmem:[%s5692_s1] sm:$0xff]  ;;  %v3485_v17 = vld [vmem:[%s5692_s1 + $0x38] sm:$0xff]  ;;  %v3490_v18 = vld [vmem:[%s5692_s1 + $0x28] sm:$0xff]  ;;  %s3321_s19 = smov 120   ;;  %s3322_s20 = smov 112  }
   0x7   :  { %238 = vmatpush.msra.mxu2 %v3391_v4  ;;  %42 = vst.msk [vmem:[#allocation2 + $0x19] sm:$0xff] %vm39_vm2, %v5700_v2  ;;  %v3496_v19 = vld [vmem:[%s5692_s1 + $0x18] sm:$0xff]  ;;  %v3502_v20 = vld [vmem:[%s5692_s1 + $0x8] sm:$0xff]  ;;  %v46_v24 = vld [vmem:[%s5691_s0 + $0x10] sm:$0xff] }
   0x8   :  { %43 = vst.msk [vmem:[#allocation2 + $0x21] sm:$0xff] %vm39_vm2, %v5700_v2  ;;  %v3520_v27 = vld [vmem:[%s5692_s1 + $0x110] sm:$0xf]  ;;  %v3525_v28 = vld [vmem:[%s5692_s1 + $0x118] sm:$0xf]  ;;  %v3554_v33 = vld [vmem:[%s5692_s1 + $0x100] sm:$0xff] }
   0x9   :  { %239 = vmatpush.msra.mxu2 %v3401_v5  ;;  %30 = vst.msk [vmem:[#allocation2] sm:$0x1] %vm29_vm3, %v5700_v2  ;;  %2713 = vmatpush.msk.msra.mxu0 %vm158_vm0, %v3520_v27  ;;  %v47_v29 = vld [vmem:[%s5691_s0 + $0x18] sm:$0xff]  ;;  %v3559_v34 = vld [vmem:[%s5692_s1 + $0x108] sm:$0xff]  ;;  %v3564_v35 = vld [vmem:[%s5692_s1 + $0xf0] sm:$0xff]  ;;  %vm95_vm2 = vcmask 195712  }
   0xa   :  { %54 = vrot.lane.b32.xlu0 %v45_v6, %s3317_s9  ;;  %31 = vst.msk [vmem:[#allocation2 + $0x18] sm:$0x1] %vm29_vm3, %v5700_v2  ;;  %2717 = vmatpush.msk.msra.mxu1 %vm158_vm0, %v3525_v28  ;;  %v3571_v36 = vld [vmem:[%s5692_s1 + $0xf8] sm:$0xff]  ;;  %v3576_v37 = vld [vmem:[%s5692_s1 + $0xe0] sm:$0xff]  ;;  %v3581_v38 = vld [vmem:[%s5692_s1 + $0xe8] sm:$0xff] }
   0xb   :  { %240 = vmatpush.msra.mxu2 %v3414_v7  ;;  %32 = vst.msk [vmem:[#allocation2 + $0x11] sm:$0x1] %vm29_vm3, %v5700_v2  ;;  %173 = vmatpush.msra.mxu0 %v3554_v33  ;;  %v3588_v39 = vld [vmem:[%s5692_s1 + $0xd0] sm:$0xff]  ;;  %v3593_v40 = vld [vmem:[%s5692_s1 + $0xd8] sm:$0xff]  ;;  %v3605_v42 = vld [vmem:[%s5692_s1 + $0xc0] sm:$0xff] }
   0xc   :  { %33 = vst.msk [vmem:[#allocation2 + $0x29] sm:$0x1] %vm29_vm3, %v5700_v2  ;;  %199 = vmatpush.msra.mxu1 %v3559_v34  ;;  %v3600_v41 = vld [vmem:[%s5692_s1 + $0x238] sm:$0xf]  ;;  %v3610_v43 = vld [vmem:[%s5692_s1 + $0xc8] sm:$0xff]  ;;  %v3619_v44 = vld [vmem:[%s5692_s1 + $0xb0] sm:$0xff] }
   0xd   :  { %241 = vmatpush.msra.mxu2 %v3426_v8  ;;  %174 = vmatpush.msra.mxu0 %v3564_v35  ;;  %v3624_v45 = vld [vmem:[%s5692_s1 + $0xb8] sm:$0xff]  ;;  %v3631_v46 = vld [vmem:[%s5692_s1 + $0xa0] sm:$0xff]  ;;  %v3636_v47 = vld [vmem:[%s5692_s1 + $0xa8] sm:$0xff]  ;;  %vm1154_vm3 = vcmask 1047617  }
   0xe   :  { %200 = vmatpush.msra.mxu1 %v3571_v36  ;;  %2777 = vmatpush.msk.msra.mxu3 %vm158_vm0, %v3600_v41  ;;  %v3643_v48 = vld [vmem:[%s5692_s1 + $0x90] sm:$0xff]  ;;  %v3648_v49 = vld [vmem:[%s5692_s1 + $0x98] sm:$0xff]  ;;  %v3664_v51 = vld [vmem:[%s5692_s1 + $0x220] sm:$0xff] }
   0xf   :  { %242 = vmatpush.msra.mxu2 %v3431_v9  ;;  %175 = vmatpush.msra.mxu0 %v3576_v37  ;;  %v3657_v50 = vld [vmem:[%s5692_s1 + $0x230] sm:$0xf]  ;;  %v3669_v52 = vld [vmem:[%s5692_s1 + $0x228] sm:$0xff]  ;;  %v3680_v54 = vld [vmem:[%s5692_s1 + $0x218] sm:$0xff] }
  0x10   :  { %201 = vmatpush.msra.mxu1 %v3581_v38  ;;  %447 = vmatpush.msra.mxu3 %v3669_v52  ;;  %v3675_v53 = vld [vmem:[%s5692_s1 + $0x210] sm:$0xff]  ;;  %v3686_v55 = vld [vmem:[%s5692_s1 + $0x208] sm:$0xff]  ;;  %v3691_v56 = vld [vmem:[%s5692_s1 + $0x1a0] sm:$0xf] }
  0x11   :  { %243 = vmatpush.msra.mxu2 %v3439_v10  ;;  %176 = vmatpush.msra.mxu0 %v3588_v39  ;;  %v3696_v57 = vld [vmem:[%s5692_s1 + $0x1a8] sm:$0xf]  ;;  %v3702_v58 = vld [vmem:[%s5692_s1 + $0x200] sm:$0xff]  ;;  %v3712_v59 = vld [vmem:[%s5692_s1 + $0x1f8] sm:$0xff] }
  0x12   :  { %v3534_v30 = vld [vmem:[#allocation2 + $0x11] sm:$0x1]  ;;  %202 = vmatpush.msra.mxu1 %v3593_v40  ;;  %448 = vmatpush.msra.mxu3 %v3680_v54  ;;  %v3731_v62 = vld [vmem:[%s5692_s1 + $0x198] sm:$0xff]  ;;  %v3736_v63 = vld [vmem:[%s5692_s1 + $0x1e0] sm:$0xff] }
  0x13   :  { %244 = vmatpush.msra.mxu2 %v3447_v11  ;;  %5713 = vst [vmem:[#allocation4_spill] sm:$0xff] %v3534_v30  ;;  %177 = vmatpush.msra.mxu0 %v3605_v42  ;;  %v3720_v60 = vld [vmem:[%s5692_s1 + $0x1f0] sm:$0xff]  ;;  %v3743_v0 = vld [vmem:[%s5692_s1 + $0x1e8] sm:$0xff]  ;;  %v3748_v6 = vld [vmem:[%s5692_s1 + $0x180] sm:$0xff] }
  0x14   :  { %203 = vmatpush.msra.mxu1 %v3610_v43  ;;  %449 = vmatpush.msra.mxu3 %v3686_v55  ;;  %v3726_v61 = vld [vmem:[%s5692_s1 + $0x190] sm:$0xff]  ;;  %5714 = vst [vmem:[#allocation5_spill] sm:$0xff] %v3748_v6  ;;  %v3794_v2 = vld [vmem:[%s5692_s1 + $0x160] sm:$0xff] }
  0x15   :  { %2725 = vmatpush.msk.msrb.mxu2 %vm158_vm0, %v3454_v12  ;;  %178 = vmatpush.msra.mxu0 %v3619_v44  ;;  %5718 = vst [vmem:[#allocation9_spill] sm:$0xff] %v3794_v2 }
  0x16   :  { %204 = vmatpush.msra.mxu1 %v3624_v45  ;;  %450 = vmatpush.msra.mxu3 %v3712_v59 }
  0x17   :  { %263 = vmatpush.msrb.mxu2 %v3461_v13  ;;  %179 = vmatpush.msra.mxu0 %v3631_v46 }
  0x18   :  { %205 = vmatpush.msra.mxu1 %v3636_v47  ;;  %451 = vmatpush.msra.mxu3 %v3743_v0 }
  0x19   :  { %264 = vmatpush.msrb.mxu2 %v3466_v14  ;;  %180 = vmatpush.msra.mxu0 %v3643_v48 }
  0x1a   :  { %206 = vmatpush.msra.mxu1 %v3648_v49 }
  0x1b   :  { %265 = vmatpush.msrb.mxu2 %v3472_v15  ;;  %2747 = vmatpush.msk.msrb.mxu0 %vm158_vm0, %v3691_v56 }
  0x1c   :  { %2751 = vmatpush.msk.msrb.mxu1 %vm158_vm0, %v3696_v57 }
  0x1d   :  { %266 = vmatpush.msrb.mxu2 %v3478_v16  ;;  %326 = vmatpush.msrb.mxu0 %v3726_v61 }
  0x1e   :  { %352 = vmatpush.msrb.mxu1 %v3731_v62 }
  0x1f   :  { %267 = vmatpush.msrb.mxu2 %v3485_v17  ;;  %327 = vmatpush.msrb.mxu0 %v3748_v6  ;;  %v3806_v6 = vld [vmem:[%s5692_s1 + $0x1b8] sm:$0xff] }
  0x20   :  { %5719 = vst [vmem:[#allocation10_spill] sm:$0xff] %v3806_v6 }
  0x21   :  { %268 = vmatpush.msrb.mxu2 %v3490_v18 }
  0x23   :  { %269 = vmatpush.msrb.mxu2 %v3496_v19 }
  0x25   :  { %270 = vmatpush.msrb.mxu2 %v3502_v20 }
  0x74   :  { %v53_v21 = vpop.permute.xlu0 %52 }
  0x75   :  { %65 = vst.msk [vmem:[#allocation2 + $0x1] sm:$0xff] %vm64_vm4, %v53_v21  ;;  %v3753_v21 = vld [vmem:[%s5692_s1 + $0x188] sm:$0xff] }
  0x76   :  { %353 = vmatpush.msrb.mxu1 %v3753_v21 }
  0x7c   :  { %v55_v22 = vpop.permute.xlu0 %54  ;;  %v102_v23 = vld [vmem:[#allocation2] sm:$0xff] }
  0x7d   :  { %66 = vst.msk [vmem:[#allocation2 + $0x9] sm:$0xff] %vm64_vm4, %v55_v22  ;;  %145 = vrot.lane.b32.xlu1 %v102_v23, %s3318_s25  ;;  %2722 = vmatmul.msk.f32.vlgmr.msra.gmra.mxu2 %vm151_vm5, %v102_v23  ;;  %v3536_v31 = vld [vmem:[#allocation2 + $0x1] sm:$0xff]  ;;  %v3760_v22 = vld [vmem:[%s5692_s1 + $0x1d0] sm:$0xff] }
  0x7e   :  { %2773 = vmatpush.msk.msra.mxu2 %vm158_vm0, %v3657_v50  ;;  %5715 = vst [vmem:[#allocation6_spill] sm:$0xff] %v3760_v22 }
  0x80   :  { %421 = vmatpush.msra.mxu2 %v3664_v51 }
  0x82   :  { %422 = vmatpush.msra.mxu2 %v3675_v53 }
  0x84   :  { %v103_v25 = vld [vmem:[#allocation2 + $0x8] sm:$0xff]  ;;  %v104_v26 = vld [vmem:[#allocation2 + $0x10] sm:$0x1]  ;;  %423 = vmatpush.msra.mxu2 %v3702_v58 }
  0x85   :  { %56 = vrot.lane.b32.xlu1 %v46_v24, %s3317_s9  ;;  %147 = vrot.lane.b32.xlu2 %v103_v25, %s3318_s25  ;;  %v3544_v32 = vld [vmem:[#allocation2 + $0x9] sm:$0xff] }
  0x86   :  { %2723 = vmatmul.msk.f32.gmra.mxu2 %vm151_vm5, %v103_v25  ;;  %149 = vrot.lane.b32.xlu0 %v104_v26, %s3318_s25  ;;  %v3770_v24 = vld [vmem:[%s5692_s1 + $0x170] sm:$0xff] }
  0x87   :  { %424 = vmatpush.msra.mxu2 %v3720_v60  ;;  %5716 = vst [vmem:[#allocation7_spill] sm:$0xff] %v3770_v24  ;;  %328 = vmatpush.msrb.mxu0 %v3770_v24  ;;  %v3815_v24 = vld [vmem:[%s5692_s1 + $0x1b0] sm:$0xff] }
  0x88   :  { %5720 = vst [vmem:[#allocation11_spill] sm:$0xff] %v3815_v24 }
  0x89   :  { %425 = vmatpush.msra.mxu2 %v3736_v63  ;;  %329 = vmatpush.msrb.mxu0 %v3794_v2  ;;  %v3826_v2 = vld [vmem:[%s5692_s1 + $0x150] sm:$0xff] }
  0x8a   :  { %5721 = vst [vmem:[#allocation12_spill] sm:$0xff] %v3826_v2 }
  0x8b   :  { %426 = vmatpush.msra.mxu2 %v3760_v22  ;;  %330 = vmatpush.msrb.mxu0 %v3826_v2  ;;  %v3862_v2 = vld [vmem:[%s5692_s1 + $0x120] sm:$0xff] }
  0x8d   :  { %395 = vrot.lane.b32.xlu1 %v3536_v31, %s3318_s25  ;;  %58 = vrot.lane.b32.xlu2 %v47_v29, %s3317_s9  ;;  %v3787_v29 = vld [vmem:[%s5692_s1 + $0x1c8] sm:$0xff] }
  0x8e   :  { %2724 = vmatmul.msk.f32.gmra.mxu2 %vm151_vm5, %v104_v26  ;;  %399 = vrot.lane.b32.xlu0 %v3534_v30, %s3318_s25  ;;  %v3799_v30 = vld [vmem:[%s5692_s1 + $0x168] sm:$0xff] }
  0x95   :  { %397 = vrot.lane.b32.xlu2 %v3544_v32, %s3318_s25 }
  0x96   :  { %2726 = vmatmul.msk.f32.vlgmr.msrb.gmra.mxu2 %vm151_vm5, %v102_v23  ;;  %v3765_v23 = vld [vmem:[%s5692_s1 + $0x1d8] sm:$0xff] }
  0x97   :  { %452 = vmatpush.msra.mxu3 %v3765_v23 }
  0x99   :  { %453 = vmatpush.msra.mxu3 %v3787_v29 }
  0x9b   :  { %454 = vmatpush.msra.mxu3 %v3806_v6  ;;  %v3853_v6 = vld [vmem:[%s5692_s1 + $0x138] sm:$0xff] }
  0x9d   :  { %2793 = vmatpush.msk.msrb.mxu3 %vm158_vm0, %v3454_v12  ;;  %v3848_v12 = vld [vmem:[%s5692_s1 + $0x130] sm:$0xff] }
  0x9e   :  { %2727 = vmatmul.msk.f32.gmra.mxu2 %vm151_vm5, %v103_v25  ;;  %v3777_v25 = vld [vmem:[%s5692_s1 + $0x178] sm:$0xff] }
  0x9f   :  { %354 = vmatpush.msrb.mxu1 %v3777_v25  ;;  %582 = vmatpush.msrb.mxu3 %v3461_v13  ;;  %v3921_v13 = vld [vmem:[#allocation2 + $0x29] sm:$0x1] }
  0xa1   :  { %355 = vmatpush.msrb.mxu1 %v3799_v30  ;;  %583 = vmatpush.msrb.mxu3 %v3466_v14 }
  0xa3   :  { %584 = vmatpush.msrb.mxu3 %v3472_v15 }
  0xa5   :  { %585 = vmatpush.msrb.mxu3 %v3478_v16 }
  0xa6   :  { %2728 = vmatmul.msk.f32.gmra.mxu2 %vm151_vm5, %v104_v26  ;;  %v3782_v26 = vld [vmem:[%s5692_s1 + $0x1c0] sm:$0xff] }
  0xa7   :  { %5717 = vst [vmem:[#allocation8_spill] sm:$0xff] %v3782_v26  ;;  %427 = vmatpush.msra.mxu2 %v3782_v26  ;;  %v3831_v26 = vld [vmem:[%s5692_s1 + $0x158] sm:$0xff]  ;;  %586 = vmatpush.msrb.mxu3 %v3485_v17 }
  0xa8   :  { %5722 = vst [vmem:[#allocation13_spill] sm:$0xff] %v3831_v26  ;;  %356 = vmatpush.msrb.mxu1 %v3831_v26  ;;  %v3867_v26 = vld [vmem:[%s5692_s1 + $0x128] sm:$0xff] }
  0xa9   :  { %428 = vmatpush.msra.mxu2 %v3815_v24  ;;  %v3836_v24 = vld [vmem:[%s5692_s1 + $0x140] sm:$0xff]  ;;  %587 = vmatpush.msrb.mxu3 %v3490_v18 }
  0xaa   :  { %331 = vmatpush.msrb.mxu0 %v3836_v24  ;;  %v5723_v18 = vld [vmem:[#allocation6_spill] sm:$0xff] }
  0xab   :  { %2789 = vmatpush.msk.msrb.mxu2 %vm158_vm0, %v3374_v1  ;;  %v3843_v1 = vld [vmem:[%s5692_s1 + $0x148] sm:$0xff]  ;;  %588 = vmatpush.msrb.mxu3 %v3496_v19  ;;  %v5724_v19 = vld [vmem:[#allocation10_spill] sm:$0xff] }
  0xac   :  { %357 = vmatpush.msrb.mxu1 %v3843_v1  ;;  %332 = vmatpush.msrb.mxu0 %v3848_v12 }
  0xad   :  { %556 = vmatpush.msrb.mxu2 %v3384_v3  ;;  %589 = vmatpush.msrb.mxu3 %v3502_v20  ;;  %v5725_v20 = vld [vmem:[#allocation5_spill] sm:$0xff] }
  0xae   :  { %358 = vmatpush.msrb.mxu1 %v3853_v6  ;;  %333 = vmatpush.msrb.mxu0 %v3862_v2 }
  0xaf   :  { %557 = vmatpush.msrb.mxu2 %v3391_v4 }
  0xb0   :  { %359 = vmatpush.msrb.mxu1 %v3867_v26 }
  0xb1   :  { %558 = vmatpush.msrb.mxu2 %v3401_v5 }
  0xb3   :  { %559 = vmatpush.msrb.mxu2 %v3414_v7 }
  0xb5   :  { %560 = vmatpush.msrb.mxu2 %v3426_v8 }
  0xb7   :  { %561 = vmatpush.msrb.mxu2 %v3431_v9 }
  0xb9   :  { %562 = vmatpush.msrb.mxu2 %v3439_v10 }
  0xbb   :  { %563 = vmatpush.msrb.mxu2 %v3447_v11 }
  0xdf   :  { %v148_v22 = vpop.permute.xlu2 %147 }
  0xe7   :  { %v59_v3 = vpop.permute.xlu2 %58 }
  0xe8   :  { %68 = vst.msk [vmem:[#allocation2 + $0x21] sm:$0xff] %vm64_vm4, %v59_v3  ;;  %v4126_v3 = vld [vmem:[%s5693_s3 + $0x70] sm:$0xff] }
  0xef   :  { %v146_v4 = vpop.permute.xlu1 %145  ;;  %v3886_v5 = vld [vmem:[#allocation2 + $0x28] sm:$0x1]  ;;  %v398_v16 = vpop.permute.xlu2 %397 }
  0xf0   :  { %2714 = vmatmul.msk.f32.vlgmr.msra.gmra.mxu0 %vm151_vm5, %v146_v4  ;;  %2718 = vmatmul.msk.f32.vlgmr.msra.gmra.mxu1 %vm151_vm5, %v146_v4  ;;  %v3936_v15 = vld [vmem:[#allocation2 + $0x21] sm:$0xff] }
  0xf1   :  { %482 = vrot.lane.b32.xlu0 %v3886_v5, %s3318_s25  ;;  %2785 = vmatpush.msk.msra.mxu1 %vm158_vm0, %v3525_v28  ;;  %v5727_v28 = vld [vmem:[#allocation13_spill] sm:$0xff]  ;;  %v4132_v4 = vld [vmem:[%s5693_s3 + $0x60] sm:$0xff] }
  0xf2   :  { %2781 = vmatpush.msk.msra.mxu0 %vm158_vm0, %v3520_v27  ;;  %v5726_v27 = vld [vmem:[#allocation8_spill] sm:$0xff] }
  0xf3   :  { %524 = vmatpush.msra.mxu1 %v3559_v34  ;;  %v5732_v34 = vld [vmem:[#allocation12_spill] sm:$0xff] }
  0xf4   :  { %498 = vmatpush.msra.mxu0 %v3554_v33  ;;  %v5731_v33 = vld [vmem:[#allocation9_spill] sm:$0xff] }
  0xf5   :  { %525 = vmatpush.msra.mxu1 %v3571_v36 }
  0xf6   :  { %499 = vmatpush.msra.mxu0 %v3564_v35  ;;  %v5733_v35 = vmov 0.0  }
  0xf7   :  { %v57_v7 = vpop.permute.xlu1 %56  ;;  %526 = vmatpush.msra.mxu1 %v3581_v38  ;;  %87 = vst.msk [vmem:[#allocation3 + $0x10] sm:$0xff] %vm86_vm6, %v5733_v35 }
  0xf8   :  { %67 = vst.msk [vmem:[#allocation2 + $0x19] sm:$0xff] %vm64_vm4, %v57_v7  ;;  %2715 = vmatmul.msk.f32.gmra.mxu0 %vm151_vm5, %v148_v22  ;;  %2719 = vmatmul.msk.f32.gmra.mxu1 %vm151_vm5, %v148_v22  ;;  %v150_v8 = vpop.permute.xlu0 %149  ;;  %v4094_v22 = vld [vmem:[%s5693_s3 + $0xb0] sm:$0xff]  ;;  %v4144_v7 = vld [vmem:[%s5693_s3 + $0x40] sm:$0xff]  ;;  %vm88_vm4 = vcmask 58368  }
  0xf9   :  { %527 = vmatpush.msra.mxu1 %v3593_v40  ;;  %500 = vmatpush.msra.mxu0 %v3576_v37  ;;  %91 = vst.msk [vmem:[#allocation3 + $0x40] sm:$0xff] %vm86_vm6, %v5733_v35 }
  0xfa   :  { %674 = vrot.lane.b32.xlu0 %v3921_v13, %s3318_s25  ;;  %90 = vst.msk [vmem:[#allocation3 + $0x30] sm:$0xfe] %vm84_vm15, %v5733_v35 }
  0xfb   :  { %528 = vmatpush.msra.mxu1 %v3610_v43  ;;  %501 = vmatpush.msra.mxu0 %v3588_v39  ;;  %85 = vst.msk [vmem:[#allocation3] sm:$0xfe] %vm84_vm15, %v5733_v35  ;;  %vm1393_vm15 = vcmask 916480  }
  0xfc   :  { %96 = vst.msk [vmem:[#allocation3 + $0x18] sm:$0xff] %vm95_vm2, %v5733_v35 }
  0xfd   :  { %529 = vmatpush.msra.mxu1 %v3624_v45  ;;  %502 = vmatpush.msra.mxu0 %v3605_v42  ;;  %100 = vst.msk [vmem:[#allocation3 + $0x48] sm:$0xff] %vm95_vm2, %v5733_v35 }
  0xfe   :  { %89 = vst.msk [vmem:[#allocation3 + $0x20] sm:$0x3] %vm88_vm4, %v5733_v35 }
  0xff   :  { %v396_v9 = vpop.permute.xlu1 %395  ;;  %v472_v10 = vld [vmem:[#allocation2 + $0x18] sm:$0xff]  ;;  %v3910_v11 = vld [vmem:[#allocation2 + $0x20] sm:$0xff]  ;;  %503 = vmatpush.msra.mxu0 %v3619_v44  ;;  %530 = vmatpush.msra.mxu1 %v3636_v47  ;;  %92 = vst.msk [vmem:[#allocation3 + $0x50] sm:$0x3] %vm88_vm4, %v5733_v35 }
 0x100   :  { %478 = vrot.lane.b32.xlu1 %v472_v10, %s3318_s25  ;;  %2716 = vmatmul.msk.f32.gmra.mxu0 %vm151_vm5, %v150_v8  ;;  %v3934_v14 = vld [vmem:[#allocation2 + $0x19] sm:$0xff]  ;;  %v400_v17 = vpop.permute.xlu0 %399 }
 0x101   :  { %2720 = vmatmul.msk.f32.gmra.mxu1 %vm151_vm5, %v150_v8  ;;  %2778 = vmatmul.msk.f32.vlgmr.msra.gmra.mxu3 %vm151_vm5, %v396_v9  ;;  %v873_v8 = vld [vmem:[%s5693_s3 + $0xf8] sm:$0xff] }
 0x102   :  { %480 = vrot.lane.b32.xlu2 %v3910_v11, %s3318_s25  ;;  %2774 = vmatmul.msk.f32.vlgmr.msra.gmra.mxu2 %vm151_vm5, %v396_v9 }
 0x103   :  { %2809 = vmatpush.msk.msra.mxu3 %vm158_vm0, %v3600_v41  ;;  %2805 = vmatpush.msk.msra.mxu2 %vm158_vm0, %v3657_v50  ;;  %v4024_v41 = vpop.f32.mrf.mxu2 }
 0x104   :  { %504 = vmatpush.msra.mxu0 %v3631_v46  ;;  %531 = vmatpush.msra.mxu1 %v3648_v49 }
 0x105   :  { %716 = vmatpush.msra.mxu3 %v3669_v52  ;;  %690 = vmatpush.msra.mxu2 %v3664_v51 }
 0x106   :  { %505 = vmatpush.msra.mxu0 %v3643_v48 }
 0x107   :  { %717 = vmatpush.msra.mxu3 %v3680_v54  ;;  %691 = vmatpush.msra.mxu2 %v3675_v53 }
 0x108   :  { %670 = vrot.lane.b32.xlu1 %v3934_v14, %s3318_s25  ;;  %2748 = vmatmul.msk.f32.vlgmr.msrb.gmra.mxu0 %vm151_vm5, %v3536_v31 }
 0x109   :  { %2752 = vmatmul.msk.f32.vlgmr.msrb.gmra.mxu1 %vm151_vm5, %v3536_v31  ;;  %2779 = vmatmul.msk.f32.gmra.mxu3 %vm151_vm5, %v398_v16  ;;  %v5728_v31 = vld [vmem:[#allocation4_spill] sm:$0xff] }
 0x10a   :  { %2775 = vmatmul.msk.f32.gmra.mxu2 %vm151_vm5, %v398_v16  ;;  %672 = vrot.lane.b32.xlu2 %v3936_v15, %s3318_s25  ;;  %v4170_v16 = vld [vmem:[%s5693_s3 + $0x20] sm:$0xff] }
 0x10b   :  { %718 = vmatpush.msra.mxu3 %v3686_v55  ;;  %2801 = vmatpush.msk.msrb.mxu1 %vm158_vm0, %v3696_v57  ;;  %v4030_v42 = vpop.f32.mrf.mxu2 }
 0x10c   :  { %692 = vmatpush.msra.mxu2 %v3702_v58  ;;  %2797 = vmatpush.msk.msrb.mxu0 %vm158_vm0, %v3691_v56  ;;  %vm93_vm0 = vcmask 195713  }
 0x10d   :  { %719 = vmatpush.msra.mxu3 %v3712_v59  ;;  %646 = vmatpush.msrb.mxu1 %v3731_v62  ;;  %v872_v59 = vld [vmem:[%s5693_s3 + $0xf0] sm:$0xff]  ;;  %94 = vst.msk [vmem:[#allocation3 + $0x8] sm:$0xfe] %vm93_vm0, %v5733_v35 }
 0x10e   :  { %693 = vmatpush.msra.mxu2 %v3720_v60  ;;  %620 = vmatpush.msrb.mxu0 %v3726_v61  ;;  %v870_v60 = vld [vmem:[%s5693_s3 + $0xe0] sm:$0xff]  ;;  %v4077_v61 = vld [vmem:[%s5693_s3 + $0xd0] sm:$0xff]  ;;  %99 = vst.msk [vmem:[#allocation3 + $0x38] sm:$0xfe] %vm93_vm0, %v5733_v35  ;;  %vm1468_vm0 = vcmask 850944  }
 0x10f   :  { %720 = vmatpush.msra.mxu3 %v3743_v0  ;;  %647 = vmatpush.msrb.mxu1 %v3753_v21  ;;  %v866_v21 = vld [vmem:[%s5693_s3 + $0xc0] sm:$0xff] }
 0x110   :  { %2749 = vmatmul.msk.f32.gmra.mxu0 %vm151_vm5, %v3544_v32  ;;  %694 = vmatpush.msra.mxu2 %v3736_v63 }
 0x111   :  { %2753 = vmatmul.msk.f32.gmra.mxu1 %vm151_vm5, %v3544_v32  ;;  %2780 = vmatmul.msk.f32.gmra.mxu3 %vm151_vm5, %v400_v17  ;;  %v5729_v32 = vld [vmem:[#allocation7_spill] sm:$0xff] }
 0x112   :  { %2776 = vmatmul.msk.f32.gmra.mxu2 %vm151_vm5, %v400_v17  ;;  %721 = vmatpush.msra.mxu3 %v3765_v23  ;;  %v4099_v23 = vld [vmem:[%s5693_s3 + $0xa0] sm:$0xff]  ;;  %v869_v17 = vld [vmem:[%s5693_s3 + $0xd8] sm:$0xff] }
 0x113   :  { %648 = vmatpush.msrb.mxu1 %v3777_v25  ;;  %695 = vmatpush.msra.mxu2 %v5723_v18  ;;  %v4036_v43 = vpop.f32.mrf.mxu2  ;;  %v4112_v25 = vld [vmem:[%s5693_s3 + $0x80] sm:$0xff]  ;;  %v4179_v18 = vld [vmem:[%s5693_s3 + $0x10] sm:$0xff] }
 0x114   :  { %722 = vmatpush.msra.mxu3 %v3787_v29  ;;  %621 = vmatpush.msrb.mxu0 %v5725_v20  ;;  %v4188_v20 = vld [vmem:[%s5693_s3] sm:$0xff] }
 0x115   :  { %649 = vmatpush.msrb.mxu1 %v3799_v30  ;;  %696 = vmatpush.msra.mxu2 %v5726_v27  ;;  %v5730_v30 = vld [vmem:[#allocation11_spill] sm:$0xff]  ;;  %v4193_v27 = vld [vmem:[%s5693_s3 + $0x100] sm:$0xff] }
 0x116   :  { %723 = vmatpush.msra.mxu3 %v5724_v19  ;;  %622 = vmatpush.msrb.mxu0 %v5729_v32  ;;  %v867_v19 = vld [vmem:[%s5693_s3 + $0xc8] sm:$0xff] }
 0x117   :  { %650 = vmatpush.msrb.mxu1 %v5727_v28  ;;  %697 = vmatpush.msra.mxu2 %v5730_v30  ;;  %v865_v28 = vld [vmem:[%s5693_s3 + $0xb8] sm:$0xff]  ;;  %v863_v30 = vld [vmem:[%s5693_s3 + $0xa8] sm:$0xff] }
 0x118   :  { %2750 = vmatmul.msk.f32.gmra.mxu0 %vm151_vm5, %v5728_v31 }
 0x119   :  { %2754 = vmatmul.msk.f32.gmra.mxu1 %vm151_vm5, %v5728_v31  ;;  %2794 = vmatmul.msk.f32.vlgmr.msrb.gmra.mxu3 %vm151_vm5, %v472_v10 }
 0x11a   :  { %2790 = vmatmul.msk.f32.vlgmr.msrb.gmra.mxu2 %vm151_vm5, %v472_v10  ;;  %651 = vmatpush.msrb.mxu1 %v3843_v1 }
 0x11b   :  { %623 = vmatpush.msrb.mxu0 %v5731_v33  ;;  %v4038_v44 = vpop.f32.mrf.mxu2  ;;  %919 = vmatpush.msrb.mxu2 %v873_v8  ;;  %v861_v33 = vld [vmem:[%s5693_s3 + $0x98] sm:$0xff] }
 0x11c   :  { %652 = vmatpush.msrb.mxu1 %v3853_v6 }
 0x11d   :  { %624 = vmatpush.msrb.mxu0 %v5732_v34 }
 0x11e   :  { %653 = vmatpush.msrb.mxu1 %v3867_v26 }
 0x11f   :  { %625 = vmatpush.msrb.mxu0 %v3836_v24  ;;  %v4105_v24 = vld [vmem:[%s5693_s3 + $0x90] sm:$0xff] }
 0x121   :  { %2795 = vmatmul.msk.f32.gmra.mxu3 %vm151_vm5, %v3910_v11  ;;  %626 = vmatpush.msrb.mxu0 %v3848_v12 }
 0x122   :  { %2791 = vmatmul.msk.f32.gmra.mxu2 %vm151_vm5, %v3910_v11  ;;  %v4157_v11 = vld [vmem:[%s5693_s3 + $0x30] sm:$0xff] }
 0x123   :  { %627 = vmatpush.msrb.mxu0 %v3862_v2  ;;  %v4044_v47 = vpop.f32.mrf.mxu2 }
 0x129   :  { %2796 = vmatmul.msk.f32.gmra.mxu3 %vm151_vm5, %v3886_v5 }
 0x12a   :  { %2792 = vmatmul.msk.f32.gmra.mxu2 %vm151_vm5, %v3886_v5  ;;  %v4138_v5 = vld [vmem:[%s5693_s3 + $0x50] sm:$0xff] }
 0x12b   :  { %v4050_v50 = vpop.f32.mrf.mxu2 }
 0x15c   :  { %v481_v37 = vpop.permute.xlu2 %480 }
 0x163   :  { %v483_v38 = vpop.permute.xlu0 %482 }
 0x164   :  { %v673_v39 = vpop.permute.xlu2 %672 }
 0x16c   :  { %v675_v40 = vpop.permute.xlu0 %674 }
 0x16d   :  { %v4040_v45 = vpop.f32.mrf.mxu0  ;;  %v4042_v46 = vpop.f32.mrf.mxu1 }
 0x172   :  { %v479_v36 = vpop.permute.xlu1 %478 }
 0x173   :  { %2782 = vmatmul.msk.f32.vlgmr.msra.gmra.mxu0 %vm151_vm5, %v479_v36  ;;  %2786 = vmatmul.msk.f32.vlgmr.msra.gmra.mxu1 %vm151_vm5, %v479_v36 }
 0x174   :  { %879 = vmatpush.msra.mxu0 %v872_v59  ;;  %914 = vmatpush.msra.mxu1 %v4193_v27 }
 0x175   :  { %v4046_v48 = vpop.f32.mrf.mxu0  ;;  %v4048_v49 = vpop.f32.mrf.mxu1 }
 0x176   :  { %880 = vmatpush.msra.mxu0 %v870_v60 }
 0x178   :  { %881 = vmatpush.msra.mxu0 %v4077_v61 }
 0x17a   :  { %v671_v2 = vpop.permute.xlu1 %670  ;;  %882 = vmatpush.msra.mxu0 %v866_v21 }
 0x17b   :  { %2783 = vmatmul.msk.f32.gmra.mxu0 %vm151_vm5, %v481_v37  ;;  %2787 = vmatmul.msk.f32.gmra.mxu1 %vm151_vm5, %v481_v37  ;;  %v859_v37 = vld [vmem:[%s5693_s3 + $0x88] sm:$0xff] }
 0x17c   :  { %2806 = vmatmul.msk.f32.vlgmr.msra.gmra.mxu2 %vm151_vm5, %v671_v2  ;;  %2810 = vmatmul.msk.f32.vlgmr.msra.gmra.mxu3 %vm151_vm5, %v671_v2  ;;  %v276_v2 = vadd.f32 %v4044_v47, %v4048_v49 }
 0x17d   :  { %v4052_v51 = vpop.f32.mrf.mxu0  ;;  %883 = vmatpush.msra.mxu0 %v4094_v22 }
 0x17e   :  { %v4054_v52 = vpop.f32.mrf.mxu1 }
 0x17f   :  { %884 = vmatpush.msra.mxu0 %v4099_v23  ;;  %v279_v47 = vadd.f32 %v4050_v50, %v4054_v52  ;;  %v247_v50 = vadd.f32 %v4024_v41, %v4040_v45  ;;  %v851_v41 = vld [vmem:[%s5693_s3 + $0x48] sm:$0xff] }
 0x181   :  { %885 = vmatpush.msra.mxu0 %v4105_v24 }
 0x183   :  { %2784 = vmatmul.msk.f32.gmra.mxu0 %vm151_vm5, %v483_v38  ;;  %2788 = vmatmul.msk.f32.gmra.mxu1 %vm151_vm5, %v483_v38  ;;  %v273_v38 = vadd.f32 %v4038_v44, %v4042_v46  ;;  %v250_v44 = vadd.f32 %v4030_v42, %v4046_v48  ;;  %v855_v46 = vld [vmem:[%s5693_s3 + $0x68] sm:$0xff]  ;;  %v853_v42 = vld [vmem:[%s5693_s3 + $0x58] sm:$0xff] }
 0x184   :  { %2807 = vmatmul.msk.f32.gmra.mxu2 %vm151_vm5, %v673_v39  ;;  %2811 = vmatmul.msk.f32.gmra.mxu3 %vm151_vm5, %v673_v39  ;;  %v4058_v54 = vpop.f32.mrf.mxu3 }
 0x185   :  { %v4056_v53 = vpop.f32.mrf.mxu2  ;;  %v4060_v55 = vpop.f32.mrf.mxu0  ;;  %886 = vmatpush.msra.mxu0 %v4112_v25 }
 0x186   :  { %v4062_v56 = vpop.f32.mrf.mxu1 }
 0x187   :  { %887 = vmatpush.msra.mxu0 %v4126_v3 }
 0x189   :  { %888 = vmatpush.msra.mxu0 %v4132_v4 }
 0x18b   :  { %2798 = vmatmul.msk.f32.vlgmr.msrb.gmra.mxu0 %vm151_vm5, %v3934_v14  ;;  %2802 = vmatmul.msk.f32.vlgmr.msrb.gmra.mxu1 %vm151_vm5, %v3934_v14 }
 0x18c   :  { %2808 = vmatmul.msk.f32.gmra.mxu2 %vm151_vm5, %v675_v40  ;;  %2812 = vmatmul.msk.f32.gmra.mxu3 %vm151_vm5, %v675_v40  ;;  %v4066_v58 = vpop.f32.mrf.mxu3 }
 0x18d   :  { %v4064_v57 = vpop.f32.mrf.mxu2  ;;  %v4079_v62 = vpop.f32.mrf.mxu0  ;;  %889 = vmatpush.msra.mxu0 %v4138_v5  ;;  %964 = vmatpush.msrb.mxu1 %v872_v59  ;;  %v857_v59 = vld [vmem:[%s5693_s3 + $0x78] sm:$0xff] }
 0x18e   :  { %v4081_v63 = vpop.f32.mrf.mxu1  ;;  %v372_v52 = vadd.f32 %v4079_v62, %v250_v44 }
 0x18f   :  { %890 = vmatpush.msra.mxu0 %v4144_v7  ;;  %965 = vmatpush.msrb.mxu1 %v870_v60  ;;  %v253_v60 = vadd.f32 %v4036_v43, %v4052_v51  ;;  %v373_v49 = vadd.f32 %v4081_v63, %v276_v2 }
 0x191   :  { %891 = vmatpush.msra.mxu0 %v4157_v11  ;;  %966 = vmatpush.msrb.mxu1 %v4077_v61  ;;  %v371_v61 = vadd.f32 %v4062_v56, %v273_v38  ;;  %v4251_v48 = vadd.f32 %v4066_v58, %v373_v49 }
 0x193   :  { %2799 = vmatmul.msk.f32.gmra.mxu0 %vm151_vm5, %v3936_v15  ;;  %2803 = vmatmul.msk.f32.gmra.mxu1 %vm151_vm5, %v3936_v15  ;;  %v4263_v45 = vadd.f32 %v4058_v54, %v371_v61  ;;  %v849_v54 = vld [vmem:[%s5693_s3 + $0x38] sm:$0xff] }
 0x194   :  { %v4086_v6 = vpop.f32.mrf.mxu3  ;;  %892 = vmatpush.msra.mxu0 %v4170_v16  ;;  %967 = vmatpush.msrb.mxu1 %v866_v21  ;;  %v370_v21 = vadd.f32 %v4060_v55, %v247_v50 }
 0x195   :  { %v4084_v0 = vpop.f32.mrf.mxu2  ;;  %v4114_v26 = vpop.f32.mrf.mxu0 }
 0x196   :  { %v4116_v29 = vpop.f32.mrf.mxu1  ;;  %893 = vmatpush.msra.mxu0 %v4179_v18  ;;  %968 = vmatpush.msrb.mxu1 %v4094_v22  ;;  %v374_v43 = vadd.f32 %v4114_v26, %v253_v60  ;;  %v4273_v22 = vadd.f32 %v4064_v57, %v372_v52  ;;  %v4287_v57 = vld [vmem:[%s5693_s3 + $0x108] sm:$0xff]  ;;  %v750_v26 = vsel %vm86_vm6, %v4263_v45, 0.0  ;;  %v765_v60 = vmul.f32 %v4263_v45, %v4263_v45 }
 0x197   :  { %v375_v51 = vadd.f32 %v4116_v29, %v279_v47  ;;  %954 = vmatpush.msrb.mxu3 %v4287_v57 }
 0x198   :  { %894 = vmatpush.msra.mxu0 %v4188_v20  ;;  %969 = vmatpush.msrb.mxu1 %v4099_v23  ;;  %v4266_v58 = vadd.f32 %v4084_v0, %v374_v43  ;;  %v751_v0 = vsel %vm86_vm6, %v4251_v48, 0.0  ;;  %v779_v50 = vsel %vm86_vm6, %v765_v60, 0.0 }
 0x199   :  { %v4269_v62 = vadd.f32 %v4086_v6, %v375_v51  ;;  %v4282_v6 = vadd.f32 %v4056_v53, %v370_v21  ;;  %999 = vmatpush.msra.mxu3 %v4193_v27  ;;  %v767_v27 = vmul.f32 %v4251_v48, %v4251_v48 }
 0x19a   :  { %1004 = vmatpush.msrb.mxu0 %v873_v8  ;;  %970 = vmatpush.msrb.mxu1 %v4105_v24  ;;  %v847_v24 = vld [vmem:[%s5693_s3 + $0x28] sm:$0xff]  ;;  %v742_v53 = vsel %vm741_vm7, %v4266_v58, 0.0  ;;  %v752_v8 = vadd.f32 %v751_v0, %v750_v26 }
 0x19b   :  { %2800 = vmatmul.msk.f32.gmra.mxu0 %vm151_vm5, %v3921_v13  ;;  %2804 = vmatmul.msk.f32.gmra.mxu1 %vm151_vm5, %v3921_v13  ;;  %v871_v13 = vld [vmem:[%s5693_s3 + $0xe8] sm:$0xff]  ;;  %v754_v29 = vsel %vm753_vm8, %v4269_v62, 0.0  ;;  %v780_v61 = vsel %vm86_vm6, %v767_v27, 0.0  ;;  %vm97_vm5 = vcmask 189568  }
 0x19c   :  { %v4121_v12 = vpop.f32.mrf.mxu3  ;;  %920 = vmatpush.msrb.mxu2 %v871_v13  ;;  %1005 = vmatpush.msrb.mxu0 %v871_v13  ;;  %v843_v13 = vld [vmem:[%s5693_s3 + $0x8] sm:$0xff]  ;;  %v781_v21 = vadd.f32 %v780_v61, %v779_v50  ;;  %98 = vst.msk [vmem:[#allocation3 + $0x28] sm:$0x3] %vm97_vm5, %v5733_v35 }
 0x19d   :  { %v4119_v1 = vpop.f32.mrf.mxu2  ;;  %971 = vmatpush.msrb.mxu1 %v4112_v25  ;;  %v845_v25 = vld [vmem:[%s5693_s3 + $0x18] sm:$0xff]  ;;  %101 = vst.msk [vmem:[#allocation3 + $0x58] sm:$0x3] %vm97_vm5, %v5733_v35 }
 0x19e   :  { %921 = vmatpush.msrb.mxu2 %v869_v17  ;;  %1006 = vmatpush.msrb.mxu0 %v869_v17  ;;  %v768_v17 = vmul.f32 %v4266_v58, %v4266_v58 }
 0x19f   :  { %972 = vmatpush.msrb.mxu1 %v4126_v3  ;;  %v740_v3 = vadd.f32 %v4273_v22, %v4282_v6 }
 0x1a0   :  { %922 = vmatpush.msrb.mxu2 %v867_v19  ;;  %1007 = vmatpush.msrb.mxu0 %v867_v19 }
 0x1a1   :  { %973 = vmatpush.msrb.mxu1 %v4132_v4  ;;  %v743_v19 = vadd.f32 %v742_v53, %v740_v3  ;;  %v764_v4 = vmul.f32 %v4282_v6, %v4282_v6 }
 0x1a2   :  { %923 = vmatpush.msrb.mxu2 %v865_v28  ;;  %1008 = vmatpush.msrb.mxu0 %v865_v28  ;;  %v755_v28 = vadd.f32 %v754_v29, %v752_v8 }
 0x1a3   :  { %974 = vmatpush.msrb.mxu1 %v4138_v5  ;;  %v744_v49 = vrot.slane %v743_v19, 4 }
 0x1a4   :  { %v4165_v15 = vpop.f32.mrf.mxu3  ;;  %924 = vmatpush.msrb.mxu2 %v863_v30  ;;  %1009 = vmatpush.msrb.mxu0 %v863_v30  ;;  %v756_v44 = vrot.slane %v755_v28, 4 }
 0x1a5   :  { %v4163_v14 = vpop.f32.mrf.mxu2  ;;  %975 = vmatpush.msrb.mxu1 %v4144_v7 }
 0x1a6   :  { %925 = vmatpush.msrb.mxu2 %v861_v33  ;;  %1010 = vmatpush.msrb.mxu0 %v861_v33  ;;  %v766_v33 = vmul.f32 %v4273_v22, %v4273_v22 }
 0x1a7   :  { %976 = vmatpush.msrb.mxu1 %v4157_v11 }
 0x1a8   :  { %926 = vmatpush.msrb.mxu2 %v859_v37  ;;  %1011 = vmatpush.msrb.mxu0 %v859_v37  ;;  %v770_v7 = vadd.f32 %v766_v33, %v764_v4 }
 0x1a9   :  { %977 = vmatpush.msrb.mxu1 %v4170_v16 }
 0x1aa   :  { %927 = vmatpush.msrb.mxu2 %v857_v59  ;;  %1012 = vmatpush.msrb.mxu0 %v857_v59 }
 0x1ab   :  { %978 = vmatpush.msrb.mxu1 %v4179_v18 }
 0x1ac   :  { %v4212_v36 = vpop.f32.mrf.mxu3  ;;  %928 = vmatpush.msrb.mxu2 %v855_v46  ;;  %1013 = vmatpush.msrb.mxu0 %v855_v46 }
 0x1ad   :  { %v4210_v34 = vpop.f32.mrf.mxu2  ;;  %979 = vmatpush.msrb.mxu1 %v4188_v20 }
 0x1ae   :  { %929 = vmatpush.msrb.mxu2 %v853_v42  ;;  %1014 = vmatpush.msrb.mxu0 %v853_v42 }
 0x1b0   :  { %930 = vmatpush.msrb.mxu2 %v851_v41  ;;  %1015 = vmatpush.msrb.mxu0 %v851_v41 }
 0x1b2   :  { %931 = vmatpush.msrb.mxu2 %v849_v54  ;;  %1016 = vmatpush.msrb.mxu0 %v849_v54 }
 0x1b4   :  { %932 = vmatpush.msrb.mxu2 %v847_v24  ;;  %1017 = vmatpush.msrb.mxu0 %v847_v24 }
 0x1b6   :  { %933 = vmatpush.msrb.mxu2 %v845_v25  ;;  %1018 = vmatpush.msrb.mxu0 %v845_v25 }
 0x1b8   :  { %934 = vmatpush.msrb.mxu2 %v843_v13  ;;  %1019 = vmatpush.msrb.mxu0 %v843_v13 }
 0x1f0   :  { %v4149_v9 = vpop.f32.mrf.mxu0  ;;  %v4151_v10 = vpop.f32.mrf.mxu1 }
 0x1f1   :  { %v592_v30 = vadd.f32 %v4121_v12, %v4151_v10 }
 0x1f8   :  { %v4198_v31 = vpop.f32.mrf.mxu0  ;;  %v4200_v32 = vpop.f32.mrf.mxu1 }
 0x1f9   :  { %v595_v37 = vadd.f32 %v4165_v15, %v4200_v32  ;;  %v569_v12 = vadd.f32 %v4163_v14, %v4198_v31  ;;  %v771_v15 = vsel %vm741_vm7, %v768_v17, 0.0  ;;  %v769_v32 = vmul.f32 %v4269_v62, %v4269_v62 }
 0x1fa   :  { %v566_v14 = vadd.f32 %v4119_v1, %v4149_v9  ;;  %v772_v52 = vadd.f32 %v771_v15, %v770_v7  ;;  %v745_v1 = vadd.f32 %v744_v49, %v743_v19  ;;  %v757_v9 = vadd.f32 %v756_v44, %v755_v28 }
 0x1fb   :  { %v782_v11 = vsel %vm753_vm8, %v769_v32, 0.0 }
 0x1fc   :  { %v746_v25 = vrot.slane %v745_v1, 2  ;;  %v773_v26 = vrot.slane %v772_v52, 4  ;;  %v758_v53 = vrot.slane %v757_v9, 2 }
 0x1fe   :  { %v774_v49 = vadd.f32 %v773_v26, %v772_v52  ;;  %v759_v44 = vadd.f32 %v758_v53, %v757_v9 }
 0x1ff   :  { %v4253_v56 = vpop.f32.mrf.mxu2  ;;  %v4255_v63 = vpop.f32.mrf.mxu3 }
 0x200   :  { %v4222_v39 = vpop.f32.mrf.mxu0  ;;  %v4224_v40 = vpop.f32.mrf.mxu1 }
 0x201   :  { %v598_v16 = vadd.f32 %v4212_v36, %v4224_v40 }
 0x207   :  { %v702_v2 = vpop.f32.mrf.mxu2  ;;  %v728_v38 = vpop.f32.mrf.mxu3 }
 0x208   :  { %v629_v55 = vpop.f32.mrf.mxu0  ;;  %v655_v23 = vpop.f32.mrf.mxu1 }
 0x209   :  { %v665_v5 = vadd.f32 %v655_v23, %v592_v30  ;;  %v664_v43 = vadd.f32 %v629_v55, %v566_v14  ;;  %v747_v14 = vadd.f32 %v746_v25, %v745_v1 }
 0x20b   :  { %v4337_v51 = vadd.f32 %v4255_v63, %v665_v5  ;;  %v572_v63 = vadd.f32 %v4210_v34, %v4222_v39  ;;  %v4352_v54 = vadd.f32 %v4253_v56, %v664_v43  ;;  %v783_v34 = vadd.f32 %v782_v11, %v781_v21 }
 0x20d   :  { %v815_v0 = vmul.f32 %v4337_v51, %v4337_v51  ;;  %v801_v29 = vsel %vm86_vm6, %v4337_v51, 0.0  ;;  %v814_v13 = vmul.f32 %v4352_v54, %v4352_v54  ;;  %v784_v5 = vrot.slane %v783_v34, 4 }
 0x20f   :  { %v705_v55 = vpop.f32.mrf.mxu2  ;;  %v731_v23 = vpop.f32.mrf.mxu3  ;;  %v829_v17 = vsel %vm86_vm6, %v815_v0, 0.0  ;;  %v785_v50 = vadd.f32 %v784_v5, %v783_v34 }
 0x210   :  { %v632_v10 = vpop.f32.mrf.mxu0  ;;  %v658_v59 = vpop.f32.mrf.mxu1 }
 0x211   :  { %v667_v47 = vadd.f32 %v658_v59, %v595_v37  ;;  %v666_v31 = vadd.f32 %v632_v10, %v569_v12 }
 0x213   :  { %v4333_v46 = vadd.f32 %v728_v38, %v667_v47  ;;  %v4342_v42 = vadd.f32 %v702_v2, %v666_v31 }
 0x215   :  { %v817_v41 = vmul.f32 %v4333_v46, %v4333_v46  ;;  %v802_v36 = vsel %vm86_vm6, %v4333_v46, 0.0  ;;  %v816_v56 = vmul.f32 %v4342_v42, %v4342_v42  ;;  %v792_v19 = vadd.f32 %v4342_v42, %v4352_v54 }
 0x216   :  { %v803_v28 = vadd.f32 %v802_v36, %v801_v29 }
 0x217   :  { %v830_v3 = vsel %vm86_vm6, %v817_v41, 0.0  ;;  %v820_v2 = vadd.f32 %v816_v56, %v814_v13  ;;  %v760_v41 = vrot.slane %v759_v44, 1 }
 0x218   :  { %v635_v18 = vpop.f32.mrf.mxu0  ;;  %v661_v24 = vpop.f32.mrf.mxu1  ;;  %v831_v12 = vadd.f32 %v830_v3, %v829_v17 }
 0x219   :  { %v668_v39 = vadd.f32 %v635_v18, %v572_v63  ;;  %v669_v40 = vadd.f32 %v661_v24, %v598_v16  ;;  %v761_v56 = vadd.f32 %v760_v41, %v759_v44 }
 0x21b   :  { %v4364_v8 = vadd.f32 %v705_v55, %v668_v39  ;;  %v4366_v20 = vadd.f32 %v731_v23, %v669_v40  ;;  %v748_v55 = vrot.slane %v747_v14, 1  ;;  %v775_v23 = vrot.slane %v774_v49, 2 }
 0x21c   :  { %v786_v39 = vrot.slane %v785_v50, 2 }
 0x21d   :  { %v793_v30 = vsel %vm741_vm7, %v4364_v8, 0.0  ;;  %v818_v4 = vmul.f32 %v4364_v8, %v4364_v8  ;;  %v804_v33 = vsel %vm753_vm8, %v4366_v20, 0.0  ;;  %v819_v37 = vmul.f32 %v4366_v20, %v4366_v20 }
 0x21e   :  { %v794_v38 = vadd.f32 %v793_v30, %v792_v19  ;;  %v805_v27 = vadd.f32 %v804_v33, %v803_v28  ;;  %v776_v25 = vadd.f32 %v775_v23, %v774_v49  ;;  %v749_v53 = vadd.f32 %v748_v55, %v747_v14 }
 0x21f   :  { %v821_v10 = vsel %vm741_vm7, %v818_v4, 0.0  ;;  %v832_v59 = vsel %vm753_vm8, %v819_v37, 0.0  ;;  %v787_v29 = vadd.f32 %v786_v39, %v785_v50  ;;  %vm1158_vm8 = vcmask 1047616  }
 0x220   :  { %v795_v60 = vrot.slane %v794_v38, 4  ;;  %v822_v15 = vadd.f32 %v821_v10, %v820_v2  ;;  %v806_v32 = vrot.slane %v805_v27, 4  ;;  %v833_v47 = vadd.f32 %v832_v59, %v831_v12 }
 0x221   :  { %v777_v28 = vrot.slane %v776_v25, 1  ;;  %v788_v30 = vrot.slane %v787_v29, 1 }
 0x222   :  { %v796_v31 = vadd.f32 %v795_v60, %v794_v38  ;;  %v823_v7 = vrot.slane %v822_v15, 4  ;;  %v807_v61 = vadd.f32 %v806_v32, %v805_v27  ;;  %v834_v43 = vrot.slane %v833_v47, 4 }
 0x223   :  { %v778_v37 = vadd.f32 %v777_v28, %v776_v25  ;;  %v789_v2 = vadd.f32 %v788_v30, %v787_v29  ;;  %v2817_v28 = vld [vmem:[%s5694_s5 + $0x1] ss:$2 sm:$0x3] }
 0x224   :  { %v797_v11 = vrot.slane %v796_v31, 2  ;;  %v824_v21 = vadd.f32 %v823_v7, %v822_v15  ;;  %v808_v63 = vrot.slane %v807_v61, 2  ;;  %v835_v16 = vadd.f32 %v834_v43, %v833_v47 }
 0x226   :  { %v798_v0 = vadd.f32 %v797_v11, %v796_v31  ;;  %v825_v18 = vrot.slane %v824_v21, 2  ;;  %v809_v24 = vadd.f32 %v808_v63, %v807_v61  ;;  %v836_v36 = vrot.slane %v835_v16, 2 }
 0x228   :  { %v810_v52 = vrot.slane %v809_v24, 1  ;;  %v799_v9 = vrot.slane %v798_v0, 1  ;;  %v826_v1 = vadd.f32 %v825_v18, %v824_v21  ;;  %v837_v40 = vadd.f32 %v836_v36, %v835_v16 }
 0x22a   :  { %v811_v26 = vadd.f32 %v810_v52, %v809_v24  ;;  %v800_v34 = vadd.f32 %v799_v9, %v798_v0  ;;  %v827_v17 = vrot.slane %v826_v1, 1  ;;  %v838_v19 = vrot.slane %v837_v40, 1 }
 0x22c   :  { %v812_v3 = vadd.f32 %v800_v34, %v749_v53  ;;  %v813_v13 = vadd.f32 %v811_v26, %v761_v56  ;;  %v828_v4 = vadd.f32 %v827_v17, %v826_v1  ;;  %v839_v33 = vadd.f32 %v838_v19, %v837_v40  ;;  %v1050_v53 = vld [vmem:[%s5694_s5] ss:$2 sm:$0x3]  ;;  %s3319_s5 = smov 8  }
 0x22e   :  { %895 = vmatmul.f32.vlgmr.msra.gmra.mxu0 %v812_v3  ;;  %2813 = vmatmul.msk.f32.vlgmr.msra.gmra.mxu1 %vm86_vm6, %v813_v13  ;;  %v840_v38 = vadd.f32 %v828_v4, %v778_v37  ;;  %v841_v27 = vadd.f32 %v839_v33, %v789_v2 }
 0x22f   :  { %935 = vmatmul.f32.vlgmr.msrb.gmra.mxu2 %v812_v3  ;;  %2814 = vmatmul.msk.f32.vlgmr.msrb.gmra.mxu3 %vm86_vm6, %v813_v13 }
 0x230   :  { %1039 = vmatpush.msra.mxu1 %v4287_v57 }
 0x236   :  { %980 = vmatmul.f32.vlgmr.msrb.gmra.mxu1 %v840_v38  ;;  %1020 = vmatmul.f32.vlgmr.msrb.gmra.mxu0 %v840_v38 }
 0x237   :  { %2815 = vmatmul.msk.f32.vlgmr.msra.gmra.mxu3 %vm86_vm6, %v841_v27 }
 0x23e   :  { %2816 = vmatmul.msk.f32.vlgmr.msra.gmra.mxu1 %vm86_vm6, %v841_v27 }
 0x2ab   :  { %v916_v12 = vpop.f32.mrf.mxu1  ;;  %v896_v5 = vpop.f32.mrf.mxu0 }
 0x2ac   :  { %v917_v15 = vadd.f32 %v916_v12, %v896_v5 }
 0x2ae   :  { %v959_v47 = vmul.f32 0.0017301039, %v917_v15 }
 0x2b0   :  { %v1046_v61 = vmul.f32 %v959_v47, %v959_v47 }
 0x2b2   :  { %v956_v10 = vpop.f32.mrf.mxu3  ;;  %v936_v59 = vpop.f32.mrf.mxu2 }
 0x2b3   :  { %v981_v60 = vpop.f32.mrf.mxu1  ;;  %v957_v32 = vadd.f32 %v956_v10, %v936_v59  ;;  %v1021_v44 = vpop.f32.mrf.mxu0 }
 0x2b5   :  { %v960_v57 = vmul.f32 0.0017301039, %v957_v32 }
 0x2b7   :  { %v1047_v50 = vmul.f32 %v960_v57, %v960_v57 }
 0x2ba   :  { %v1001_v49 = vpop.f32.mrf.mxu3 }
 0x2bb   :  { %v1002_v14 = vadd.f32 %v1001_v49, %v981_v60  ;;  %v1041_v31 = vpop.f32.mrf.mxu1 }
 0x2bc   :  { %v1042_v7 = vadd.f32 %v1041_v31, %v1021_v44 }
 0x2bd   :  { %v1044_v43 = vmul.f32 0.0017301039, %v1002_v14 }
 0x2be   :  { %v1045_v11 = vmul.f32 0.0017301039, %v1042_v7 }
 0x2bf   :  { %v1048_v21 = vsub.f32 %v1044_v43, %v1046_v61 }
 0x2c0   :  { %v1049_v63 = vsub.f32 %v1045_v11, %v1047_v50 }
 0x2c1   :  { %v1051_v16 = vadd.f32 1e-05, %v1048_v21 }
 0x2c2   :  { %v1052_v41 = vadd.f32 1e-05, %v1049_v63 }
 0x2c3   :  { %3310 = vrsqrt.f32 %v1051_v16  ;;  %vm1059_vm13 = vweird.f32 %v1051_v16 }
 0x2c4   :  { %3312 = vrsqrt.f32 %v1052_v41  ;;  %vm1069_vm11 = vweird.f32 %v1052_v41 }
 0x2c9   :  { %v3311_v55 = vpop.eup %3310 }
 0x2ca   :  { %v3313_v23 = vpop.eup %3312  ;;  %v1054_v0 = vmul.f32 %v3311_v55, %v1051_v16  ;;  %vm1060_vm10 = vweird.f32 %v3311_v55 }
 0x2cb   :  { %v1064_v18 = vmul.f32 %v3313_v23, %v1052_v41  ;;  %vm1070_vm9 = vweird.f32 %v3313_v23  ;;  %vm1061_vm14 = vmor %vm1059_vm13, %vm1060_vm10  ;;  %vm1539_vm10 = vcmask 1046528   ;;  %vm1162_vm13 = vcmask 1041472  }
 0x2cc   :  { %v1055_v24 = vmul.f32 %v3311_v55, %v1054_v0  ;;  %vm1071_vm12 = vmor %vm1069_vm11, %vm1070_vm9  ;;  %vm1160_vm9 = vcmask 130048   ;;  %vm1878_vm11 = vcmask 1045504  }
 0x2cd   :  { %v1065_v36 = vmul.f32 %v3313_v23, %v1064_v18 }
 0x2ce   :  { %v1056_v39 = vmul.f32 0.5, %v1055_v24 }
 0x2cf   :  { %v1066_v52 = vmul.f32 0.5, %v1065_v36 }
 0x2d0   :  { %v1057_v9 = vsub.f32 1.5, %v1056_v39 }
 0x2d1   :  { %v1067_v1 = vsub.f32 1.5, %v1066_v52 }
 0x2d2   :  { %v1058_v40 = vmul.f32 %v3311_v55, %v1057_v9 }
 0x2d3   :  { %v1068_v25 = vmul.f32 %v3313_v23, %v1067_v1 }
 0x2d4   :  { %v1062_v56 = vsel %vm1061_vm14, %v3311_v55, %v1058_v40  ;;  %vm1164_vm14 = vcmask 123904  }
 0x2d5   :  { %v1072_v26 = vsel %vm1071_vm12, %v3313_v23, %v1068_v25  ;;  %vm2209_vm12 = vcmask 1044480  }
 0x2d6   :  { %v1075_v34 = vrot.slane %v1072_v26, 7 }
 0x2d8   :  { %v1076_v29 = vsel %vm741_vm7, %v1062_v56, %v1075_v34 }
 0x2d9   :  { %v1078_v3 = vmul.f32 %v1076_v29, %v1050_v53 }
 0x2db   :  { %v1082_v13 = vperm.slane %v1078_v3, 0  ;;  %v4392_v17 = vperm.slane %v1078_v3, 1 }
 0x2dd   :  { %v1087_v19 = vmul.f32 %v4392_v17, %v960_v57  ;;  %v1086_v30 = vmul.f32 %v1082_v13, %v959_v47  ;;  %v1095_v2 = vmul.f32 %v4392_v17, %v4263_v45  ;;  %v1094_v27 = vmul.f32 %v1082_v13, %v4282_v6 }
 0x2de   :  { %v1096_v5 = vmul.f32 %v1082_v13, %v4273_v22  ;;  %v1097_v10 = vmul.f32 %v4392_v17, %v4251_v48  ;;  %v1166_v44 = vmul.f32 %v1082_v13, %v4352_v54  ;;  %v1167_v45 = vmul.f32 %v4392_v17, %v4337_v51 }
 0x2df   :  { %v1090_v4 = vrot.slane %v1087_v19, 7  ;;  %v1169_v54 = vmul.f32 %v4392_v17, %v4333_v46  ;;  %v1168_v51 = vmul.f32 %v1082_v13, %v4342_v42  ;;  %v1098_v50 = vmul.f32 %v1082_v13, %v4266_v58 }
 0x2e0   :  { %v1099_v58 = vmul.f32 %v4392_v17, %v4269_v62  ;;  %v1170_v42 = vmul.f32 %v1082_v13, %v4364_v8  ;;  %v1171_v62 = vmul.f32 %v4392_v17, %v4366_v20  ;;  %v1247_v20 = vld [vmem:[%s5695_s2 + $0x78] sm:$0xff]  ;;  %v1246_v17 = vld [vmem:[%s5695_s2 + $0x70] sm:$0xff] }
 0x2e1   :  { %v1091_v33 = vsel %vm741_vm7, %v1086_v30, %v1090_v4  ;;  %1331 = vmatpush.msra.mxu2 %v1247_v20  ;;  %v1245_v4 = vld [vmem:[%s5695_s2 + $0x68] sm:$0xff] }
 0x2e2   :  { %v1093_v37 = vsub.f32 %v2817_v28, %v1091_v33  ;;  %v1244_v33 = vld [vmem:[%s5695_s2 + $0x60] sm:$0xff] }
 0x2e3   :  { %1332 = vmatpush.msra.mxu2 %v1246_v17 }
 0x2e4   :  { %v1102_v38 = vperm.slane %v1093_v37, 1  ;;  %v1101_v12 = vperm.slane %v1093_v37, 0  ;;  %v1243_v37 = vld [vmem:[%s5695_s2 + $0x58] sm:$0xff] }
 0x2e5   :  { %1333 = vmatpush.msra.mxu2 %v1245_v4 }
 0x2e6   :  { %v1106_v59 = vadd.f32 %v1102_v38, %v1095_v2  ;;  %v1105_v60 = vadd.f32 %v1101_v12, %v1094_v27  ;;  %v1107_v15 = vadd.f32 %v1101_v12, %v1096_v5  ;;  %v1108_v32 = vadd.f32 %v1102_v38, %v1097_v10  ;;  %v1242_v2 = vld [vmem:[%s5695_s2 + $0x50] sm:$0xff]  ;;  %v1240_v27 = vld [vmem:[%s5695_s2 + $0x40] sm:$0xff]  ;;  %v1239_v5 = vld [vmem:[%s5695_s2 + $0x38] sm:$0xff] }
 0x2e7   :  { %v1172_v7 = vadd.f32 %v1166_v44, %v1101_v12  ;;  %v1173_v61 = vadd.f32 %v1167_v45, %v1102_v38  ;;  %v1175_v63 = vadd.f32 %v1169_v54, %v1102_v38  ;;  %v1174_v16 = vadd.f32 %v1168_v51, %v1101_v12  ;;  %1334 = vmatpush.msra.mxu2 %v1244_v33  ;;  %v1238_v10 = vld [vmem:[%s5695_s2 + $0x30] sm:$0xff] }
 0x2e8   :  { %v1112_v47 = vmax.f32 %v1106_v59, 0.0  ;;  %v1111_v57 = vmax.f32 %v1105_v60, 0.0  ;;  %v1113_v49 = vmax.f32 %v1107_v15, 0.0  ;;  %v1114_v22 = vmax.f32 %v1108_v32, 0.0  ;;  %v1237_v59 = vld [vmem:[%s5695_s2 + $0x28] sm:$0xff]  ;;  %v1236_v60 = vld [vmem:[%s5695_s2 + $0x20] sm:$0xff] }
 0x2e9   :  { %v1178_v43 = vmax.f32 %v1172_v7, 0.0  ;;  %v1179_v21 = vmax.f32 %v1173_v61, 0.0  ;;  %v1109_v41 = vadd.f32 %v1101_v12, %v1098_v50  ;;  %v1181_v18 = vmax.f32 %v1175_v63, 0.0  ;;  %1335 = vmatpush.msra.mxu2 %v1243_v37  ;;  %v1235_v15 = vld [vmem:[%s5695_s2 + $0x18] sm:$0xff]  ;;  %v1234_v32 = vld [vmem:[%s5695_s2 + $0x10] sm:$0xff] }
 0x2ea   :  { %v1124_v14 = vrot.slane %v1112_v47, 7  ;;  %v1123_v6 = vrot.slane %v1111_v57, 7  ;;  %v1125_v31 = vrot.slane %v1113_v49, 7  ;;  %v1127_v11 = vrot.slane %v1114_v22, 7  ;;  %v1233_v47 = vld [vmem:[%s5695_s2 + $0x8] sm:$0xff]  ;;  %v1232_v57 = vld [vmem:[%s5695_s2] sm:$0xff] }
 0x2eb   :  { %v1190_v55 = vrot.slane %v1178_v43, 7  ;;  %v1191_v0 = vrot.slane %v1179_v21, 7  ;;  %v1180_v24 = vmax.f32 %v1174_v16, 0.0  ;;  %v1115_v46 = vmax.f32 %v1109_v41, 0.0  ;;  %1336 = vmatpush.msra.mxu2 %v1242_v2 }
 0x2ec   :  { %1135 = vrot.lane.b32.xlu2 %v1124_v14, %s3319_s5  ;;  %1133 = vrot.lane.b32.xlu1 %v1123_v6, %s3319_s5  ;;  %v1126_v48 = vsel %vm741_vm7, %v1123_v6, %v1125_v31  ;;  %v1128_v23 = vsel %vm741_vm7, %v1124_v14, %v1127_v11  ;;  %v1194_v36 = vrot.slane %v1181_v18, 7  ;;  %v1110_v52 = vadd.f32 %v1102_v38, %v1099_v58 }
 0x2ed   :  { %1137 = vrot.lane.b32.xlu0 %v1126_v48, %s3319_s5  ;;  %v1192_v39 = vrot.slane %v1180_v24, 7  ;;  %v1129_v9 = vrot.slane %v1115_v46, 7  ;;  %v1176_v1 = vadd.f32 %v1170_v42, %v1101_v12  ;;  %v1177_v56 = vadd.f32 %v1171_v62, %v1102_v38  ;;  %v1241_v38 = vld [vmem:[%s5695_s2 + $0x48] sm:$0xff] }
 0x2ee   :  { %v1195_v40 = vsel %vm741_vm7, %v1191_v0, %v1194_v36  ;;  %v1116_v26 = vmax.f32 %v1110_v52, 0.0  ;;  %1337 = vmatpush.msra.mxu2 %v1241_v38  ;;  %v69_v12 = vlaneseq }
 0x2ef   :  { %v1193_v25 = vsel %vm741_vm7, %v1190_v55, %v1192_v39  ;;  %v1130_v53 = vsel %vm741_vm7, %v1125_v31, %v1129_v9  ;;  %v1182_v34 = vmax.f32 %v1176_v1, 0.0  ;;  %v1183_v13 = vmax.f32 %v1177_v56, 0.0 }
 0x2f0   :  { %v1131_v8 = vrot.slane %v1116_v26, 7  ;;  %1338 = vmatpush.msra.mxu2 %v1240_v27  ;;  %vm71_vm1 = vcmp.lt.s32.totalorder %v69_v12, 152 }
 0x2f1   :  { %v1196_v29 = vrot.slane %v1182_v34, 7  ;;  %v1198_v28 = vrot.slane %v1183_v13, 7  ;;  %73 = vst.msk [vmem:[#allocation3] ss:$8 sm:$0x3] %vm71_vm1, %v5733_v35 }
 0x2f2   :  { %v1132_v3 = vsel %vm741_vm7, %v1127_v11, %v1131_v8  ;;  %1339 = vmatpush.msra.mxu2 %v1239_v5  ;;  %76 = vst.msk [vmem:[#allocation3 + $0x30] ss:$8 sm:$0x3] %vm71_vm1, %v5733_v35 }
 0x2f3   :  { %v1197_v19 = vsel %vm741_vm7, %v1192_v39, %v1196_v29  ;;  %v1199_v30 = vsel %vm741_vm7, %v1194_v36, %v1198_v28  ;;  %79 = vst.msk [vmem:[#allocation3 + $0x22] ss:$8 sm:$0x3] %vm71_vm1, %v5733_v35  ;;  %vm1156_vm7 = vcmask 130049  }
 0x2f4   :  { %1200 = vrot.lane.b32.xlu2 %v1190_v55, %s3319_s5  ;;  %1139 = vrot.lane.b32.xlu1 %v1128_v23, %s3319_s5  ;;  %82 = vst.msk [vmem:[#allocation3 + $0x52] ss:$8 sm:$0x3] %vm71_vm1, %v5733_v35  ;;  %vm2637_vm1 = vcmask 523264  }
 0x2f5   :  { %1202 = vrot.lane.b32.xlu0 %v1191_v0, %s3319_s5  ;;  %1340 = vmatpush.msra.mxu2 %v1238_v10 }
 0x2f7   :  { %1341 = vmatpush.msra.mxu2 %v1237_v59 }
 0x2f9   :  { %1342 = vmatpush.msra.mxu2 %v1236_v60 }
 0x2fb   :  { %1343 = vmatpush.msra.mxu2 %v1235_v15 }
 0x2fc   :  { %1206 = vrot.lane.b32.xlu2 %v1195_v40, %s3319_s5  ;;  %1204 = vrot.lane.b32.xlu1 %v1193_v25, %s3319_s5 }
 0x2fd   :  { %1141 = vrot.lane.b32.xlu0 %v1130_v53, %s3319_s5  ;;  %1344 = vmatpush.msra.mxu2 %v1234_v32 }
 0x2ff   :  { %1345 = vmatpush.msra.mxu2 %v1233_v47 }
 0x301   :  { %1346 = vmatpush.msra.mxu2 %v1232_v57 }
 0x304   :  { %1143 = vrot.lane.b32.xlu1 %v1132_v3, %s3319_s5 }
 0x305   :  { %1208 = vrot.lane.b32.xlu0 %v1197_v19, %s3319_s5 }
 0x30c   :  { %1210 = vrot.lane.b32.xlu1 %v1199_v30, %s3319_s5 }
 0x346   :  { %v1136_v49 = vpop.permute.xlu2 %1135 }
 0x34e   :  { %v1201_v44 = vpop.permute.xlu2 %1200 }
 0x34f   :  { %1222 = vst.msk [vmem:[#allocation3 + $0x30] sm:$0xfe] %vm1154_vm3, %v1201_v44 }
 0x356   :  { %v1207_v24 = vpop.permute.xlu2 %1206  ;;  %v2261_v53 = vld [vmem:[#allocation3 + $0x30] sm:$0xf8] }
 0x357   :  { %v1513_v29 = vld [vmem:[#allocation3 + $0x30] sm:$0xfe]  ;;  %v2300_v28 = vrot.slane %v2261_v53, 3 }
 0x358   :  { %v1230_v13 = vld [vmem:[#allocation3 + $0x30] sm:$0xff]  ;;  %v1545_v12 = vrot.slane %v1513_v29, 1 }
 0x359   :  { %v1855_v37 = vld [vmem:[#allocation3 + $0x30] sm:$0xfc] }
 0x35a   :  { %v2186_v10 = vld [vmem:[#allocation3 + $0x30] sm:$0xf8] }
 0x35e   :  { %v1134_v45 = vpop.permute.xlu1 %1133 }
 0x35f   :  { %v1145_v14 = vsel %vm86_vm6, %v1134_v45, %v1136_v49  ;;  %1155 = vst.msk [vmem:[#allocation3] sm:$0xfe] %vm1154_vm3, %v1134_v45  ;;  %v1138_v6 = vpop.permute.xlu0 %1137 }
 0x360   :  { %1157 = vst.msk [vmem:[#allocation3 + $0x8] sm:$0xfe] %vm1156_vm7, %v1145_v14 }
 0x361   :  { %1159 = vst.msk [vmem:[#allocation3 + $0x10] sm:$0xff] %vm1158_vm8, %v1138_v6 }
 0x366   :  { %v1140_v31 = vpop.permute.xlu1 %1139  ;;  %v1228_v7 = vld [vmem:[#allocation3] sm:$0xff] }
 0x367   :  { %v1146_v22 = vsel %vm86_vm6, %v1138_v6, %v1140_v31  ;;  %1347 = vmatmul.f32.vlgmr.msra.gmra.mxu2 %v1228_v7  ;;  %v1203_v61 = vpop.permute.xlu0 %1202  ;;  %v1248_v48 = vld [vmem:[#allocation3 + $0x8] sm:$0xff]  ;;  %v1510_v50 = vld [vmem:[#allocation3] sm:$0xfe] }
 0x368   :  { %1161 = vst.msk [vmem:[#allocation3 + $0x18] sm:$0xff] %vm1160_vm9, %v1146_v22  ;;  %v1212_v35 = vsel %vm86_vm6, %v1201_v44, %v1203_v61  ;;  %v3079_v54 = vpack.i.bf16 %v1248_v48, %v1228_v7  ;;  %v1229_v51 = vld [vmem:[#allocation3 + $0x10] sm:$0xff]  ;;  %v1540_v11 = vrot.slane %v1510_v50, 1  ;;  %v1853_v21 = vld [vmem:[#allocation3] sm:$0xfc]  ;;  %v1884_v44 = vrot.slane %v1855_v37, 2 }
 0x369   :  { %1223 = vst.msk [vmem:[#allocation3 + $0x38] sm:$0xfe] %vm1156_vm7, %v1212_v35  ;;  %v4506_v43 = vrot.slane %v1229_v51, 1  ;;  %v4511_v63 = vrot.slane %v1229_v51, 2  ;;  %v2184_v16 = vld [vmem:[#allocation3] sm:$0xf8] }
 0x36a   :  { %3080 = vrot.lane.b32.xlu1 %v3079_v54, %s3320_s18  ;;  %3070 = vrot.lane.b32.xlu2 %v3079_v54, %s3321_s19  ;;  %v1879_v41 = vrot.slane %v1853_v21, 2  ;;  %v2210_v55 = vrot.slane %v2184_v16, 3  ;;  %v4513_v23 = vrot.slane %v1229_v51, 3  ;;  %v2257_v0 = vld [vmem:[#allocation3] sm:$0xf8] }
 0x36b   :  { %3075 = vrot.lane.b32.xlu0 %v3079_v54, %s3322_s20  ;;  %v4517_v18 = vsel %vm1539_vm10, %v1540_v11, %v4506_v43  ;;  %v2258_v9 = vld [vmem:[#allocation3 + $0x8] sm:$0xf8]  ;;  %v2290_v40 = vrot.slane %v2257_v0, 3  ;;  %v1587_v38 = vld [vmem:[#allocation3] sm:$0xfe]  ;;  %v2215_v54 = vrot.slane %v2186_v10, 3 }
 0x36c   :  { %v4521_v58 = vsel %vm1878_vm11, %v1879_v41, %v4511_v63  ;;  %v4525_v42 = vsel %vm2209_vm12, %v2210_v55, %v4513_v23  ;;  %v2293_v25 = vrot.slane %v2258_v9, 3  ;;  %v1588_v5 = vld [vmem:[#allocation3 + $0x8] sm:$0xfe]  ;;  %v1628_v57 = vrot.slane %v1587_v38, 1 }
 0x36d   :  { %v2292_v34 = vsel %vm2209_vm12, %v2290_v40, %v4513_v23  ;;  %v1631_v14 = vrot.slane %v1588_v5, 1 }
 0x36e   :  { %v1205_v46 = vpop.permute.xlu1 %1204 }
 0x36f   :  { %v1213_v36 = vsel %vm86_vm6, %v1205_v46, %v1207_v24  ;;  %1224 = vst.msk [vmem:[#allocation3 + $0x40] sm:$0xff] %vm1158_vm8, %v1205_v46  ;;  %1350 = vmatmul.f32.gmra.mxu2 %v1229_v51  ;;  %v1142_v39 = vpop.permute.xlu0 %1141  ;;  %v4529_v52 = vld [vmem:[#allocation3 + $0x18] sm:$0xff] }
 0x370   :  { %1225 = vst.msk [vmem:[#allocation3 + $0x48] sm:$0xff] %vm1160_vm9, %v1213_v36  ;;  %v3099_v1 = vpack.i.bf16 %v4529_v52, %v1229_v51  ;;  %v2294_v26 = vrot.slane %v4529_v52, 3  ;;  %v1250_v8 = vld [vmem:[#allocation3 + $0x38] sm:$0xff]  ;;  %v1632_v59 = vrot.slane %v4529_v52, 1  ;;  %v1630_v36 = vsel %vm1539_vm10, %v1628_v57, %v4506_v43 }
 0x371   :  { %1163 = vst.msk [vmem:[#allocation3 + $0x20] sm:$0x3] %vm1162_vm13, %v1142_v39  ;;  %v2262_v4 = vld [vmem:[#allocation3 + $0x38] sm:$0xf8]  ;;  %v3114_v2 = vpack.i.bf16 %v1250_v8, %v1230_v13 }
 0x372   :  { %3100 = vrot.lane.b32.xlu1 %v3099_v1, %s3320_s18  ;;  %3085 = vrot.lane.b32.xlu2 %v3099_v1, %s3321_s19  ;;  %v2295_v62 = vsel %vm2209_vm12, %v2293_v25, %v2294_v26  ;;  %v2303_v15 = vrot.slane %v2262_v4, 3  ;;  %v1633_v50 = vsel %vm1539_vm10, %v1631_v14, %v1632_v59  ;;  %v2831_v57 = vld [vmem:[%s5695_s2 + $0xe8] sm:$0xff]  ;;  %v1593_v14 = vld [vmem:[#allocation3 + $0x30] sm:$0xfe] }
 0x373   :  { %3095 = vrot.lane.b32.xlu0 %v3099_v1, %s3322_s20  ;;  %v4543_v56 = vpack.i.bf16 %v2295_v62, %v2292_v34  ;;  %v3129_v1 = vpack.i.bf16 %v1633_v50, %v1630_v36  ;;  %v2833_v34 = vld [vmem:[%s5695_s2 + $0xf8] sm:$0xff]  ;;  %v1926_v36 = vld [vmem:[#allocation3] sm:$0xfc] }
 0x374   :  { %1302 = vmatpush.msrb.mxu3 %v2833_v34  ;;  %v2824_v34 = vld [vmem:[%s5695_s2 + $0xb0] sm:$0xff] }
 0x376   :  { %v1144_v3 = vpop.permute.xlu1 %1143  ;;  %v1231_v19 = vld [vmem:[#allocation3 + $0x40] sm:$0xff] }
 0x377   :  { %v1147_v30 = vsel %vm86_vm6, %v1142_v39, %v1144_v3  ;;  %1353 = vmatmul.f32.gmra.mxu2 %v1230_v13  ;;  %v1209_v20 = vpop.permute.xlu0 %1208  ;;  %v4546_v17 = vld [vmem:[#allocation3 + $0x48] sm:$0xff]  ;;  %v4548_v33 = vrot.slane %v1231_v19, 3  ;;  %v4551_v27 = vrot.slane %v1231_v19, 1  ;;  %v4568_v35 = vrot.slane %v1231_v19, 2 }
 0x378   :  { %1165 = vst.msk [vmem:[#allocation3 + $0x28] sm:$0x3] %vm1164_vm14, %v1147_v30  ;;  %v2304_v32 = vrot.slane %v4546_v17, 3  ;;  %v1512_v47 = vld [vmem:[#allocation3 + $0x20] sm:$0x1]  ;;  %v3124_v46 = vpack.i.bf16 %v4546_v17, %v1231_v19 }
 0x379   :  { %1226 = vst.msk [vmem:[#allocation3 + $0x50] sm:$0x3] %vm1162_vm13, %v1209_v20  ;;  %v2302_v60 = vsel %vm2209_vm12, %v2300_v28, %v4548_v33  ;;  %v1854_v49 = vld [vmem:[#allocation3 + $0x20] sm:$0x3]  ;;  %v1543_v7 = vrot.slane %v1512_v47, 1  ;;  %v4564_v22 = vsel %vm1539_vm10, %v1545_v12, %v4551_v27  ;;  %v4584_v24 = vsel %vm1878_vm11, %v1884_v44, %v4568_v35 }
 0x37a   :  { %3115 = vrot.lane.b32.xlu1 %v3114_v2, %s3320_s18  ;;  %3090 = vrot.lane.b32.xlu2 %v3114_v2, %s3321_s19  ;;  %v2185_v45 = vld [vmem:[#allocation3 + $0x20] sm:$0x7]  ;;  %v2305_v31 = vsel %vm2209_vm12, %v2303_v15, %v2304_v32  ;;  %v1882_v48 = vrot.slane %v1854_v49, 2  ;;  %v4596_v9 = vsel %vm2209_vm12, %v2215_v54, %v4548_v33  ;;  %v2827_v54 = vld [vmem:[%s5695_s2 + $0xc8] sm:$0xff] }
 0x37b   :  { %3110 = vrot.lane.b32.xlu0 %v3114_v2, %s3322_s20  ;;  %v2259_v6 = vld [vmem:[#allocation3 + $0x20] sm:$0x7]  ;;  %v4566_v61 = vpack.i.bf16 %v2305_v31, %v2302_v60  ;;  %v4575_v11 = vsel %vm1539_vm10, %v4506_v43, %v1543_v7  ;;  %v2213_v21 = vrot.slane %v2185_v45, 3  ;;  %v2829_v31 = vld [vmem:[%s5695_s2 + $0xd8] sm:$0xff]  ;;  %v1642_v7 = vrot.slane %v4546_v17, 1 }
 0x37c   :  { %v2296_v55 = vrot.slane %v2259_v6, 3  ;;  %v4580_v0 = vsel %vm1878_vm11, %v4511_v63, %v1882_v48  ;;  %v1591_v38 = vld [vmem:[#allocation3 + $0x20] sm:$0x1]  ;;  %v1594_v6 = vld [vmem:[#allocation3 + $0x38] sm:$0xfe] }
 0x37d   :  { %v4592_v39 = vsel %vm2209_vm12, %v4513_v23, %v2213_v21  ;;  %v1634_v15 = vrot.slane %v1591_v38, 1  ;;  %v2832_v47 = vld [vmem:[%s5695_s2 + $0xf0] sm:$0xff]  ;;  %v1641_v48 = vrot.slane %v1594_v6, 1  ;;  %v2821_v38 = vld [vmem:[%s5695_s2 + $0x98] sm:$0xff] }
 0x37e   :  { %v1211_v51 = vpop.permute.xlu1 %1210  ;;  %v2297_v62 = vsel %vm2209_vm12, %v4513_v23, %v2296_v55  ;;  %1303 = vmatpush.msrb.mxu3 %v2832_v47  ;;  %v2847_v47 = vld [vmem:[%s5695_s2 + $0x168] sm:$0xff] }
 0x37f   :  { %v1214_v16 = vsel %vm86_vm6, %v1209_v20, %v1211_v51  ;;  %1356 = vmatmul.f32.gmra.mxu2 %v1231_v19  ;;  %v2260_v41 = vld [vmem:[#allocation3 + $0x28] sm:$0x7]  ;;  %v1635_v44 = vsel %vm1539_vm10, %v4506_v43, %v1634_v15  ;;  %v2828_v43 = vld [vmem:[%s5695_s2 + $0xd0] sm:$0xff]  ;;  %v1643_v50 = vsel %vm1539_vm10, %v1641_v48, %v1642_v7  ;;  %v2819_v15 = vld [vmem:[%s5695_s2 + $0x88] sm:$0xff]  ;;  %vm1293_vm6 = vcmask 982016  }
 0x380   :  { %1227 = vst.msk [vmem:[#allocation3 + $0x58] sm:$0x3] %vm1164_vm14, %v1214_v16  ;;  %v2298_v40 = vrot.slane %v2260_v41, 3  ;;  %v1515_v25 = vld [vmem:[#allocation3 + $0x50] sm:$0x1]  ;;  %1304 = vmatpush.msrb.mxu3 %v2831_v57  ;;  %v2863_v57 = vld [vmem:[%s5695_s2 + $0x1e8] sm:$0xff] }
 0x381   :  { %v1856_v53 = vld [vmem:[#allocation3 + $0x50] sm:$0x3]  ;;  %v1548_v19 = vrot.slane %v1515_v25, 1  ;;  %v1592_v20 = vld [vmem:[#allocation3 + $0x28] sm:$0x1]  ;;  %v1963_v25 = vrot.slane %v4529_v52, 2 }
 0x382   :  { %3125 = vrot.lane.b32.xlu1 %v3124_v46, %s3320_s18  ;;  %3105 = vrot.lane.b32.xlu2 %v3124_v46, %s3321_s19  ;;  %v2299_v8 = vsel %vm2209_vm12, %v2294_v26, %v2298_v40  ;;  %v2263_v29 = vld [vmem:[#allocation3 + $0x50] sm:$0x7]  ;;  %v1887_v28 = vrot.slane %v1856_v53, 2  ;;  %v1636_v5 = vrot.slane %v1592_v20, 1  ;;  %v2865_v52 = vld [vmem:[%s5695_s2 + $0x1f8] sm:$0xff]  ;;  %v2844_v48 = vld [vmem:[%s5695_s2 + $0x150] sm:$0xff] }
 0x383   :  { %3130 = vrot.lane.b32.xlu0 %v3129_v1, %s3321_s19  ;;  %v2187_v3 = vld [vmem:[#allocation3 + $0x50] sm:$0x7]  ;;  %v4609_v13 = vpack.i.bf16 %v2299_v8, %v2297_v62  ;;  %v2306_v4 = vrot.slane %v2263_v29, 3  ;;  %v4613_v37 = vsel %vm1539_vm10, %v4551_v27, %v1548_v19  ;;  %v1959_v62 = vrot.slane %v1926_v36, 2  ;;  %v2823_v29 = vld [vmem:[%s5695_s2 + $0xa8] sm:$0xff]  ;;  %1477 = vmatpush.msra.mxu0 %v2865_v52 }
 0x384   :  { %v2218_v30 = vrot.slane %v2187_v3, 3  ;;  %v4617_v23 = vsel %vm1878_vm11, %v4568_v35, %v1887_v28  ;;  %v2826_v16 = vld [vmem:[%s5695_s2 + $0xc0] sm:$0xff]  ;;  %v2849_v3 = vld [vmem:[%s5695_s2 + $0x178] sm:$0xff] }
 0x385   :  { %v2307_v10 = vsel %vm2209_vm12, %v4548_v33, %v2306_v4  ;;  %v1597_v55 = vld [vmem:[#allocation3 + $0x50] sm:$0x1]  ;;  %1402 = vmatpush.msrb.mxu1 %v2849_v3  ;;  %v1961_v4 = vsel %vm1878_vm11, %v1959_v62, %v4511_v63  ;;  %v1930_v36 = vld [vmem:[#allocation3 + $0x30] sm:$0xfc]  ;;  %v2856_v3 = vld [vmem:[%s5695_s2 + $0x1b0] sm:$0xff] }
 0x386   :  { %v4621_v26 = vsel %vm2209_vm12, %v4548_v33, %v2218_v30  ;;  %v1637_v33 = vsel %vm1539_vm10, %v1632_v59, %v1636_v5  ;;  %v1638_v59 = vrot.slane %v1593_v14, 1  ;;  %v1644_v53 = vrot.slane %v1597_v55, 1  ;;  %v2822_v30 = vld [vmem:[%s5695_s2 + $0xa0] sm:$0xff]  ;;  %v2848_v5 = vld [vmem:[%s5695_s2 + $0x170] sm:$0xff]  ;;  %v2845_v14 = vld [vmem:[%s5695_s2 + $0x158] sm:$0xff] }
 0x387   :  { %v2264_v2 = vld [vmem:[#allocation3 + $0x58] sm:$0x7]  ;;  %v3159_v45 = vpack.i.bf16 %v1637_v33, %v1635_v44  ;;  %1403 = vmatpush.msrb.mxu1 %v2848_v5  ;;  %v2818_v33 = vld [vmem:[%s5695_s2 + $0x80] sm:$0xff] }
 0x388   :  { %v2308_v12 = vrot.slane %v2264_v2, 3  ;;  %v1640_v51 = vsel %vm1539_vm10, %v1638_v59, %v4551_v27  ;;  %v1598_v21 = vld [vmem:[#allocation3 + $0x58] sm:$0x1]  ;;  %v1645_v20 = vsel %vm1539_vm10, %v4551_v27, %v1644_v53  ;;  %v2820_v27 = vld [vmem:[%s5695_s2 + $0x90] sm:$0xff]  ;;  %v2862_v44 = vld [vmem:[%s5695_s2 + $0x1e0] sm:$0xff] }
 0x389   :  { %v3174_v41 = vpack.i.bf16 %v1643_v50, %v1640_v51  ;;  %v1646_v40 = vrot.slane %v1598_v21, 1  ;;  %1404 = vmatpush.msrb.mxu1 %v2847_v47  ;;  %v2843_v50 = vld [vmem:[%s5695_s2 + $0x148] sm:$0xff]  ;;  %v2878_v53 = vld [vmem:[%s5695_s2 + $0x260] sm:$0xff]  ;;  %v2896_v47 = vld [vmem:[%s5695_s2 + $0x2f0] sm:$0xff] }
 0x38a   :  { %3145 = vrot.lane.b32.xlu1 %v3129_v1, %s3320_s18  ;;  %3120 = vrot.lane.b32.xlu2 %v3124_v46, %s3322_s20  ;;  %v2309_v60 = vsel %vm2209_vm12, %v2304_v32, %v2308_v12  ;;  %v2830_v32 = vld [vmem:[%s5695_s2 + $0xe0] sm:$0xff]  ;;  %v2825_v46 = vld [vmem:[%s5695_s2 + $0xb8] sm:$0xff] }
 0x38b   :  { %3140 = vrot.lane.b32.xlu0 %v3129_v1, %s3322_s20  ;;  %v4635_v49 = vpack.i.bf16 %v2309_v60, %v2307_v10  ;;  %1305 = vmatpush.msrb.mxu3 %v2830_v32  ;;  %v1927_v1 = vld [vmem:[#allocation3 + $0x8] sm:$0xfc]  ;;  %v1647_v19 = vsel %vm1539_vm10, %v1642_v7, %v1646_v40  ;;  %v2864_v10 = vld [vmem:[%s5695_s2 + $0x1f0] sm:$0xff]  ;;  %v1929_v60 = vld [vmem:[#allocation3 + $0x28] sm:$0x3] }
 0x38c   :  { %v1962_v8 = vrot.slane %v1927_v1, 2  ;;  %v3189_v2 = vpack.i.bf16 %v1647_v19, %v1645_v20  ;;  %1478 = vmatpush.msra.mxu0 %v2864_v10  ;;  %v2846_v32 = vld [vmem:[%s5695_s2 + $0x160] sm:$0xff]  ;;  %v1967_v6 = vrot.slane %v1929_v60, 2  ;;  %v2881_v7 = vld [vmem:[%s5695_s2 + $0x278] sm:$0xff]  ;;  %v2859_v21 = vld [vmem:[%s5695_s2 + $0x1c8] sm:$0xff] }
 0x38d   :  { %1306 = vmatpush.msrb.mxu3 %v2829_v31  ;;  %1405 = vmatpush.msrb.mxu1 %v2846_v32  ;;  %v2861_v31 = vld [vmem:[%s5695_s2 + $0x1d8] sm:$0xff]  ;;  %v1931_v1 = vld [vmem:[#allocation3 + $0x38] sm:$0xfc]  ;;  %v2858_v40 = vld [vmem:[%s5695_s2 + $0x1c0] sm:$0xff] }
 0x38e   :  { %v1964_v28 = vsel %vm1878_vm11, %v1962_v8, %v1963_v25  ;;  %1479 = vmatpush.msra.mxu0 %v2863_v57  ;;  %v1968_v51 = vsel %vm1878_vm11, %v1963_v25, %v1967_v6  ;;  %v1973_v25 = vrot.slane %v4546_v17, 2  ;;  %v1969_v17 = vrot.slane %v1930_v36, 2  ;;  %v2877_v8 = vld [vmem:[%s5695_s2 + $0x258] sm:$0xff]  ;;  %v1933_v20 = vld [vmem:[#allocation3 + $0x58] sm:$0x3]  ;;  %v2838_v10 = vld [vmem:[%s5695_s2 + $0x120] sm:$0xff] }
 0x38f   :  { %1307 = vmatpush.msrb.mxu3 %v2828_v43  ;;  %v3184_v12 = vpack.i.bf16 %v1964_v28, %v1961_v4  ;;  %1406 = vmatpush.msrb.mxu1 %v2845_v14  ;;  %v2860_v43 = vld [vmem:[%s5695_s2 + $0x1d0] sm:$0xff]  ;;  %v1972_v62 = vrot.slane %v1931_v1, 2  ;;  %v2855_v4 = vld [vmem:[%s5695_s2 + $0x1a8] sm:$0xff]  ;;  %v1977_v5 = vrot.slane %v1933_v20, 2  ;;  %v2854_v60 = vld [vmem:[%s5695_s2 + $0x1a0] sm:$0xff] }
 0x390   :  { %1480 = vmatpush.msra.mxu0 %v2862_v44  ;;  %v1971_v52 = vsel %vm1878_vm11, %v1969_v17, %v4568_v35  ;;  %v2876_v28 = vld [vmem:[%s5695_s2 + $0x250] sm:$0xff]  ;;  %v2853_v32 = vld [vmem:[%s5695_s2 + $0x198] sm:$0xff] }
 0x391   :  { %1308 = vmatpush.msrb.mxu3 %v2827_v54  ;;  %v2880_v54 = vld [vmem:[%s5695_s2 + $0x270] sm:$0xff]  ;;  %1407 = vmatpush.msrb.mxu1 %v2844_v48  ;;  %v1974_v19 = vsel %vm1878_vm11, %v1972_v62, %v1973_v25  ;;  %v2873_v44 = vld [vmem:[%s5695_s2 + $0x238] sm:$0xff]  ;;  %v1978_v14 = vsel %vm1878_vm11, %v1973_v25, %v1977_v5  ;;  %v2894_v48 = vld [vmem:[%s5695_s2 + $0x2e0] sm:$0xff] }
 0x392   :  { %3160 = vrot.lane.b32.xlu1 %v3159_v45, %s3320_s18  ;;  %3135 = vrot.lane.b32.xlu2 %v3159_v45, %s3321_s19  ;;  %v2836_v6 = vld [vmem:[%s5695_s2 + $0x110] sm:$0xff]  ;;  %v2929_v36 = vld [vmem:[%s5695_s2 + $0x3f8] sm:$0xff] }
 0x393   :  { %3155 = vrot.lane.b32.xlu0 %v3159_v45, %s3322_s20  ;;  %1309 = vmatpush.msrb.mxu3 %v2826_v16  ;;  %v1928_v45 = vld [vmem:[#allocation3 + $0x20] sm:$0x3]  ;;  %v2879_v16 = vld [vmem:[%s5695_s2 + $0x268] sm:$0xff]  ;;  %v2925_v5 = vld [vmem:[%s5695_s2 + $0x3d8] sm:$0xff] }
 0x394   :  { %v1965_v59 = vrot.slane %v1928_v45, 2  ;;  %1481 = vmatpush.msra.mxu0 %v2861_v31  ;;  %1408 = vmatpush.msrb.mxu1 %v2843_v50  ;;  %v2895_v45 = vld [vmem:[%s5695_s2 + $0x2e8] sm:$0xff]  ;;  %v2852_v31 = vld [vmem:[%s5695_s2 + $0x190] sm:$0xff]  ;;  %v2834_v50 = vld [vmem:[%s5695_s2 + $0x100] sm:$0xff] }
 0x395   :  { %1310 = vmatpush.msrb.mxu3 %v2825_v46  ;;  %v2892_v25 = vld [vmem:[%s5695_s2 + $0x2d0] sm:$0xff] }
 0x396   :  { %1482 = vmatpush.msra.mxu0 %v2860_v43  ;;  %v1966_v55 = vsel %vm1878_vm11, %v4511_v63, %v1965_v59  ;;  %v2841_v63 = vld [vmem:[%s5695_s2 + $0x138] sm:$0xff]  ;;  %v2868_v17 = vld [vmem:[%s5695_s2 + $0x210] sm:$0xff] }
 0x397   :  { %1311 = vmatpush.msrb.mxu3 %v2824_v34  ;;  %v3214_v46 = vpack.i.bf16 %v1968_v51, %v1966_v55  ;;  %v2857_v34 = vld [vmem:[%s5695_s2 + $0x1b8] sm:$0xff]  ;;  %v2851_v51 = vld [vmem:[%s5695_s2 + $0x188] sm:$0xff]  ;;  %v2928_v62 = vld [vmem:[%s5695_s2 + $0x3f0] sm:$0xff] }
 0x398   :  { %1483 = vmatpush.msra.mxu0 %v2859_v21  ;;  %v2893_v21 = vld [vmem:[%s5695_s2 + $0x2d8] sm:$0xff] }
 0x399   :  { %1312 = vmatpush.msrb.mxu3 %v2823_v29  ;;  %v2840_v29 = vld [vmem:[%s5695_s2 + $0x130] sm:$0xff] }
 0x39a   :  { %3175 = vrot.lane.b32.xlu1 %v3174_v41, %s3320_s18  ;;  %3150 = vrot.lane.b32.xlu2 %v3174_v41, %s3321_s19 }
 0x39b   :  { %3170 = vrot.lane.b32.xlu0 %v3174_v41, %s3322_s20  ;;  %1313 = vmatpush.msrb.mxu3 %v2822_v30  ;;  %v2842_v41 = vld [vmem:[%s5695_s2 + $0x140] sm:$0xff]  ;;  %v2839_v30 = vld [vmem:[%s5695_s2 + $0x128] sm:$0xff] }
 0x39c   :  { %1409 = vmatpush.msrb.mxu1 %v2842_v41  ;;  %1484 = vmatpush.msra.mxu0 %v2858_v40  ;;  %v2870_v41 = vld [vmem:[%s5695_s2 + $0x220] sm:$0xff] }
 0x39d   :  { %1314 = vmatpush.msrb.mxu3 %v2821_v38  ;;  %v1932_v38 = vld [vmem:[#allocation3 + $0x50] sm:$0x3] }
 0x39e   :  { %1410 = vmatpush.msrb.mxu1 %v2841_v63  ;;  %1485 = vmatpush.msra.mxu0 %v2857_v34  ;;  %v1975_v57 = vrot.slane %v1932_v38, 2  ;;  %v2912_v63 = vld [vmem:[%s5695_s2 + $0x370] sm:$0xff]  ;;  %v2889_v38 = vld [vmem:[%s5695_s2 + $0x2b8] sm:$0xff] }
 0x39f   :  { %1315 = vmatpush.msrb.mxu3 %v2820_v27  ;;  %v2897_v27 = vld [vmem:[%s5695_s2 + $0x2f8] sm:$0xff] }
 0x3a0   :  { %1411 = vmatpush.msrb.mxu1 %v2840_v29  ;;  %1486 = vmatpush.msra.mxu0 %v2856_v3  ;;  %v1976_v59 = vsel %vm1878_vm11, %v4568_v35, %v1975_v57  ;;  %v2871_v35 = vld [vmem:[%s5695_s2 + $0x228] sm:$0xff]  ;;  %v2944_v57 = vld [vmem:[%s5695_s2 + $0x470] sm:$0xff] }
 0x3a1   :  { %1316 = vmatpush.msrb.mxu3 %v2819_v15  ;;  %1672 = vmatpush.msrb.mxu2 %v2897_v27  ;;  %v2874_v15 = vld [vmem:[%s5695_s2 + $0x240] sm:$0xff]  ;;  %v3249_v43 = vpack.i.bf16 %v1978_v14, %v1976_v59  ;;  %v2911_v29 = vld [vmem:[%s5695_s2 + $0x368] sm:$0xff] }
 0x3a2   :  { %3190 = vrot.lane.b32.xlu1 %v3189_v2, %s3320_s18  ;;  %3165 = vrot.lane.b32.xlu2 %v3189_v2, %s3321_s19  ;;  %v2867_v3 = vld [vmem:[%s5695_s2 + $0x208] sm:$0xff] }
 0x3a3   :  { %3185 = vrot.lane.b32.xlu0 %v3184_v12, %s3321_s19  ;;  %1317 = vmatpush.msrb.mxu3 %v2818_v33  ;;  %v2837_v33 = vld [vmem:[%s5695_s2 + $0x118] sm:$0xff] }
 0x3a4   :  { %1412 = vmatpush.msrb.mxu1 %v2839_v30  ;;  %1487 = vmatpush.msra.mxu0 %v2855_v4  ;;  %v2910_v30 = vld [vmem:[%s5695_s2 + $0x360] sm:$0xff] }
 0x3a5   :  { %1554 = vmatpush.msra.mxu3 %v2881_v7  ;;  %1673 = vmatpush.msrb.mxu2 %v2896_v47  ;;  %v2872_v7 = vld [vmem:[%s5695_s2 + $0x230] sm:$0xff] }
 0x3a6   :  { %1413 = vmatpush.msrb.mxu1 %v2838_v10  ;;  %1488 = vmatpush.msra.mxu0 %v2854_v60  ;;  %v2945_v10 = vld [vmem:[%s5695_s2 + $0x478] sm:$0xff]  ;;  %v2888_v60 = vld [vmem:[%s5695_s2 + $0x2b0] sm:$0xff] }
 0x3a7   :  { %1555 = vmatpush.msra.mxu3 %v2880_v54  ;;  %1674 = vmatpush.msrb.mxu2 %v2895_v45  ;;  %v2835_v54 = vld [vmem:[%s5695_s2 + $0x108] sm:$0xff]  ;;  %v2924_v47 = vld [vmem:[%s5695_s2 + $0x3d0] sm:$0xff] }
 0x3a8   :  { %1414 = vmatpush.msrb.mxu1 %v2837_v33  ;;  %1489 = vmatpush.msra.mxu0 %v2853_v32  ;;  %v2887_v33 = vld [vmem:[%s5695_s2 + $0x2a8] sm:$0xff] }
 0x3a9   :  { %1556 = vmatpush.msra.mxu3 %v2879_v16  ;;  %1675 = vmatpush.msrb.mxu2 %v2894_v48  ;;  %v2850_v16 = vld [vmem:[%s5695_s2 + $0x180] sm:$0xff] }
 0x3aa   :  { %3205 = vrot.lane.b32.xlu1 %v3184_v12, %s3320_s18  ;;  %3180 = vrot.lane.b32.xlu2 %v3189_v2, %s3322_s20  ;;  %v3229_v2 = vpack.i.bf16 %v1974_v19, %v1971_v52  ;;  %v2927_v52 = vld [vmem:[%s5695_s2 + $0x3e8] sm:$0xff]  ;;  %v2890_v19 = vld [vmem:[%s5695_s2 + $0x2c0] sm:$0xff] }
 0x3ab   :  { %3200 = vrot.lane.b32.xlu0 %v3184_v12, %s3322_s20  ;;  %1557 = vmatpush.msra.mxu3 %v2878_v53  ;;  %v2875_v12 = vld [vmem:[%s5695_s2 + $0x248] sm:$0xff]  ;;  %v2869_v53 = vld [vmem:[%s5695_s2 + $0x218] sm:$0xff]  ;;  %v2922_v48 = vld [vmem:[%s5695_s2 + $0x3c0] sm:$0xff] }
 0x3ac   :  { %1415 = vmatpush.msrb.mxu1 %v2836_v6  ;;  %1490 = vmatpush.msra.mxu0 %v2852_v31  ;;  %v2886_v6 = vld [vmem:[%s5695_s2 + $0x2a0] sm:$0xff]  ;;  %v2943_v31 = vld [vmem:[%s5695_s2 + $0x468] sm:$0xff] }
 0x3ad   :  { %1558 = vmatpush.msra.mxu3 %v2877_v8  ;;  %1676 = vmatpush.msrb.mxu2 %v2893_v21  ;;  %v2891_v8 = vld [vmem:[%s5695_s2 + $0x2c8] sm:$0xff]  ;;  %v2884_v21 = vld [vmem:[%s5695_s2 + $0x290] sm:$0xff] }
 0x3ae   :  { %1416 = vmatpush.msrb.mxu1 %v2835_v54  ;;  %1491 = vmatpush.msra.mxu0 %v2851_v51  ;;  %v2885_v54 = vld [vmem:[%s5695_s2 + $0x298] sm:$0xff] }
 0x3af   :  { %1559 = vmatpush.msra.mxu3 %v2876_v28  ;;  %1677 = vmatpush.msrb.mxu2 %v2892_v25  ;;  %v2905_v51 = vld [vmem:[%s5695_s2 + $0x338] sm:$0xff] }
 0x3b0   :  { %1417 = vmatpush.msrb.mxu1 %v2834_v50  ;;  %1492 = vmatpush.msra.mxu0 %v2850_v16  ;;  %v2941_v50 = vld [vmem:[%s5695_s2 + $0x458] sm:$0xff] }
 0x3b1   :  { %1560 = vmatpush.msra.mxu3 %v2875_v12  ;;  %1678 = vmatpush.msrb.mxu2 %v2891_v8  ;;  %v2909_v12 = vld [vmem:[%s5695_s2 + $0x358] sm:$0xff]  ;;  %v2883_v8 = vld [vmem:[%s5695_s2 + $0x288] sm:$0xff] }
 0x3b2   :  { %3220 = vrot.lane.b32.xlu1 %v3214_v46, %s3320_s18  ;;  %3195 = vrot.lane.b32.xlu2 %v3214_v46, %s3321_s19 }
 0x3b3   :  { %3215 = vrot.lane.b32.xlu0 %v3214_v46, %s3322_s20  ;;  %1561 = vmatpush.msra.mxu3 %v2874_v15  ;;  %v2913_v46 = vld [vmem:[%s5695_s2 + $0x378] sm:$0xff]  ;;  %v2908_v15 = vld [vmem:[%s5695_s2 + $0x350] sm:$0xff] }
 0x3b4   :  { %1746 = vmatpush.msra.mxu1 %v2913_v46  ;;  %1820 = vmatpush.msrb.mxu0 %v2929_v36 }
 0x3b5   :  { %1562 = vmatpush.msra.mxu3 %v2873_v44  ;;  %1679 = vmatpush.msrb.mxu2 %v2890_v19  ;;  %v2907_v44 = vld [vmem:[%s5695_s2 + $0x348] sm:$0xff] }
 0x3b6   :  { %1747 = vmatpush.msra.mxu1 %v2912_v63  ;;  %1821 = vmatpush.msrb.mxu0 %v2928_v62  ;;  %v2939_v19 = vld [vmem:[%s5695_s2 + $0x448] sm:$0xff] }
 0x3b7   :  { %1563 = vmatpush.msra.mxu3 %v2872_v7  ;;  %1680 = vmatpush.msrb.mxu2 %v2889_v38  ;;  %v2906_v7 = vld [vmem:[%s5695_s2 + $0x340] sm:$0xff]  ;;  %v2901_v38 = vld [vmem:[%s5695_s2 + $0x318] sm:$0xff] }
 0x3b8   :  { %1748 = vmatpush.msra.mxu1 %v2911_v29  ;;  %1822 = vmatpush.msrb.mxu0 %v2927_v52  ;;  %v2919_v52 = vld [vmem:[%s5695_s2 + $0x3a8] sm:$0xff] }
 0x3b9   :  { %1564 = vmatpush.msra.mxu3 %v2871_v35  ;;  %1681 = vmatpush.msrb.mxu2 %v2888_v60  ;;  %v2921_v35 = vld [vmem:[%s5695_s2 + $0x3b8] sm:$0xff] }
 0x3ba   :  { %3235 = vrot.lane.b32.xlu1 %v3229_v2, %s3320_s18  ;;  %3210 = vrot.lane.b32.xlu2 %v3229_v2, %s3321_s19 }
 0x3bb   :  { %3230 = vrot.lane.b32.xlu0 %v3229_v2, %s3322_s20  ;;  %1565 = vmatpush.msra.mxu3 %v2870_v41  ;;  %v2926_v2 = vld [vmem:[%s5695_s2 + $0x3e0] sm:$0xff] }
 0x3bc   :  { %1749 = vmatpush.msra.mxu1 %v2910_v30  ;;  %1823 = vmatpush.msrb.mxu0 %v2926_v2  ;;  %v2902_v30 = vld [vmem:[%s5695_s2 + $0x320] sm:$0xff] }
 0x3bd   :  { %1566 = vmatpush.msra.mxu3 %v2869_v53  ;;  %1682 = vmatpush.msrb.mxu2 %v2887_v33  ;;  %v2937_v33 = vld [vmem:[%s5695_s2 + $0x438] sm:$0xff] }
 0x3be   :  { %1750 = vmatpush.msra.mxu1 %v2909_v12  ;;  %1824 = vmatpush.msrb.mxu0 %v2925_v5  ;;  %v2961_v12 = vld [vmem:[%s5695_s2 + $0x4f8] sm:$0xff] }
 0x3bf   :  { %1567 = vmatpush.msra.mxu3 %v2868_v17  ;;  %1683 = vmatpush.msrb.mxu2 %v2886_v6  ;;  %v2959_v6 = vld [vmem:[%s5695_s2 + $0x4e8] sm:$0xff] }
 0x3c0   :  { %1751 = vmatpush.msra.mxu1 %v2908_v15  ;;  %1825 = vmatpush.msrb.mxu0 %v2924_v47  ;;  %v2917_v47 = vld [vmem:[%s5695_s2 + $0x398] sm:$0xff] }
 0x3c1   :  { %1568 = vmatpush.msra.mxu3 %v2867_v3  ;;  %1684 = vmatpush.msrb.mxu2 %v2885_v54  ;;  %v2903_v3 = vld [vmem:[%s5695_s2 + $0x328] sm:$0xff] }
 0x3c2   :  { %3250 = vrot.lane.b32.xlu1 %v3249_v43, %s3320_s18  ;;  %3225 = vrot.lane.b32.xlu2 %v3249_v43, %s3321_s19 }
 0x3c3   :  { %3245 = vrot.lane.b32.xlu0 %v4543_v56, %s3321_s19  ;;  %1752 = vmatpush.msra.mxu1 %v2907_v44  ;;  %v2900_v44 = vld [vmem:[%s5695_s2 + $0x310] sm:$0xff] }
 0x3c4   :  { %v3071_v55 = vpop.permute.xlu2 %3070  ;;  %1685 = vmatpush.msrb.mxu2 %v2884_v21 }
 0x3c5   :  { %v3073_v1 = vunpack.i.h.bf16 %v3071_v55  ;;  %v3072_v40 = vunpack.i.l.bf16 %v3071_v55  ;;  %1753 = vmatpush.msra.mxu1 %v2906_v7  ;;  %v2904_v55 = vld [vmem:[%s5695_s2 + $0x330] sm:$0xff]  ;;  %v2935_v7 = vld [vmem:[%s5695_s2 + $0x428] sm:$0xff] }
 0x3c6   :  { %1686 = vmatpush.msrb.mxu2 %v2883_v8 }
 0x3c7   :  { %v1294_v34 = vsel %vm1293_vm6, %v3072_v40, %v3073_v1  ;;  %1754 = vmatpush.msra.mxu1 %v2905_v51 }
 0x3c8   :  { %1318 = vmatmul.f32.vlgmr.msrb.gmra.mxu3 %v1294_v34  ;;  %v2940_v34 = vld [vmem:[%s5695_s2 + $0x450] sm:$0xff] }
 0x3c9   :  { %1755 = vmatpush.msra.mxu1 %v2904_v55  ;;  %v2934_v55 = vld [vmem:[%s5695_s2 + $0x420] sm:$0xff] }
 0x3ca   :  { %3265 = vrot.lane.b32.xlu1 %v4543_v56, %s3320_s18  ;;  %3240 = vrot.lane.b32.xlu2 %v3249_v43, %s3322_s20  ;;  %v2942_v43 = vld [vmem:[%s5695_s2 + $0x460] sm:$0xff] }
 0x3cb   :  { %3260 = vrot.lane.b32.xlu0 %v4543_v56, %s3322_s20  ;;  %v2866_v56 = vld [vmem:[%s5695_s2 + $0x200] sm:$0xff]  ;;  %1756 = vmatpush.msra.mxu1 %v2903_v3  ;;  %v2975_v3 = vld [vmem:[%s5695_s2 + $0x568] sm:$0xff] }
 0x3cc   :  { %v3086_v28 = vpop.permute.xlu2 %3085  ;;  %1569 = vmatpush.msra.mxu3 %v2866_v56  ;;  %v2918_v56 = vld [vmem:[%s5695_s2 + $0x3a0] sm:$0xff] }
 0x3cd   :  { %v3088_v20 = vunpack.i.h.bf16 %v3086_v28  ;;  %v3087_v4 = vunpack.i.l.bf16 %v3086_v28  ;;  %v2882_v28 = vld [vmem:[%s5695_s2 + $0x280] sm:$0xff]  ;;  %1757 = vmatpush.msra.mxu1 %v2902_v30 }
 0x3ce   :  { %1893 = vmatpush.msrb.mxu3 %v2945_v10  ;;  %1687 = vmatpush.msrb.mxu2 %v2882_v28 }
 0x3cf   :  { %v1295_v27 = vsel %vm1293_vm6, %v3087_v4, %v3088_v20  ;;  %v2938_v20 = vld [vmem:[%s5695_s2 + $0x440] sm:$0xff]  ;;  %1758 = vmatpush.msra.mxu1 %v2901_v38 }
 0x3d0   :  { %1321 = vmatmul.f32.gmra.mxu3 %v1295_v27  ;;  %2003 = vmatpush.msra.mxu2 %v2961_v12  ;;  %v2954_v38 = vld [vmem:[%s5695_s2 + $0x4c0] sm:$0xff] }
 0x3d1   :  { %1894 = vmatpush.msrb.mxu3 %v2944_v57  ;;  %1759 = vmatpush.msra.mxu1 %v2900_v44 }
 0x3d2   :  { %3280 = vrot.lane.b32.xlu1 %v4609_v13, %s3320_s18  ;;  %3255 = vrot.lane.b32.xlu2 %v4609_v13, %s3321_s19 }
 0x3d3   :  { %3275 = vrot.lane.b32.xlu0 %v4609_v13, %s3322_s20  ;;  %v2923_v13 = vld [vmem:[%s5695_s2 + $0x3c8] sm:$0xff]  ;;  %1895 = vmatpush.msrb.mxu3 %v2943_v31 }
 0x3d4   :  { %v3091_v32 = vpop.permute.xlu2 %3090  ;;  %1826 = vmatpush.msrb.mxu0 %v2923_v13  ;;  %v2960_v13 = vld [vmem:[%s5695_s2 + $0x4f0] sm:$0xff]  ;;  %v2915_v31 = vld [vmem:[%s5695_s2 + $0x388] sm:$0xff] }
 0x3d5   :  { %v3093_v45 = vunpack.i.h.bf16 %v3091_v32  ;;  %v3092_v14 = vunpack.i.l.bf16 %v3091_v32  ;;  %1896 = vmatpush.msrb.mxu3 %v2942_v43  ;;  %2004 = vmatpush.msra.mxu2 %v2960_v13  ;;  %v2958_v43 = vld [vmem:[%s5695_s2 + $0x4e0] sm:$0xff] }
 0x3d6   :  { %1827 = vmatpush.msrb.mxu0 %v2922_v48  ;;  %v2898_v48 = vld [vmem:[%s5695_s2 + $0x300] sm:$0xff] }
 0x3d7   :  { %v1296_v59 = vsel %vm1293_vm6, %v3092_v14, %v3093_v45  ;;  %1897 = vmatpush.msrb.mxu3 %v2941_v50  ;;  %v2916_v45 = vld [vmem:[%s5695_s2 + $0x390] sm:$0xff]  ;;  %2005 = vmatpush.msra.mxu2 %v2959_v6 }
 0x3d8   :  { %1324 = vmatmul.f32.gmra.mxu3 %v1296_v59  ;;  %1828 = vmatpush.msrb.mxu0 %v2921_v35  ;;  %v2936_v14 = vld [vmem:[%s5695_s2 + $0x430] sm:$0xff] }
 0x3d9   :  { %1898 = vmatpush.msrb.mxu3 %v2940_v34  ;;  %2006 = vmatpush.msra.mxu2 %v2958_v43  ;;  %v2955_v34 = vld [vmem:[%s5695_s2 + $0x4c8] sm:$0xff]  ;;  %v3008_v43 = vld [vmem:[%s5695_s2 + $0x670] sm:$0xff] }
 0x3da   :  { %3295 = vrot.lane.b32.xlu1 %v4566_v61, %s3320_s18  ;;  %3270 = vrot.lane.b32.xlu2 %v4566_v61, %s3321_s19 }
 0x3db   :  { %3290 = vrot.lane.b32.xlu0 %v4566_v61, %s3322_s20  ;;  %v2920_v61 = vld [vmem:[%s5695_s2 + $0x3b0] sm:$0xff]  ;;  %1899 = vmatpush.msrb.mxu3 %v2939_v19 }
 0x3dc   :  { %v3081_v16 = vpop.permute.xlu1 %3080  ;;  %v3106_v41 = vpop.permute.xlu2 %3105  ;;  %1829 = vmatpush.msrb.mxu0 %v2920_v61  ;;  %v2957_v61 = vld [vmem:[%s5695_s2 + $0x4d8] sm:$0xff] }
 0x3dd   :  { %v3083_v46 = vunpack.i.h.bf16 %v3081_v16  ;;  %v3082_v36 = vunpack.i.l.bf16 %v3081_v16  ;;  %v3108_v1 = vunpack.i.h.bf16 %v3106_v41  ;;  %v3107_v40 = vunpack.i.l.bf16 %v3106_v41  ;;  %v3076_v25 = vpop.permute.xlu0 %3075  ;;  %1900 = vmatpush.msrb.mxu3 %v2938_v20  ;;  %v2914_v16 = vld [vmem:[%s5695_s2 + $0x380] sm:$0xff]  ;;  %2007 = vmatpush.msra.mxu2 %v2957_v61 }
 0x3de   :  { %v3078_v53 = vunpack.i.h.bf16 %v3076_v25  ;;  %v3077_v63 = vunpack.i.l.bf16 %v3076_v25  ;;  %1830 = vmatpush.msrb.mxu0 %v2919_v52  ;;  %v2956_v25 = vld [vmem:[%s5695_s2 + $0x4d0] sm:$0xff]  ;;  %v2991_v52 = vld [vmem:[%s5695_s2 + $0x5e8] sm:$0xff]  ;;  %v3006_v61 = vld [vmem:[%s5695_s2 + $0x660] sm:$0xff] }
 0x3df   :  { %v1297_v17 = vsel %vm1293_vm6, %v3107_v40, %v3108_v1  ;;  %v1469_v62 = vsel %vm1468_vm0, %v3082_v36, %v3083_v46  ;;  %1901 = vmatpush.msrb.mxu3 %v2937_v33  ;;  %v2977_v36 = vld [vmem:[%s5695_s2 + $0x578] sm:$0xff]  ;;  %2008 = vmatpush.msra.mxu2 %v2956_v25  ;;  %v2952_v33 = vld [vmem:[%s5695_s2 + $0x4b0] sm:$0xff] }
 0x3e0   :  { %1327 = vmatmul.f32.gmra.mxu3 %v1297_v17  ;;  %v1394_v29 = vsel %vm1393_vm15, %v3077_v63, %v3078_v53  ;;  %1493 = vmatmul.f32.vlgmr.msra.gmra.mxu0 %v1469_v62  ;;  %v2993_v1 = vld [vmem:[%s5695_s2 + $0x5f8] sm:$0xff]  ;;  %v2992_v53 = vld [vmem:[%s5695_s2 + $0x5f0] sm:$0xff] }
 0x3e1   :  { %1418 = vmatmul.f32.vlgmr.msrb.gmra.mxu1 %v1394_v29  ;;  %1831 = vmatpush.msrb.mxu0 %v2918_v56  ;;  %v2933_v40 = vld [vmem:[%s5695_s2 + $0x418] sm:$0xff]  ;;  %v2932_v63 = vld [vmem:[%s5695_s2 + $0x410] sm:$0xff] }
 0x3e2   :  { %3285 = vrot.lane.b32.xlu2 %v4635_v49, %s3321_s19  ;;  %1902 = vmatpush.msrb.mxu3 %v2936_v14  ;;  %v2972_v14 = vld [vmem:[%s5695_s2 + $0x550] sm:$0xff] }
 0x3e3   :  { %3305 = vrot.lane.b32.xlu0 %v4635_v49, %s3320_s18  ;;  %1832 = vmatpush.msrb.mxu0 %v2917_v47  ;;  %v2989_v47 = vld [vmem:[%s5695_s2 + $0x5d8] sm:$0xff] }
 0x3e4   :  { %v3101_v4 = vpop.permute.xlu1 %3100  ;;  %v5039_v2 = vpop.permute.xlu2 %3120  ;;  %1903 = vmatpush.msrb.mxu3 %v2935_v7  ;;  %2009 = vmatpush.msra.mxu2 %v2955_v34 }
 0x3e5   :  { %v3103_v27 = vunpack.i.h.bf16 %v3101_v4  ;;  %v3102_v5 = vunpack.i.l.bf16 %v3101_v4  ;;  %v3096_v10 = vpop.permute.xlu0 %3095  ;;  %1833 = vmatpush.msrb.mxu0 %v2916_v45  ;;  %v3123_v17 = vunpack.i.h.bf16 %v5039_v2  ;;  %v3122_v62 = vunpack.i.l.bf16 %v5039_v2  ;;  %v2931_v2 = vld [vmem:[%s5695_s2 + $0x408] sm:$0xff] }
 0x3e6   :  { %v3098_v60 = vunpack.i.h.bf16 %v3096_v10  ;;  %v3097_v15 = vunpack.i.l.bf16 %v3096_v10  ;;  %1904 = vmatpush.msrb.mxu3 %v2934_v55  ;;  %v2990_v10 = vld [vmem:[%s5695_s2 + $0x5e0] sm:$0xff]  ;;  %2010 = vmatpush.msra.mxu2 %v2954_v38  ;;  %v3003_v38 = vld [vmem:[%s5695_s2 + $0x648] sm:$0xff] }
 0x3e7   :  { %v1470_v57 = vsel %vm1468_vm0, %v3102_v5, %v3103_v27  ;;  %1834 = vmatpush.msrb.mxu0 %v2915_v31  ;;  %v1397_v12 = vsel %vm1393_vm15, %v3122_v62, %v3123_v17  ;;  %v2974_v5 = vld [vmem:[%s5695_s2 + $0x560] sm:$0xff] }
 0x3e8   :  { %v1395_v32 = vsel %vm1393_vm15, %v3097_v15, %v3098_v60  ;;  %1496 = vmatmul.f32.gmra.mxu0 %v1470_v57  ;;  %1570 = vmatmul.f32.vlgmr.msra.gmra.mxu3 %v4517_v18  ;;  %v2899_v18 = vld [vmem:[%s5695_s2 + $0x308] sm:$0xff]  ;;  %v2930_v60 = vld [vmem:[%s5695_s2 + $0x400] sm:$0xff]  ;;  %v2973_v15 = vld [vmem:[%s5695_s2 + $0x558] sm:$0xff] }
 0x3e9   :  { %1421 = vmatmul.f32.gmra.mxu1 %v1395_v32  ;;  %1835 = vmatpush.msrb.mxu0 %v2914_v16  ;;  %v3009_v57 = vld [vmem:[%s5695_s2 + $0x678] sm:$0xff]  ;;  %v3007_v16 = vld [vmem:[%s5695_s2 + $0x668] sm:$0xff]  ;;  %v2986_v55 = vld [vmem:[%s5695_s2 + $0x5c0] sm:$0xff] }
 0x3ea   :  { %3300 = vrot.lane.b32.xlu2 %v4635_v49, %s3322_s20  ;;  %1760 = vmatpush.msra.mxu1 %v2899_v18  ;;  %v2988_v18 = vld [vmem:[%s5695_s2 + $0x5d0] sm:$0xff] }
 0x3eb   :  { %2151 = vmatpush.msra.mxu0 %v2993_v1  ;;  %1905 = vmatpush.msrb.mxu3 %v2933_v40 }
 0x3ec   :  { %v3116_v49 = vpop.permute.xlu1 %3115  ;;  %v5082_v59 = vpop.permute.xlu2 %3135  ;;  %1761 = vmatpush.msra.mxu1 %v2898_v48 }
 0x3ed   :  { %v3118_v54 = vunpack.i.h.bf16 %v3116_v49  ;;  %v3117_v51 = vunpack.i.l.bf16 %v3116_v49  ;;  %v3111_v35 = vpop.permute.xlu0 %3110  ;;  %2152 = vmatpush.msra.mxu0 %v2992_v53  ;;  %1906 = vmatpush.msrb.mxu3 %v2932_v63  ;;  %v3138_v32 = vunpack.i.h.bf16 %v5082_v59  ;;  %v3137_v44 = vunpack.i.l.bf16 %v5082_v59  ;;  %v2985_v53 = vld [vmem:[%s5695_s2 + $0x5b8] sm:$0xff] }
 0x3ee   :  { %v3113_v50 = vunpack.i.h.bf16 %v3111_v35  ;;  %v3112_v21 = vunpack.i.l.bf16 %v3111_v35  ;;  %2077 = vmatpush.msrb.mxu1 %v2977_v36 }
 0x3ef   :  { %v1471_v41 = vsel %vm1468_vm0, %v3117_v51, %v3118_v54  ;;  %2153 = vmatpush.msra.mxu0 %v2991_v52  ;;  %1907 = vmatpush.msrb.mxu3 %v2931_v2  ;;  %v2951_v54 = vld [vmem:[%s5695_s2 + $0x4a8] sm:$0xff]  ;;  %v1665_v51 = vsel %vm1293_vm6, %v3137_v44, %v3138_v32  ;;  %v2948_v52 = vld [vmem:[%s5695_s2 + $0x490] sm:$0xff] }
 0x3f0   :  { %v1396_v46 = vsel %vm1393_vm15, %v3112_v21, %v3113_v50  ;;  %1499 = vmatmul.f32.gmra.mxu0 %v1471_v41  ;;  %1573 = vmatmul.f32.gmra.mxu3 %v4575_v11  ;;  %v2976_v11 = vld [vmem:[%s5695_s2 + $0x570] sm:$0xff]  ;;  %v2971_v50 = vld [vmem:[%s5695_s2 + $0x548] sm:$0xff]  ;;  %v2970_v41 = vld [vmem:[%s5695_s2 + $0x540] sm:$0xff] }
 0x3f1   :  { %1424 = vmatmul.f32.gmra.mxu1 %v1396_v46  ;;  %2154 = vmatpush.msra.mxu0 %v2990_v10  ;;  %v2987_v21 = vld [vmem:[%s5695_s2 + $0x5c8] sm:$0xff]  ;;  %v2949_v46 = vld [vmem:[%s5695_s2 + $0x498] sm:$0xff] }
 0x3f2   :  { %2078 = vmatpush.msrb.mxu1 %v2976_v11  ;;  %1908 = vmatpush.msrb.mxu3 %v2930_v60  ;;  %v2969_v11 = vld [vmem:[%s5695_s2 + $0x538] sm:$0xff]  ;;  %v2983_v2 = vld [vmem:[%s5695_s2 + $0x5a8] sm:$0xff]  ;;  %v2966_v60 = vld [vmem:[%s5695_s2 + $0x520] sm:$0xff] }
 0x3f3   :  { %2155 = vmatpush.msra.mxu0 %v2989_v47 }
 0x3f4   :  { %v3126_v8 = vpop.permute.xlu1 %3125  ;;  %v5128_v29 = vpop.permute.xlu2 %3150  ;;  %2079 = vmatpush.msrb.mxu1 %v2975_v3  ;;  %2224 = vmatpush.msra.mxu3 %v3009_v57  ;;  %v3005_v3 = vld [vmem:[%s5695_s2 + $0x658] sm:$0xff] }
 0x3f5   :  { %v3128_v19 = vunpack.i.h.bf16 %v3126_v8  ;;  %v3127_v28 = vunpack.i.l.bf16 %v3126_v8  ;;  %v3131_v30 = vpop.permute.xlu0 %3130  ;;  %2156 = vmatpush.msra.mxu0 %v2988_v18  ;;  %v3153_v36 = vunpack.i.h.bf16 %v5128_v29  ;;  %v3152_v1 = vunpack.i.l.bf16 %v5128_v29 }
 0x3f6   :  { %v3133_v56 = vunpack.i.h.bf16 %v3131_v30  ;;  %v3132_v20 = vunpack.i.l.bf16 %v3131_v30  ;;  %2080 = vmatpush.msrb.mxu1 %v2974_v5  ;;  %2225 = vmatpush.msra.mxu3 %v3008_v43  ;;  %v2968_v30 = vld [vmem:[%s5695_s2 + $0x530] sm:$0xff] }
 0x3f7   :  { %v1472_v4 = vsel %vm1468_vm0, %v3127_v28, %v3128_v19  ;;  %2157 = vmatpush.msra.mxu0 %v2987_v21  ;;  %v1666_v19 = vsel %vm1293_vm6, %v3152_v1, %v3153_v36  ;;  %v3000_v43 = vld [vmem:[%s5695_s2 + $0x630] sm:$0xff]  ;;  %v3023_v21 = vld [vmem:[%s5695_s2 + $0x6e8] sm:$0xff] }
 0x3f8   :  { %1502 = vmatmul.f32.gmra.mxu0 %v1472_v4  ;;  %1576 = vmatmul.f32.gmra.mxu3 %v4564_v22  ;;  %v1664_v27 = vsel %vm1293_vm6, %v3132_v20, %v3133_v56  ;;  %v2953_v22 = vld [vmem:[%s5695_s2 + $0x4b8] sm:$0xff]  ;;  %v2984_v56 = vld [vmem:[%s5695_s2 + $0x5b0] sm:$0xff]  ;;  %v2947_v4 = vld [vmem:[%s5695_s2 + $0x488] sm:$0xff] }
 0x3f9   :  { %1427 = vmatmul.f32.gmra.mxu1 %v1397_v12  ;;  %1688 = vmatmul.f32.vlgmr.msrb.gmra.mxu2 %v1664_v27  ;;  %v3004_v20 = vld [vmem:[%s5695_s2 + $0x650] sm:$0xff]  ;;  %v2946_v12 = vld [vmem:[%s5695_s2 + $0x480] sm:$0xff] }
 0x3fa   :  { %2011 = vmatpush.msra.mxu2 %v2953_v22  ;;  %2081 = vmatpush.msrb.mxu1 %v2973_v15  ;;  %v2982_v22 = vld [vmem:[%s5695_s2 + $0x5a0] sm:$0xff] }
 0x3fb   :  { %2226 = vmatpush.msra.mxu3 %v3007_v16  ;;  %2158 = vmatpush.msra.mxu0 %v2986_v55  ;;  %v2979_v16 = vld [vmem:[%s5695_s2 + $0x588] sm:$0xff] }
 0x3fc   :  { %v3146_v13 = vpop.permute.xlu1 %3145  ;;  %v5172_v45 = vpop.permute.xlu2 %3165  ;;  %2012 = vmatpush.msra.mxu2 %v2952_v33  ;;  %2082 = vmatpush.msrb.mxu1 %v2972_v14  ;;  %v2965_v14 = vld [vmem:[%s5695_s2 + $0x518] sm:$0xff] }
 0x3fd   :  { %v3148_v6 = vunpack.i.h.bf16 %v3146_v13  ;;  %v3147_v31 = vunpack.i.l.bf16 %v3146_v13  ;;  %v3141_v7 = vpop.permute.xlu0 %3140  ;;  %2227 = vmatpush.msra.mxu3 %v3006_v61  ;;  %2159 = vmatpush.msra.mxu0 %v2985_v53  ;;  %v3168_v27 = vunpack.i.h.bf16 %v5172_v45  ;;  %v3167_v5 = vunpack.i.l.bf16 %v5172_v45  ;;  %v3002_v45 = vld [vmem:[%s5695_s2 + $0x640] sm:$0xff] }
 0x3fe   :  { %v3143_v49 = vunpack.i.h.bf16 %v3141_v7  ;;  %v3142_v59 = vunpack.i.l.bf16 %v3141_v7  ;;  %2013 = vmatpush.msra.mxu2 %v2951_v54  ;;  %2083 = vmatpush.msrb.mxu1 %v2971_v50  ;;  %v2981_v7 = vld [vmem:[%s5695_s2 + $0x598] sm:$0xff]  ;;  %v2963_v54 = vld [vmem:[%s5695_s2 + $0x508] sm:$0xff] }
 0x3ff   :  { %v1812_v48 = vsel %vm1468_vm0, %v3147_v31, %v3148_v6  ;;  %2228 = vmatpush.msra.mxu3 %v3005_v3  ;;  %2160 = vmatpush.msra.mxu0 %v2984_v56  ;;  %v1667_v18 = vsel %vm1293_vm6, %v3167_v5, %v3168_v27  ;;  %v3025_v31 = vld [vmem:[%s5695_s2 + $0x6f8] sm:$0xff]  ;;  %v3040_v3 = vld [vmem:[%s5695_s2 + $0x770] sm:$0xff]  ;;  %v3019_v5 = vld [vmem:[%s5695_s2 + $0x6c8] sm:$0xff] }
 0x400   :  { %1579 = vmatmul.f32.gmra.mxu3 %v4613_v37  ;;  %v1738_v35 = vsel %vm1393_vm15, %v3142_v59, %v3143_v49  ;;  %1836 = vmatmul.f32.vlgmr.msrb.gmra.mxu0 %v1812_v48  ;;  %v2950_v37 = vld [vmem:[%s5695_s2 + $0x4a0] sm:$0xff]  ;;  %v3001_v49 = vld [vmem:[%s5695_s2 + $0x638] sm:$0xff]  ;;  %v2964_v59 = vld [vmem:[%s5695_s2 + $0x510] sm:$0xff] }
 0x401   :  { %1691 = vmatmul.f32.gmra.mxu2 %v1665_v51  ;;  %1762 = vmatmul.f32.vlgmr.msra.gmra.mxu1 %v1738_v35  ;;  %v2980_v48 = vld [vmem:[%s5695_s2 + $0x590] sm:$0xff] }
 0x402   :  { %2014 = vmatpush.msra.mxu2 %v2950_v37  ;;  %2084 = vmatpush.msrb.mxu1 %v2970_v41  ;;  %v3056_v56 = vld [vmem:[%s5695_s2 + $0x7f0] sm:$0xff] }
 0x403   :  { %2229 = vmatpush.msra.mxu3 %v3004_v20  ;;  %2161 = vmatpush.msra.mxu0 %v2983_v2  ;;  %v2996_v27 = vld [vmem:[%s5695_s2 + $0x610] sm:$0xff] }
 0x404   :  { %v3161_v40 = vpop.permute.xlu1 %3160  ;;  %v5216_v25 = vpop.permute.xlu2 %3180  ;;  %2015 = vmatpush.msra.mxu2 %v2949_v46  ;;  %2085 = vmatpush.msrb.mxu1 %v2969_v11 }
 0x405   :  { %v3163_v63 = vunpack.i.h.bf16 %v3161_v40  ;;  %v3162_v34 = vunpack.i.l.bf16 %v3161_v40  ;;  %v3156_v17 = vpop.permute.xlu0 %3155  ;;  %2230 = vmatpush.msra.mxu3 %v3003_v38  ;;  %2162 = vmatpush.msra.mxu0 %v2982_v22  ;;  %v3183_v51 = vunpack.i.h.bf16 %v5216_v25  ;;  %v3182_v35 = vunpack.i.l.bf16 %v5216_v25  ;;  %v2999_v40 = vld [vmem:[%s5695_s2 + $0x628] sm:$0xff]  ;;  %v2962_v25 = vld [vmem:[%s5695_s2 + $0x500] sm:$0xff] }
 0x406   :  { %v3158_v62 = vunpack.i.h.bf16 %v3156_v17  ;;  %v3157_v8 = vunpack.i.l.bf16 %v3156_v17  ;;  %2016 = vmatpush.msra.mxu2 %v2948_v52  ;;  %2086 = vmatpush.msrb.mxu1 %v2968_v30  ;;  %v2998_v17 = vld [vmem:[%s5695_s2 + $0x620] sm:$0xff]  ;;  %v3020_v30 = vld [vmem:[%s5695_s2 + $0x6d0] sm:$0xff]  ;;  %v3039_v22 = vld [vmem:[%s5695_s2 + $0x768] sm:$0xff] }
 0x407   :  { %v1813_v29 = vsel %vm1468_vm0, %v3162_v34, %v3163_v63  ;;  %2231 = vmatpush.msra.mxu3 %v3002_v45  ;;  %2163 = vmatpush.msra.mxu0 %v2981_v7  ;;  %v1741_v11 = vsel %vm1393_vm15, %v3182_v35, %v3183_v51  ;;  %v3022_v63 = vld [vmem:[%s5695_s2 + $0x6e0] sm:$0xff]  ;;  %v3036_v51 = vld [vmem:[%s5695_s2 + $0x750] sm:$0xff] }
 0x408   :  { %v1739_v28 = vsel %vm1393_vm15, %v3157_v8, %v3158_v62  ;;  %1839 = vmatmul.f32.gmra.mxu0 %v1813_v29  ;;  %1909 = vmatmul.f32.vlgmr.msrb.gmra.mxu3 %v4521_v58  ;;  %v2967_v58 = vld [vmem:[%s5695_s2 + $0x528] sm:$0xff]  ;;  %v2978_v34 = vld [vmem:[%s5695_s2 + $0x580] sm:$0xff]  ;;  %v3021_v62 = vld [vmem:[%s5695_s2 + $0x6d8] sm:$0xff] }
 0x409   :  { %1694 = vmatmul.f32.gmra.mxu2 %v1666_v19  ;;  %1765 = vmatmul.f32.gmra.mxu1 %v1739_v28  ;;  %v3057_v8 = vld [vmem:[%s5695_s2 + $0x7f8] sm:$0xff] }
 0x40a   :  { %2017 = vmatpush.msra.mxu2 %v2947_v4  ;;  %2087 = vmatpush.msrb.mxu1 %v2967_v58  ;;  %v2997_v29 = vld [vmem:[%s5695_s2 + $0x618] sm:$0xff] }
 0x40b   :  { %2232 = vmatpush.msra.mxu3 %v3001_v49  ;;  %2164 = vmatpush.msra.mxu0 %v2980_v48 }
 0x40c   :  { %v3176_v10 = vpop.permute.xlu1 %3175  ;;  %v5266_v57 = vpop.permute.xlu2 %3195  ;;  %2018 = vmatpush.msra.mxu2 %v2946_v12  ;;  %2088 = vmatpush.msrb.mxu1 %v2966_v60 }
 0x40d   :  { %v3178_v15 = vunpack.i.h.bf16 %v3176_v10  ;;  %v3177_v47 = vunpack.i.l.bf16 %v3176_v10  ;;  %v3171_v33 = vpop.permute.xlu0 %3170  ;;  %2233 = vmatpush.msra.mxu3 %v3000_v43  ;;  %2165 = vmatpush.msra.mxu0 %v2979_v16  ;;  %v3198_v52 = vunpack.i.h.bf16 %v5266_v57  ;;  %v3197_v19 = vunpack.i.l.bf16 %v5266_v57  ;;  %v3018_v57 = vld [vmem:[%s5695_s2 + $0x6c0] sm:$0xff]  ;;  %v3015_v16 = vld [vmem:[%s5695_s2 + $0x6a8] sm:$0xff] }
 0x40e   :  { %v3173_v32 = vunpack.i.h.bf16 %v3171_v33  ;;  %v3172_v44 = vunpack.i.l.bf16 %v3171_v33  ;;  %2089 = vmatpush.msrb.mxu1 %v2965_v14  ;;  %2334 = vmatpush.msrb.mxu2 %v3025_v31  ;;  %v3038_v33 = vld [vmem:[%s5695_s2 + $0x760] sm:$0xff]  ;;  %v3053_v31 = vld [vmem:[%s5695_s2 + $0x7d8] sm:$0xff] }
 0x40f   :  { %v1814_v13 = vsel %vm1468_vm0, %v3177_v47, %v3178_v15  ;;  %2234 = vmatpush.msra.mxu3 %v2999_v40  ;;  %2166 = vmatpush.msra.mxu0 %v2978_v34  ;;  %v1996_v10 = vsel %vm1293_vm6, %v3197_v19, %v3198_v52  ;;  %v3055_v15 = vld [vmem:[%s5695_s2 + $0x7e8] sm:$0xff]  ;;  %v3050_v40 = vld [vmem:[%s5695_s2 + $0x7c0] sm:$0xff]  ;;  %v3012_v52 = vld [vmem:[%s5695_s2 + $0x690] sm:$0xff] }
 0x410   :  { %v1740_v6 = vsel %vm1393_vm15, %v3172_v44, %v3173_v32  ;;  %1842 = vmatmul.f32.gmra.mxu0 %v1814_v13  ;;  %1912 = vmatmul.f32.gmra.mxu3 %v4580_v0  ;;  %v3024_v0 = vld [vmem:[%s5695_s2 + $0x6f0] sm:$0xff]  ;;  %v3054_v32 = vld [vmem:[%s5695_s2 + $0x7e0] sm:$0xff]  ;;  %v3017_v13 = vld [vmem:[%s5695_s2 + $0x6b8] sm:$0xff] }
 0x411   :  { %1697 = vmatmul.f32.gmra.mxu2 %v1667_v18  ;;  %1768 = vmatmul.f32.gmra.mxu1 %v1740_v6  ;;  %v2994_v44 = vld [vmem:[%s5695_s2 + $0x600] sm:$0xff]  ;;  %v3037_v6 = vld [vmem:[%s5695_s2 + $0x758] sm:$0xff]  ;;  %v3032_v19 = vld [vmem:[%s5695_s2 + $0x730] sm:$0xff] }
 0x412   :  { %2090 = vmatpush.msrb.mxu1 %v2964_v59  ;;  %2335 = vmatpush.msrb.mxu2 %v3024_v0 }
 0x413   :  { %2235 = vmatpush.msra.mxu3 %v2998_v17  ;;  %2482 = vmatpush.msrb.mxu0 %v3057_v8 }
 0x414   :  { %v3191_v50 = vpop.permute.xlu1 %3190  ;;  %2091 = vmatpush.msrb.mxu1 %v2963_v54  ;;  %v5310_v36 = vpop.permute.xlu2 %3210  ;;  %2336 = vmatpush.msrb.mxu2 %v3023_v21  ;;  %v3016_v54 = vld [vmem:[%s5695_s2 + $0x6b0] sm:$0xff] }
 0x415   :  { %v3193_v37 = vunpack.i.h.bf16 %v3191_v50  ;;  %v3192_v41 = vunpack.i.l.bf16 %v3191_v50  ;;  %v3186_v55 = vpop.permute.xlu0 %3185  ;;  %2236 = vmatpush.msra.mxu3 %v2997_v29  ;;  %2483 = vmatpush.msrb.mxu0 %v3056_v56  ;;  %v3213_v45 = vunpack.i.h.bf16 %v5310_v36  ;;  %v3212_v14 = vunpack.i.l.bf16 %v5310_v36  ;;  %v3052_v21 = vld [vmem:[%s5695_s2 + $0x7d0] sm:$0xff] }
 0x416   :  { %v3188_v61 = vunpack.i.h.bf16 %v3186_v55  ;;  %v3187_v46 = vunpack.i.l.bf16 %v3186_v55  ;;  %2092 = vmatpush.msrb.mxu1 %v2962_v25  ;;  %2337 = vmatpush.msrb.mxu2 %v3022_v63  ;;  %v3014_v55 = vld [vmem:[%s5695_s2 + $0x6a0] sm:$0xff] }
 0x417   :  { %v1815_v1 = vsel %vm1468_vm0, %v3192_v41, %v3193_v37  ;;  %2237 = vmatpush.msra.mxu3 %v2996_v27  ;;  %2484 = vmatpush.msrb.mxu0 %v3055_v15  ;;  %v1997_v35 = vsel %vm1293_vm6, %v3212_v14, %v3213_v45  ;;  %v3035_v37 = vld [vmem:[%s5695_s2 + $0x748] sm:$0xff]  ;;  %v3046_v15 = vld [vmem:[%s5695_s2 + $0x7a0] sm:$0xff] }
 0x418   :  { %1845 = vmatmul.f32.gmra.mxu0 %v1815_v1  ;;  %1915 = vmatmul.f32.gmra.mxu3 %v4584_v24  ;;  %v1995_v53 = vsel %vm1293_vm6, %v3187_v46, %v3188_v61  ;;  %v3041_v24 = vld [vmem:[%s5695_s2 + $0x778] sm:$0xff]  ;;  %v3034_v61 = vld [vmem:[%s5695_s2 + $0x740] sm:$0xff]  ;;  %v3027_v14 = vld [vmem:[%s5695_s2 + $0x708] sm:$0xff] }
 0x419   :  { %1771 = vmatmul.f32.gmra.mxu1 %v1741_v11  ;;  %2019 = vmatmul.f32.vlgmr.msra.gmra.mxu2 %v1995_v53 }
 0x41a   :  { %2408 = vmatpush.msra.mxu1 %v3041_v24  ;;  %2338 = vmatpush.msrb.mxu2 %v3021_v62  ;;  %v3013_v24 = vld [vmem:[%s5695_s2 + $0x698] sm:$0xff] }
 0x41b   :  { %2485 = vmatpush.msrb.mxu0 %v3054_v32  ;;  %v3033_v62 = vld [vmem:[%s5695_s2 + $0x738] sm:$0xff] }
 0x41c   :  { %v3206_v28 = vpop.permute.xlu1 %3205  ;;  %2409 = vmatpush.msra.mxu1 %v3040_v3  ;;  %2339 = vmatpush.msrb.mxu2 %v3020_v30  ;;  %v5370_v47 = vpop.permute.xlu2 %3225  ;;  %v3049_v3 = vld [vmem:[%s5695_s2 + $0x7b8] sm:$0xff]  ;;  %v3031_v30 = vld [vmem:[%s5695_s2 + $0x728] sm:$0xff] }
 0x41d   :  { %v3208_v20 = vunpack.i.h.bf16 %v3206_v28  ;;  %v3207_v4 = vunpack.i.l.bf16 %v3206_v28  ;;  %v3201_v58 = vpop.permute.xlu0 %3200  ;;  %2486 = vmatpush.msrb.mxu0 %v3053_v31  ;;  %v3228_v46 = vunpack.i.h.bf16 %v5370_v47  ;;  %v3227_v36 = vunpack.i.l.bf16 %v5370_v47  ;;  %v3011_v28 = vld [vmem:[%s5695_s2 + $0x688] sm:$0xff]  ;;  %v3045_v32 = vld [vmem:[%s5695_s2 + $0x798] sm:$0xff] }
 0x41e   :  { %v3203_v2 = vunpack.i.h.bf16 %v3201_v58  ;;  %v3202_v38 = vunpack.i.l.bf16 %v3201_v58  ;;  %2340 = vmatpush.msrb.mxu2 %v3019_v5  ;;  %2410 = vmatpush.msra.mxu1 %v3039_v22  ;;  %v3047_v58 = vld [vmem:[%s5695_s2 + $0x7a8] sm:$0xff]  ;;  %v3010_v5 = vld [vmem:[%s5695_s2 + $0x680] sm:$0xff] }
 0x41f   :  { %v2143_v12 = vsel %vm1468_vm0, %v3207_v4, %v3208_v20  ;;  %2487 = vmatpush.msrb.mxu0 %v3052_v21  ;;  %v1998_v8 = vsel %vm1293_vm6, %v3227_v36, %v3228_v46  ;;  %v3043_v31 = vld [vmem:[%s5695_s2 + $0x788] sm:$0xff] }
 0x420   :  { %1918 = vmatmul.f32.gmra.mxu3 %v4617_v23  ;;  %v2069_v60 = vsel %vm1393_vm15, %v3202_v38, %v3203_v2  ;;  %2167 = vmatmul.f32.vlgmr.msra.gmra.mxu0 %v2143_v12  ;;  %v2995_v23 = vld [vmem:[%s5695_s2 + $0x608] sm:$0xff] }
 0x421   :  { %2022 = vmatmul.f32.gmra.mxu2 %v1996_v10  ;;  %2093 = vmatmul.f32.vlgmr.msrb.gmra.mxu1 %v2069_v60  ;;  %v3030_v10 = vld [vmem:[%s5695_s2 + $0x720] sm:$0xff] }
 0x422   :  { %2238 = vmatpush.msra.mxu3 %v2995_v23  ;;  %2341 = vmatpush.msrb.mxu2 %v3018_v57 }
 0x423   :  { %2411 = vmatpush.msra.mxu1 %v3038_v33  ;;  %v3029_v33 = vld [vmem:[%s5695_s2 + $0x718] sm:$0xff] }
 0x424   :  { %v3221_v18 = vpop.permute.xlu1 %3220  ;;  %2239 = vmatpush.msra.mxu3 %v2994_v44  ;;  %2342 = vmatpush.msrb.mxu2 %v3017_v13  ;;  %v3241_v41 = vpop.permute.xlu2 %3240  ;;  %v3028_v44 = vld [vmem:[%s5695_s2 + $0x710] sm:$0xff] }
 0x425   :  { %v3223_v7 = vunpack.i.h.bf16 %v3221_v18  ;;  %v3222_v49 = vunpack.i.l.bf16 %v3221_v18  ;;  %v3216_v59 = vpop.permute.xlu0 %3215  ;;  %2412 = vmatpush.msra.mxu1 %v3037_v6  ;;  %v3243_v56 = vunpack.i.h.bf16 %v3241_v41  ;;  %v3242_v20 = vunpack.i.l.bf16 %v3241_v41  ;;  %v3044_v13 = vld [vmem:[%s5695_s2 + $0x790] sm:$0xff] }
 0x426   :  { %v3218_v0 = vunpack.i.h.bf16 %v3216_v59  ;;  %v3217_v48 = vunpack.i.l.bf16 %v3216_v59  ;;  %2343 = vmatpush.msrb.mxu2 %v3016_v54  ;;  %v3042_v54 = vld [vmem:[%s5695_s2 + $0x780] sm:$0xff] }
 0x427   :  { %v2144_v43 = vsel %vm1468_vm0, %v3222_v49, %v3223_v7  ;;  %2413 = vmatpush.msra.mxu1 %v3036_v51  ;;  %v2072_v23 = vsel %vm1393_vm15, %v3242_v20, %v3243_v56 }
 0x428   :  { %v2070_v50 = vsel %vm1393_vm15, %v3217_v48, %v3218_v0  ;;  %2170 = vmatmul.f32.gmra.mxu0 %v2144_v43  ;;  %2240 = vmatmul.f32.vlgmr.msra.gmra.mxu3 %v4525_v42  ;;  %v3051_v42 = vld [vmem:[%s5695_s2 + $0x7c8] sm:$0xff]  ;;  %v3026_v48 = vld [vmem:[%s5695_s2 + $0x700] sm:$0xff] }
 0x429   :  { %2025 = vmatmul.f32.gmra.mxu2 %v1997_v35  ;;  %2096 = vmatmul.f32.gmra.mxu1 %v2070_v50 }
 0x42a   :  { %2344 = vmatpush.msrb.mxu2 %v3015_v16  ;;  %2414 = vmatpush.msra.mxu1 %v3035_v37  ;;  %v1348_v16 = vpop.f32.mrf.mxu2 }
 0x42b   :  { %2488 = vmatpush.msrb.mxu0 %v3051_v42 }
 0x42c   :  { %v3236_v1 = vpop.permute.xlu1 %3235  ;;  %2345 = vmatpush.msrb.mxu2 %v3014_v55  ;;  %2415 = vmatpush.msra.mxu1 %v3034_v61  ;;  %v3256_v2 = vpop.permute.xlu2 %3255 }
 0x42d   :  { %v3238_v25 = vunpack.i.h.bf16 %v3236_v1  ;;  %v3237_v11 = vunpack.i.l.bf16 %v3236_v1  ;;  %v3231_v53 = vpop.permute.xlu0 %3230  ;;  %2489 = vmatpush.msrb.mxu0 %v3050_v40  ;;  %v3258_v7 = vunpack.i.h.bf16 %v3256_v2  ;;  %v3257_v49 = vunpack.i.l.bf16 %v3256_v2 }
 0x42e   :  { %v3233_v63 = vunpack.i.h.bf16 %v3231_v53  ;;  %v3232_v34 = vunpack.i.l.bf16 %v3231_v53  ;;  %2346 = vmatpush.msrb.mxu2 %v3013_v24  ;;  %2416 = vmatpush.msra.mxu1 %v3033_v62 }
 0x42f   :  { %v2145_v17 = vsel %vm1468_vm0, %v3237_v11, %v3238_v25  ;;  %2490 = vmatpush.msrb.mxu0 %v3049_v3  ;;  %v2327_v50 = vsel %vm1293_vm6, %v3257_v49, %v3258_v7 }
 0x430   :  { %v2071_v29 = vsel %vm1393_vm15, %v3232_v34, %v3233_v63  ;;  %2173 = vmatmul.f32.gmra.mxu0 %v2145_v17  ;;  %2243 = vmatmul.f32.gmra.mxu3 %v4592_v39  ;;  %v3048_v39 = vld [vmem:[%s5695_s2 + $0x7b0] sm:$0xff] }
 0x431   :  { %2028 = vmatmul.f32.gmra.mxu2 %v1998_v8  ;;  %2099 = vmatmul.f32.gmra.mxu1 %v2071_v29 }
 0x432   :  { %2347 = vmatpush.msrb.mxu2 %v3012_v52  ;;  %2417 = vmatpush.msra.mxu1 %v3032_v19  ;;  %v1351_v3 = vpop.f32.mrf.mxu2 }
 0x433   :  { %2491 = vmatpush.msrb.mxu0 %v3048_v39 }
 0x434   :  { %v3251_v4 = vpop.permute.xlu1 %3250  ;;  %2348 = vmatpush.msrb.mxu2 %v3011_v28  ;;  %2418 = vmatpush.msra.mxu1 %v3031_v30  ;;  %v3271_v43 = vpop.permute.xlu2 %3270 }
 0x435   :  { %v3253_v38 = vunpack.i.h.bf16 %v3251_v4  ;;  %v3252_v12 = vunpack.i.l.bf16 %v3251_v4  ;;  %v3246_v27 = vpop.permute.xlu0 %3245  ;;  %2492 = vmatpush.msrb.mxu0 %v3047_v58  ;;  %v3273_v55 = vunpack.i.h.bf16 %v3271_v43  ;;  %v3272_v61 = vunpack.i.l.bf16 %v3271_v43 }
 0x436   :  { %v3248_v60 = vunpack.i.h.bf16 %v3246_v27  ;;  %v3247_v22 = vunpack.i.l.bf16 %v3246_v27  ;;  %2349 = vmatpush.msrb.mxu2 %v3010_v5  ;;  %2419 = vmatpush.msra.mxu1 %v3030_v10 }
 0x437   :  { %v2146_v47 = vsel %vm1468_vm0, %v3252_v12, %v3253_v38  ;;  %2493 = vmatpush.msrb.mxu0 %v3046_v15 }
 0x438   :  { %v2326_v57 = vsel %vm1293_vm6, %v3247_v22, %v3248_v60  ;;  %2176 = vmatmul.f32.gmra.mxu0 %v2146_v47  ;;  %2246 = vmatmul.f32.gmra.mxu3 %v4596_v9 }
 0x439   :  { %2102 = vmatmul.f32.gmra.mxu1 %v2072_v23  ;;  %2350 = vmatmul.f32.vlgmr.msrb.gmra.mxu2 %v2326_v57 }
 0x43a   :  { %2420 = vmatpush.msra.mxu1 %v3029_v33  ;;  %2494 = vmatpush.msrb.mxu0 %v3045_v32  ;;  %v1354_v38 = vpop.f32.mrf.mxu2 }
 0x43c   :  { %v3266_v45 = vpop.permute.xlu1 %3265  ;;  %2421 = vmatpush.msra.mxu1 %v3028_v44  ;;  %2495 = vmatpush.msrb.mxu0 %v3044_v13  ;;  %v3286_v40 = vpop.permute.xlu2 %3285 }
 0x43d   :  { %v3268_v18 = vunpack.i.h.bf16 %v3266_v45  ;;  %v3267_v6 = vunpack.i.l.bf16 %v3266_v45  ;;  %v3261_v9 = vpop.permute.xlu0 %3260  ;;  %v3288_v24 = vunpack.i.h.bf16 %v3286_v40  ;;  %v3287_v62 = vunpack.i.l.bf16 %v3286_v40 }
 0x43e   :  { %v3263_v59 = vunpack.i.h.bf16 %v3261_v9  ;;  %v3262_v0 = vunpack.i.l.bf16 %v3261_v9  ;;  %2422 = vmatpush.msra.mxu1 %v3027_v14  ;;  %2496 = vmatpush.msrb.mxu0 %v3043_v31 }
 0x43f   :  { %v2474_v35 = vsel %vm1468_vm0, %v3267_v6, %v3268_v18  ;;  %v2329_v39 = vsel %vm1293_vm6, %v3287_v62, %v3288_v24 }
 0x440   :  { %v2400_v51 = vsel %vm1393_vm15, %v3262_v0, %v3263_v59  ;;  %2423 = vmatpush.msra.mxu1 %v3026_v48  ;;  %2497 = vmatpush.msrb.mxu0 %v3042_v54 }
 0x441   :  { %2249 = vmatmul.f32.gmra.mxu3 %v4621_v26  ;;  %2353 = vmatmul.f32.gmra.mxu2 %v2327_v50  ;;  %v2328_v26 = vsel %vm1293_vm6, %v3272_v61, %v3273_v55 }
 0x442   :  { %2424 = vmatmul.f32.vlgmr.msra.gmra.mxu1 %v2400_v51  ;;  %2498 = vmatmul.f32.vlgmr.msrb.gmra.mxu0 %v2474_v35  ;;  %v1357_v23 = vpop.f32.mrf.mxu2 }
 0x444   :  { %v3281_v21 = vpop.permute.xlu1 %3280  ;;  %v3301_v28 = vpop.permute.xlu2 %3300 }
 0x445   :  { %v3283_v37 = vunpack.i.h.bf16 %v3281_v21  ;;  %v3282_v42 = vunpack.i.l.bf16 %v3281_v21  ;;  %v3276_v41 = vpop.permute.xlu0 %3275  ;;  %v3303_v20 = vunpack.i.h.bf16 %v3301_v28  ;;  %v3302_v4 = vunpack.i.l.bf16 %v3301_v28 }
 0x446   :  { %v3278_v46 = vunpack.i.h.bf16 %v3276_v41  ;;  %v3277_v36 = vunpack.i.l.bf16 %v3276_v41 }
 0x447   :  { %v2475_v25 = vsel %vm1468_vm0, %v3282_v42, %v3283_v37  ;;  %v2403_v27 = vsel %vm1393_vm15, %v3302_v4, %v3303_v20  ;;  %v2550_v4 = vld [vmem:[%s5696_s4 + $0x68] sm:$0xff] }
 0x448   :  { %v2401_v1 = vsel %vm1393_vm15, %v3277_v36, %v3278_v46 }
 0x449   :  { %2356 = vmatmul.f32.gmra.mxu2 %v2328_v26 }
 0x44a   :  { %2427 = vmatmul.f32.gmra.mxu1 %v2401_v1  ;;  %2501 = vmatmul.f32.gmra.mxu0 %v2475_v25 }
 0x44b   :  { %v1319_v11 = vpop.f32.mrf.mxu3 }
 0x44c   :  { %v3296_v53 = vpop.permute.xlu1 %3295  ;;  %v1349_v10 = vadd.f32 %v1348_v16, %v1319_v11 }
 0x44d   :  { %v3298_v63 = vunpack.i.h.bf16 %v3296_v53  ;;  %v3297_v34 = vunpack.i.l.bf16 %v3296_v53  ;;  %v3291_v17 = vpop.permute.xlu0 %3290 }
 0x44e   :  { %v3293_v8 = vunpack.i.h.bf16 %v3291_v17  ;;  %v3292_v29 = vunpack.i.l.bf16 %v3291_v17 }
 0x44f   :  { %v2476_v19 = vsel %vm1468_vm0, %v3297_v34, %v3298_v63 }
 0x450   :  { %v2402_v52 = vsel %vm1393_vm15, %v3292_v29, %v3293_v8 }
 0x451   :  { %2359 = vmatmul.f32.gmra.mxu2 %v2329_v39 }
 0x452   :  { %2430 = vmatmul.f32.gmra.mxu1 %v2402_v52  ;;  %2504 = vmatmul.f32.gmra.mxu0 %v2476_v19  ;;  %v2552_v19 = vld [vmem:[%s5696_s4 + $0x78] sm:$0xff] }
 0x453   :  { %v1322_v30 = vpop.f32.mrf.mxu3  ;;  %2553 = vmatpush.msrb.mxu3 %v2552_v19  ;;  %2574 = vmatpush.msra.mxu2 %v2552_v19 }
 0x454   :  { %v1352_v32 = vadd.f32 %v1351_v3, %v1322_v30 }
 0x455   :  { %v3306_v56 = vpop.permute.xlu0 %3305 }
 0x456   :  { %v3308_v58 = vunpack.i.h.bf16 %v3306_v56  ;;  %v3307_v2 = vunpack.i.l.bf16 %v3306_v56  ;;  %v2551_v56 = vld [vmem:[%s5696_s4 + $0x70] sm:$0xff] }
 0x457   :  { %2554 = vmatpush.msrb.mxu3 %v2551_v56  ;;  %2575 = vmatpush.msra.mxu2 %v2551_v56  ;;  %v2631_v56 = vld [vmem:[%s5697_s7 + $0x20] sm:$0xff] }
 0x458   :  { %v2477_v12 = vsel %vm1468_vm0, %v3307_v2, %v3308_v58  ;;  %v2549_v58 = vld [vmem:[%s5696_s4 + $0x60] sm:$0xff] }
 0x459   :  { %2555 = vmatpush.msrb.mxu3 %v2550_v4  ;;  %2576 = vmatpush.msra.mxu2 %v2550_v4 }
 0x45a   :  { %2433 = vmatmul.f32.gmra.mxu1 %v2403_v27  ;;  %2507 = vmatmul.f32.gmra.mxu0 %v2477_v12 }
 0x45b   :  { %v1325_v5 = vpop.f32.mrf.mxu3  ;;  %2556 = vmatpush.msrb.mxu3 %v2549_v58  ;;  %2577 = vmatpush.msra.mxu2 %v2549_v58 }
 0x45c   :  { %v1355_v9 = vadd.f32 %v1354_v38, %v1325_v5  ;;  %v2548_v38 = vld [vmem:[%s5696_s4 + $0x58] sm:$0xff] }
 0x45d   :  { %v1494_v60 = vpop.f32.mrf.mxu0  ;;  %2557 = vmatpush.msrb.mxu3 %v2548_v38  ;;  %2578 = vmatpush.msra.mxu2 %v2548_v38 }
 0x45e   :  { %v1419_v22 = vpop.f32.mrf.mxu1 }
 0x45f   :  { %v1431_v15 = vadd.f32 %v1419_v22, %v1349_v10 }
 0x461   :  { %v1506_v47 = vadd.f32 %v1494_v60, %v1431_v15  ;;  %v2547_v60 = vld [vmem:[%s5696_s4 + $0x50] sm:$0xff] }
 0x462   :  { %2558 = vmatpush.msrb.mxu3 %v2547_v60  ;;  %2579 = vmatpush.msra.mxu2 %v2547_v60 }
 0x463   :  { %v1328_v57 = vpop.f32.mrf.mxu3 }
 0x464   :  { %v1358_v33 = vadd.f32 %v1357_v23, %v1328_v57  ;;  %v2546_v57 = vld [vmem:[%s5696_s4 + $0x48] sm:$0xff] }
 0x465   :  { %v1497_v44 = vpop.f32.mrf.mxu0  ;;  %2559 = vmatpush.msrb.mxu3 %v2546_v57  ;;  %2580 = vmatpush.msra.mxu2 %v2546_v57 }
 0x466   :  { %v1422_v13 = vpop.f32.mrf.mxu1 }
 0x467   :  { %v1432_v45 = vadd.f32 %v1422_v13, %v1352_v32  ;;  %v2544_v32 = vld [vmem:[%s5696_s4 + $0x38] sm:$0xff] }
 0x469   :  { %v1507_v14 = vadd.f32 %v1497_v44, %v1432_v45 }
 0x46b   :  { %v1571_v18 = vpop.f32.mrf.mxu3 }
 0x46c   :  { %v1583_v6 = vadd.f32 %v1571_v18, %v1506_v47  ;;  %v2543_v18 = vld [vmem:[%s5696_s4 + $0x30] sm:$0xff] }
 0x46d   :  { %v1500_v31 = vpop.f32.mrf.mxu0 }
 0x46e   :  { %v1425_v7 = vpop.f32.mrf.mxu1 }
 0x46f   :  { %v1433_v49 = vadd.f32 %v1425_v7, %v1355_v9 }
 0x471   :  { %v1508_v59 = vadd.f32 %v1500_v31, %v1433_v49 }
 0x473   :  { %v1574_v0 = vpop.f32.mrf.mxu3 }
 0x474   :  { %v1584_v2 = vadd.f32 %v1574_v0, %v1507_v14  ;;  %v2542_v0 = vld [vmem:[%s5696_s4 + $0x28] sm:$0xff] }
 0x475   :  { %v1503_v48 = vpop.f32.mrf.mxu0 }
 0x476   :  { %v1428_v43 = vpop.f32.mrf.mxu1 }
 0x477   :  { %v1434_v54 = vadd.f32 %v1428_v43, %v1358_v33  ;;  %v2545_v33 = vld [vmem:[%s5696_s4 + $0x40] sm:$0xff] }
 0x478   :  { %2560 = vmatpush.msrb.mxu3 %v2545_v33  ;;  %2581 = vmatpush.msra.mxu2 %v2545_v33 }
 0x479   :  { %v5511_v51 = vadd.f32 %v1503_v48, %v1434_v54 }
 0x47a   :  { %2561 = vmatpush.msrb.mxu3 %v2544_v32  ;;  %2582 = vmatpush.msra.mxu2 %v2544_v32 }
 0x47b   :  { %v1577_v35 = vpop.f32.mrf.mxu3 }
 0x47c   :  { %v1689_v50 = vpop.f32.mrf.mxu2  ;;  %v1585_v10 = vadd.f32 %v1577_v35, %v1508_v59  ;;  %2562 = vmatpush.msrb.mxu3 %v2543_v18  ;;  %2583 = vmatpush.msra.mxu2 %v2543_v18  ;;  %v2541_v35 = vld [vmem:[%s5696_s4 + $0x20] sm:$0xff] }
 0x47d   :  { %v1701_v21 = vadd.f32 %v1689_v50, %v1583_v6  ;;  %v1837_v16 = vpop.f32.mrf.mxu0 }
 0x47e   :  { %v1763_v37 = vpop.f32.mrf.mxu1  ;;  %2563 = vmatpush.msrb.mxu3 %v2542_v0  ;;  %2584 = vmatpush.msra.mxu2 %v2542_v0 }
 0x47f   :  { %v1775_v42 = vadd.f32 %v1763_v37, %v1701_v21  ;;  %v2540_v37 = vld [vmem:[%s5696_s4 + $0x18] sm:$0xff] }
 0x480   :  { %2564 = vmatpush.msrb.mxu3 %v2541_v35  ;;  %2585 = vmatpush.msra.mxu2 %v2541_v35 }
 0x481   :  { %v5513_v41 = vadd.f32 %v1837_v16, %v1775_v42 }
 0x482   :  { %2565 = vmatpush.msrb.mxu3 %v2540_v37  ;;  %2586 = vmatpush.msra.mxu2 %v2540_v37 }
 0x483   :  { %v1580_v55 = vpop.f32.mrf.mxu3 }
 0x484   :  { %v1692_v61 = vpop.f32.mrf.mxu2  ;;  %v1586_v45 = vadd.f32 %v1580_v55, %v5511_v51 }
 0x485   :  { %v1840_v46 = vpop.f32.mrf.mxu0  ;;  %v1702_v12 = vadd.f32 %v1692_v61, %v1584_v2  ;;  %v2630_v2 = vld [vmem:[%s5697_s7 + $0x18] sm:$0xff] }
 0x486   :  { %v1766_v36 = vpop.f32.mrf.mxu1 }
 0x487   :  { %v1776_v15 = vadd.f32 %v1766_v36, %v1702_v12 }
 0x489   :  { %v1850_v44 = vadd.f32 %v1840_v46, %v1776_v15  ;;  %v2628_v15 = vld [vmem:[%s5697_s7 + $0x8] sm:$0xff] }
 0x48b   :  { %v5515_v40 = vpop.f32.mrf.mxu3 }
 0x48c   :  { %v1695_v1 = vpop.f32.mrf.mxu2  ;;  %v1922_v31 = vadd.f32 %v5515_v40, %v5513_v41  ;;  %v2539_v41 = vld [vmem:[%s5696_s4 + $0x10] sm:$0xff] }
 0x48d   :  { %v5517_v25 = vpop.f32.mrf.mxu0  ;;  %v1703_v47 = vadd.f32 %v1695_v1, %v1585_v10  ;;  %2566 = vmatpush.msrb.mxu3 %v2539_v41  ;;  %2587 = vmatpush.msra.mxu2 %v2539_v41  ;;  %v2538_v1 = vld [vmem:[%s5696_s4 + $0x8] sm:$0xff]  ;;  %v2629_v10 = vld [vmem:[%s5697_s7 + $0x10] sm:$0xff] }
 0x48e   :  { %v1769_v26 = vpop.f32.mrf.mxu1 }
 0x48f   :  { %v1777_v13 = vadd.f32 %v1769_v26, %v1703_v47  ;;  %2567 = vmatpush.msrb.mxu3 %v2538_v1  ;;  %2588 = vmatpush.msra.mxu2 %v2538_v1  ;;  %v2623_v1 = vld [vmem:[%s5691_s0] sm:$0xff] }
 0x491   :  { %v1851_v7 = vadd.f32 %v5517_v25, %v1777_v13 }
 0x493   :  { %v1913_v63 = vpop.f32.mrf.mxu3 }
 0x494   :  { %v5519_v11 = vpop.f32.mrf.mxu2  ;;  %v1923_v14 = vadd.f32 %v1913_v63, %v1850_v44  ;;  %v2627_v44 = vld [vmem:[%s5697_s7] sm:$0xff] }
 0x495   :  { %v5521_v53 = vpop.f32.mrf.mxu0  ;;  %v1704_v49 = vadd.f32 %v5519_v11, %v1586_v45 }
 0x496   :  { %v5523_v34 = vpop.f32.mrf.mxu1 }
 0x497   :  { %v1778_v50 = vadd.f32 %v5523_v34, %v1704_v49 }
 0x499   :  { %v1852_v61 = vadd.f32 %v5521_v53, %v1778_v50  ;;  %v2537_v53 = vld [vmem:[%s5696_s4] sm:$0xff] }
 0x49a   :  { %2568 = vmatpush.msrb.mxu3 %v2537_v53  ;;  %2589 = vmatpush.msra.mxu2 %v2537_v53 }
 0x49b   :  { %v1916_v8 = vpop.f32.mrf.mxu3 }
 0x49c   :  { %v5525_v17 = vpop.f32.mrf.mxu2  ;;  %v1924_v43 = vadd.f32 %v1916_v8, %v1851_v7 }
 0x49d   :  { %v5527_v24 = vpop.f32.mrf.mxu0  ;;  %v2032_v54 = vadd.f32 %v5525_v17, %v1922_v31  ;;  %v2634_v17 = vld [vmem:[%s5697_s7 + $0x38] sm:$0xff] }
 0x49e   :  { %v5529_v62 = vpop.f32.mrf.mxu1  ;;  %2658 = vmatpush.msra.mxu3 %v2634_v17 }
 0x49f   :  { %v2106_v42 = vadd.f32 %v5529_v62, %v2032_v54  ;;  %v2633_v62 = vld [vmem:[%s5697_s7 + $0x30] sm:$0xff] }
 0x4a0   :  { %2659 = vmatpush.msra.mxu3 %v2633_v62 }
 0x4a1   :  { %v2180_v26 = vadd.f32 %v5527_v24, %v2106_v42 }
 0x4a3   :  { %v5538_v39 = vpop.f32.mrf.mxu3 }
 0x4a4   :  { %v2023_v29 = vpop.f32.mrf.mxu2  ;;  %v1925_v11 = vadd.f32 %v5538_v39, %v1852_v61 }
 0x4a5   :  { %v5531_v3 = vpop.f32.mrf.mxu0  ;;  %v2033_v59 = vadd.f32 %v2023_v29, %v1923_v14 }
 0x4a6   :  { %v5533_v52 = vpop.f32.mrf.mxu1 }
 0x4a7   :  { %v2107_v21 = vadd.f32 %v5533_v52, %v2033_v59  ;;  %v2632_v52 = vld [vmem:[%s5697_s7 + $0x28] sm:$0xff] }
 0x4a8   :  { %2660 = vmatpush.msra.mxu3 %v2632_v52 }
 0x4a9   :  { %v2181_v46 = vadd.f32 %v5531_v3, %v2107_v21 }
 0x4aa   :  { %2661 = vmatpush.msra.mxu3 %v2631_v56  ;;  %v2597_v56 = vld [vmem:[%s5698_s6] sm:$0x1] }
 0x4ab   :  { %v5556_v27 = vpop.f32.mrf.mxu3 }
 0x4ac   :  { %v2026_v28 = vpop.f32.mrf.mxu2  ;;  %v2253_v24 = vadd.f32 %v5556_v27, %v2180_v26  ;;  %2662 = vmatpush.msra.mxu3 %v2630_v2  ;;  %v2626_v26 = vld [vmem:[%s5691_s0 + $0x18] sm:$0xff]  ;;  %v2610_v2 = vld [vmem:[%s5698_s6 + $0x1] sm:$0x1] }
 0x4ad   :  { %v5540_v30 = vpop.f32.mrf.mxu0  ;;  %v2034_v16 = vadd.f32 %v2026_v28, %v1924_v43 }
 0x4ae   :  { %v5545_v20 = vpop.f32.mrf.mxu1  ;;  %2663 = vmatpush.msra.mxu3 %v2629_v10 }
 0x4af   :  { %v2108_v36 = vadd.f32 %v5545_v20, %v2034_v16 }
 0x4b0   :  { %2664 = vmatpush.msra.mxu3 %v2628_v15 }
 0x4b1   :  { %v2182_v8 = vadd.f32 %v5540_v30, %v2108_v36 }
 0x4b2   :  { %2665 = vmatpush.msra.mxu3 %v2627_v44 }
 0x4b3   :  { %v2244_v6 = vpop.f32.mrf.mxu3 }
 0x4b4   :  { %v5558_v5 = vpop.f32.mrf.mxu2  ;;  %v2254_v63 = vadd.f32 %v2244_v6, %v2181_v46 }
 0x4b5   :  { %v5565_v23 = vpop.f32.mrf.mxu0  ;;  %v2035_v29 = vadd.f32 %v5558_v5, %v1925_v11 }
 0x4b6   :  { %v5563_v22 = vpop.f32.mrf.mxu1 }
 0x4b7   :  { %v2109_v20 = vadd.f32 %v5563_v22, %v2035_v29 }
 0x4b9   :  { %v2183_v60 = vadd.f32 %v5565_v23, %v2109_v20 }
 0x4bb   :  { %v2247_v40 = vpop.f32.mrf.mxu3 }
 0x4bc   :  { %v2351_v9 = vpop.f32.mrf.mxu2  ;;  %v2255_v19 = vadd.f32 %v2247_v40, %v2182_v8  ;;  %v2624_v40 = vld [vmem:[%s5691_s0 + $0x8] sm:$0xff] }
 0x4bd   :  { %v2363_v39 = vadd.f32 %v2351_v9, %v2253_v24 }
 0x4bf   :  { %v2425_v48 = vpop.f32.mrf.mxu1  ;;  %v2499_v51 = vpop.f32.mrf.mxu0 }
 0x4c0   :  { %v2437_v38 = vadd.f32 %v2425_v48, %v2363_v39 }
 0x4c2   :  { %v5639_v47 = vadd.f32 %v2499_v51, %v2437_v38 }
 0x4c4   :  { %v2354_v55 = vpop.f32.mrf.mxu2  ;;  %v2250_v5 = vpop.f32.mrf.mxu3  ;;  %v2524_v14 = vmul.f32 %v5639_v47, %v5639_v47 }
 0x4c5   :  { %v2364_v3 = vadd.f32 %v2354_v55, %v2254_v63  ;;  %v2256_v57 = vadd.f32 %v2250_v5, %v2183_v60 }
 0x4c7   :  { %v2428_v25 = vpop.f32.mrf.mxu1  ;;  %v2502_v34 = vpop.f32.mrf.mxu0 }
 0x4c8   :  { %v2438_v4 = vadd.f32 %v2428_v25, %v2364_v3  ;;  %v2625_v25 = vld [vmem:[%s5691_s0 + $0x10] sm:$0xff] }
 0x4ca   :  { %v5634_v22 = vadd.f32 %v2502_v34, %v2438_v4 }
 0x4cc   :  { %v2357_v28 = vpop.f32.mrf.mxu2  ;;  %v2525_v23 = vmul.f32 %v5634_v22, %v5634_v22  ;;  %v2515_v18 = vadd.f32 %v5634_v22, %v5639_v47 }
 0x4cd   :  { %v2365_v30 = vadd.f32 %v2357_v28, %v2255_v19 }
 0x4ce   :  { %v2528_v7 = vadd.f32 %v2525_v23, %v2524_v14 }
 0x4cf   :  { %v2431_v58 = vpop.f32.mrf.mxu1  ;;  %v2505_v27 = vpop.f32.mrf.mxu0 }
 0x4d0   :  { %v2439_v12 = vadd.f32 %v2431_v58, %v2365_v30 }
 0x4d2   :  { %v5641_v33 = vadd.f32 %v2505_v27, %v2439_v12  ;;  %v3309_v27 = vld [vmem:[%s5698_s6 + $0x2] ss:$0 sm:$0xff] }
 0x4d4   :  { %v2360_v32 = vpop.f32.mrf.mxu2  ;;  %v2526_v6 = vmul.f32 %v5641_v33, %v5641_v33  ;;  %v2516_v49 = vadd.f32 %v2515_v18, %v5641_v33 }
 0x4d5   :  { %v2366_v13 = vadd.f32 %v2360_v32, %v2256_v57 }
 0x4d6   :  { %v2529_v0 = vadd.f32 %v2528_v7, %v2526_v6 }
 0x4d7   :  { %v2434_v45 = vpop.f32.mrf.mxu1  ;;  %v2508_v31 = vpop.f32.mrf.mxu0 }
 0x4d8   :  { %v2440_v9 = vadd.f32 %v2434_v45, %v2366_v13 }
 0x4da   :  { %v2514_v59 = vadd.f32 %v2508_v31, %v2440_v9 }
 0x4dc   :  { %v2517_v48 = vadd.f32 %v2516_v49, %v2514_v59  ;;  %v2527_v43 = vmul.f32 %v2514_v59, %v2514_v59 }
 0x4de   :  { %v2518_v54 = vrot.slane %v2517_v48, 4  ;;  %v2530_v51 = vadd.f32 %v2529_v0, %v2527_v43 }
 0x4e0   :  { %v2519_v35 = vadd.f32 %v2518_v54, %v2517_v48  ;;  %v2531_v50 = vrot.slane %v2530_v51, 4 }
 0x4e2   :  { %v2520_v21 = vrot.slane %v2519_v35, 2  ;;  %v2532_v16 = vadd.f32 %v2531_v50, %v2530_v51 }
 0x4e4   :  { %v2521_v37 = vadd.f32 %v2520_v21, %v2519_v35  ;;  %v2533_v42 = vrot.slane %v2532_v16, 2 }
 0x4e6   :  { %v2522_v41 = vrot.slane %v2521_v37, 1  ;;  %v2534_v55 = vadd.f32 %v2533_v42, %v2532_v16 }
 0x4e8   :  { %v2523_v61 = vadd.f32 %v2522_v41, %v2521_v37  ;;  %v2535_v46 = vrot.slane %v2534_v55, 1 }
 0x4ea   :  { %2569 = vmatmul.f32.vlgmr.msrb.gmra.mxu3 %v2523_v61  ;;  %v2536_v36 = vadd.f32 %v2535_v46, %v2534_v55 }
 0x4ec   :  { %2590 = vmatmul.f32.vlgmr.msra.gmra.mxu2 %v2536_v36 }
 0x4f2   :  { %3058 = vmatmul.msk.f32.vlgmr.msra.gmra.mxu3 %vm2637_vm1, %v2623_v1 }
 0x4fa   :  { %3059 = vmatmul.msk.f32.gmra.mxu3 %vm2637_vm1, %v2624_v40 }
 0x502   :  { %3060 = vmatmul.msk.f32.gmra.mxu3 %vm2637_vm1, %v2625_v25 }
 0x50a   :  { %3061 = vmatmul.msk.f32.gmra.mxu3 %vm2637_vm1, %v2626_v26 }
 0x56d   :  { %v2570_v11 = vpop.f32.mrf.mxu3 }
 0x56e   :  { %v2573_v63 = vmul.f32 0.001953125, %v2570_v11 }
 0x56f   :  { %v2591_v34 = vpop.f32.mrf.mxu2 }
 0x570   :  { %v2595_v53 = vmul.f32 %v2573_v63, %v2573_v63  ;;  %v2594_v17 = vmul.f32 0.001953125, %v2591_v34 }
 0x572   :  { %v2596_v62 = vsub.f32 %v2594_v17, %v2595_v53 }
 0x574   :  { %v2598_v24 = vadd.f32 1e-05, %v2596_v62 }
 0x575   :  { %v2667_v8 = vpop.f32.mrf.mxu3 }
 0x576   :  { %3314 = vrsqrt.f32 %v2598_v24  ;;  %vm2605_vm3 = vweird.f32 %v2598_v24  ;;  %v2668_v13 = vadd.f32 %v3309_v27, %v2667_v8 }
 0x57c   :  { %v3315_v29 = vpop.eup %3314 }
 0x57d   :  { %v2600_v3 = vmul.f32 %v3315_v29, %v2598_v24  ;;  %v2670_v52 = vpop.f32.mrf.mxu3  ;;  %vm2606_vm2 = vweird.f32 %v3315_v29 }
 0x57e   :  { %vm2607_vm4 = vmor %vm2605_vm3, %vm2606_vm2  ;;  %v2671_v45 = vadd.f32 %v3309_v27, %v2670_v52 }
 0x57f   :  { %v2601_v19 = vmul.f32 %v3315_v29, %v2600_v3 }
 0x581   :  { %v2602_v39 = vmul.f32 0.5, %v2601_v19 }
 0x583   :  { %v2603_v28 = vsub.f32 1.5, %v2602_v39 }
 0x585   :  { %v2604_v20 = vmul.f32 %v3315_v29, %v2603_v28  ;;  %v2673_v4 = vpop.f32.mrf.mxu3 }
 0x586   :  { %v2674_v14 = vadd.f32 %v3309_v27, %v2673_v4 }
 0x587   :  { %v2608_v30 = vsel %vm2607_vm4, %v3315_v29, %v2604_v20 }
 0x588   :  { %v2609_v58 = vmul.f32 %v2608_v30, %v2597_v56 }
 0x58a   :  { %v2611_v38 = vmul.f32 %v2609_v58, %v2573_v63  ;;  %v2613_v12 = vperm.slane %v2609_v58, 0 }
 0x58c   :  { %v2612_v5 = vsub.f32 %v2610_v2, %v2611_v38  ;;  %v2614_v10 = vmul.f32 %v2613_v12, %v5639_v47  ;;  %v2615_v60 = vmul.f32 %v2613_v12, %v5634_v22  ;;  %v2616_v32 = vmul.f32 %v2613_v12, %v5641_v33 }
 0x58d   :  { %v2676_v15 = vpop.f32.mrf.mxu3  ;;  %v2617_v44 = vmul.f32 %v2613_v12, %v2514_v59 }
 0x58e   :  { %v2618_v57 = vperm.slane %v2612_v5, 0  ;;  %v2677_v23 = vadd.f32 %v3309_v27, %v2676_v15 }
 0x590   :  { %v2619_v18 = vadd.f32 %v2618_v57, %v2614_v10  ;;  %v2620_v6 = vadd.f32 %v2618_v57, %v2615_v60  ;;  %v2621_v9 = vadd.f32 %v2618_v57, %v2616_v32  ;;  %v2622_v31 = vadd.f32 %v2618_v57, %v2617_v44 }
 0x592   :  { %v2679_v7 = vadd.f32 %v2668_v13, %v2619_v18  ;;  %v2680_v49 = vadd.f32 %v2671_v45, %v2620_v6  ;;  %v2681_v0 = vadd.f32 %v2674_v14, %v2621_v9  ;;  %v2682_v48 = vadd.f32 %v2677_v23, %v2622_v31 }
 0x594   :  { %v2683_v47 = vmax.f32 %v2679_v7, 0.0  ;;  %v2684_v43 = vmax.f32 %v2680_v49, 0.0  ;;  %v2685_v22 = vmax.f32 %v2681_v0, 0.0  ;;  %v2686_v54 = vmax.f32 %v2682_v48, 0.0 }
 0x596   :  { %2687 = vst [vmem:[%s5699_s8] sm:$0xff] %v2683_v47 }
 0x597   :  { %2688 = vst [vmem:[%s5699_s8 + $0x8] sm:$0xff] %v2684_v43 }
 0x598   :  { %2689 = vst [vmem:[%s5699_s8 + $0x10] sm:$0xff] %v2685_v22 }
 0x599   :  { %2690 = vst [vmem:[%s5699_s8 + $0x18] sm:$0xff] %v2686_v54 }

</bundles_post_ra>
